<compile_context>
chip_gen: v7x
topology: tpu7x:2x2x1
jax: 0.10.0
libtpu: 0.0.40
codegen_flags: <defaults>
</compile_context>

<pallas_src>
import jax
import jax.numpy as jnp
from jax.experimental import pallas as pl
from jax.experimental.pallas import tpu as pltpu


_BN_EPS = 1e-5


# --------------------------------------------------------------------------- #
# Kernel
# --------------------------------------------------------------------------- #
def _prediction_mlp_kernel(x_ref, w1_ref, gamma_ref, beta_ref, w2_ref, b2_ref,
                           o_ref, acc_ref):
    """Grid = (out_dim tiles [parallel], hidden slabs [reduction])."""
    h_step = pl.program_id(1)

    @pl.when(h_step == 0)
    def _():
        # Fold the layer-2 bias into the accumulator init (saves a full
        # N x tile_out VPU add + extra accumulator pass at the epilogue).
        acc_ref[...] = jnp.broadcast_to(b2_ref[...], acc_ref.shape).astype(
            jnp.float32)

    # ---- layer1: Linear(in_dim -> tile_h slab), bf16 operands, f32 acc.
    # (Linear-1 bias omitted: cancelled exactly by BN batch-mean subtraction.)
    h = jnp.dot(x_ref[...], w1_ref[...], preferred_element_type=jnp.float32)

    # ---- layer1: BatchNorm1d training-mode batch stats (two-pass variance:
    # centered moments avoid E[h^2]-E[h]^2 cancellation) ----
    inv_n = 1.0 / h.shape[0]
    mean = jnp.sum(h, axis=0, keepdims=True) * inv_n
    centered = h - mean
    var = jnp.sum(centered * centered, axis=0, keepdims=True) * inv_n
    scale = gamma_ref[...] * jax.lax.rsqrt(var + _BN_EPS)   # EUP rsqrt

    # ---- layer1: fused normalize + affine, then ReLU ----
    h = jnp.maximum(centered * scale + beta_ref[...], 0.0)

    # ---- layer2 partial: accumulate this hidden slab's contribution ----
    acc_ref[...] += jnp.dot(h.astype(w2_ref.dtype), w2_ref[...],
                            preferred_element_type=jnp.float32)

    @pl.when(h_step == pl.num_programs(1) - 1)
    def _():
        o_ref[...] = acc_ref[...].astype(o_ref.dtype)


# --------------------------------------------------------------------------- #
# Generation-aware sizing helpers
# --------------------------------------------------------------------------- #
def _tpu_vmem_capacity_bytes():
    """Physical VMEM per TensorCore; conservative 64 MiB fallback."""
    try:
        info = pltpu.get_tpu_info()
        for attr in ("vmem_capacity_bytes", "vmem_bytes", "vmem_size_bytes"):
            v = getattr(info, attr, None)
            if isinstance(v, int) and v > 0:
                return v
    except Exception:
        pass
    return 64 << 20  # v7x-sized fallback (safe everywhere)


def _num_tensorcores():
    """Best-effort TensorCore count (2 on v7x-style chips, else 1)."""
    try:
        info = pltpu.get_tpu_info()
        for attr in ("num_cores", "num_tensorcores", "tensorcore_count",
                     "core_count"):
            v = getattr(info, attr, None)
            if isinstance(v, int) and v > 0:
                return v
    except Exception:
        pass
    return 1


def _pick_num_out_tiles(out_dim):
    cores = _num_tensorcores()
    if cores >= 2 and out_dim % 256 == 0:
        return 2   # engage both TensorCores via the "parallel" out_dim axis
    return 1


def _pick_tile_h(hidden, n, in_dim, tile_out, out_itemsize, budget_bytes):
    """Largest hidden slab (multiple of 256/128 dividing `hidden`) that fits.

    VMEM accounting counts Pallas' default double buffering for every BlockSpec
    input/output — including the constant-index ones (x, b2, output block).
    """
    resident = (2 * 2 * n * in_dim                 # x, bf16, double-buffered
                + 2 * out_itemsize * n * tile_out  # output block, double-buf
                + 4 * n * tile_out                 # f32 accumulator scratch
                + 2 * 4 * tile_out)                # b2, f32, double-buffered

    def total(t):
        # double-buffered bf16 w1/w2 slabs + f32 gamma/beta slabs
        streamed = 2 * (2 * in_dim * t + 2 * t * tile_out + 2 * 4 * t)
        return resident + streamed

    if hidden % 256 == 0:
        step = 256          # full MXU width on v6e/v7x
    elif hidden % 128 == 0:
        step = 128          # v5e's 128-wide MXUs are fine with this
    else:
        step = hidden       # tiny / irregular hidden: single full block

    best = None
    t = step
    while t <= hidden:
        if hidden % t == 0 and total(t) <= budget_bytes:
            best = t
        t += step
    if best is None:
        # TODO(synk): large-batch regime — switch to a two-pallas_call path
        # (layer1+BN+ReLU to HBM, then an M/N-tiled matmul for layer2) so the
        # batch can be tiled without breaking BatchNorm batch statistics.
        raise ValueError(
            "prediction_mlp: VMEM footprint too large "
            f"(resident={resident} B, budget={budget_bytes} B); batch={n} is "
            "too big for the single-call kernel.")
    return best


# --------------------------------------------------------------------------- #
# Wrapper
# --------------------------------------------------------------------------- #
def prediction_mlp(x, params, *, tile_h=None, num_out_tiles=None,
                   compute_dtype=jnp.bfloat16, out_dtype=None):
    """x: [N, in_dim] float32. params: dict of weights (see init_params)."""
    n, in_dim = x.shape
    hidden = params["w1"].shape[1]
    out_dim = params["w2"].shape[1]
    out_dtype = x.dtype if out_dtype is None else jnp.dtype(out_dtype)
    out_itemsize = jnp.dtype(out_dtype).itemsize

    # Generation-aware VMEM budgets (~40 MiB tiles / 48 MiB limit on v7x,
    # ~83 MiB / 96 MiB on v5e/v6e).
    vmem_cap = _tpu_vmem_capacity_bytes()
    tile_budget = int(vmem_cap * 0.65)
    vmem_limit = int(vmem_cap * 0.75)

    if num_out_tiles is None:
        num_out_tiles = _pick_num_out_tiles(out_dim)
    assert out_dim % num_out_tiles == 0, "num_out_tiles must divide out_dim"
    tile_out = out_dim // num_out_tiles
    assert tile_out % 128 == 0 or num_out_tiles == 1, \
        "out_dim tile must be a multiple of 128"

    if tile_h is None:
        tile_h = _pick_tile_h(hidden, n, in_dim, tile_out, out_itemsize,
                              tile_budget)
    assert hidden % tile_h == 0, "tile_h must divide hidden"
    num_h_tiles = hidden // tile_h

    # bf16 operands (halve weight-streaming DMA, 2x MXU) with f32 accumulation.
    # TODO(synk): int8 (v5e/v6e) / fp8 (v7x) weight quantization would halve
    # the weight bytes again for the small-batch, bandwidth-bound regime.
    x_c = x.astype(compute_dtype)
    w1 = params["w1"].astype(compute_dtype)
    w2 = params["w2"].astype(compute_dtype)
    gamma = params["gamma"].astype(jnp.float32)
    beta = params["beta"].astype(jnp.float32)
    b2 = params["b2"].astype(jnp.float32)
    # NOTE: params["b1"] is intentionally unused (cancelled by train-mode BN).

    flops = (2 * n * in_dim * hidden * num_out_tiles   # layer1 (per out tile)
             + 2 * n * hidden * out_dim)               # layer2
    bytes_accessed = (x_c.size * x_c.dtype.itemsize
                      + num_out_tiles * w1.size * w1.dtype.itemsize
                      + w2.size * w2.dtype.itemsize
                      + num_out_tiles * 4 * (gamma.size + beta.size)
                      + 4 * b2.size
                      + out_itemsize * n * out_dim)
    cost = pl.CostEstimate(flops=flops,
                           transcendentals=hidden * num_out_tiles,
                           bytes_accessed=bytes_accessed)

    grid_spec = pltpu.PrefetchScalarGridSpec(
        num_scalar_prefetch=0,
        grid=(num_out_tiles, num_h_tiles),
        in_specs=[
            pl.BlockSpec((n, in_dim), lambda j, h: (0, 0)),         # x resident
            pl.BlockSpec((in_dim, tile_h), lambda j, h: (0, h)),    # w1 slab
            pl.BlockSpec((1, tile_h), lambda j, h: (0, h)),         # gamma slab
            pl.BlockSpec((1, tile_h), lambda j, h: (0, h)),         # beta slab
            pl.BlockSpec((tile_h, tile_out), lambda j, h: (h, j)),  # w2 tile
            pl.BlockSpec((1, tile_out), lambda j, h: (0, j)),       # b2 tile
        ],
        out_specs=pl.BlockSpec((n, tile_out), lambda j, h: (0, j)),
        scratch_shapes=[pltpu.VMEM((n, tile_out), jnp.float32)],
    )

    return pl.pallas_call(
        _prediction_mlp_kernel,
        out_shape=jax.ShapeDtypeStruct((n, out_dim), out_dtype),
        grid_spec=grid_spec,
        compiler_params=pltpu.CompilerParams(
            # out_dim tiles are independent (megacore-parallel on v7x); the
            # hidden axis is layer2's reduction and MUST stay "arbitrary".
            dimension_semantics=("parallel", "arbitrary"),
            vmem_limit_bytes=vmem_limit,
        ),
        cost_estimate=cost,
    )(x_c, w1, gamma, beta, w2, b2)


# --------------------------------------------------------------------------- #
# Parameters / reference
# --------------------------------------------------------------------------- #
def init_params(key, in_dim):
    """Deterministic synthetic parameters matching prediction_MLP(in_dim)."""
    out_dim = in_dim
    hidden = in_dim // 4
    k1, k2, k3, k4 = jax.random.split(key, 4)
    # PyTorch Linear weight is [out, in]; store the transpose [in, out].
    w1 = jax.random.normal(k1, (in_dim, hidden), jnp.float32) * 0.05
    b1 = jax.random.normal(k2, (1, hidden), jnp.float32) * 0.05
    w2 = jax.random.normal(k3, (hidden, out_dim), jnp.float32) * 0.05
    b2 = jax.random.normal(k4, (1, out_dim), jnp.float32) * 0.05
    gamma = jnp.ones((1, hidden), jnp.float32)   # BatchNorm1d weight init = 1
    beta = jnp.zeros((1, hidden), jnp.float32)   # BatchNorm1d bias init = 0
    return {"w1": w1, "b1": b1, "gamma": gamma, "beta": beta,
            "w2": w2, "b2": b2}


def _reference(x, p):
    """Pure-JAX f32 reference of the PyTorch forward (train-mode BN)."""
    h = x @ p["w1"] + p["b1"]
    mean = jnp.mean(h, axis=0, keepdims=True)
    var = jnp.mean((h - mean) ** 2, axis=0, keepdims=True)   # biased variance
    h = (h - mean) / jnp.sqrt(var + _BN_EPS)
    h = h * p["gamma"] + p["beta"]
    h = jnp.maximum(h, 0.0)
    return h @ p["w2"] + p["b2"]


if __name__ == "__main__":
    # Module-default shapes: in_dim=2048 -> hidden=512, out_dim=2048.
    batch, in_dim = 16, 2048
    key = jax.random.PRNGKey(0)
    kx, kp = jax.random.split(key)
    x = jax.random.normal(kx, (batch, in_dim), jnp.float32)
    params = init_params(kp, in_dim)
    ref = _reference(x, params)

    # 1) Auto-tuned config (generation-aware tile_h / out-tile split).
    out_auto = jax.block_until_ready(prediction_mlp(x, params))
    # 2) Forced multi-step config: 2 hidden slabs x 2 out tiles exercises the
    #    accumulator path and the parallel out_dim axis on any generation.
    out_tiled = jax.block_until_ready(
        prediction_mlp(x, params, tile_h=256, num_out_tiles=2))

    for out in (out_auto, out_tiled):
        assert out.shape == (batch, in_dim)
        # bf16 operands vs f32 reference -> loose tolerance.
        assert jnp.allclose(out, ref, atol=8e-2, rtol=8e-2), \
            "mismatch vs reference"

    print("KERNEL_OK")
</pallas_src>

<mosaic_0001>
module attributes {stable_mosaic.version = 11 : i64} {
  func.func @_prediction_mlp_kernel(%arg0: i32, %arg1: i32, %arg2: memref<16x2048xbf16, #tpu.memory_space<vmem>>, %arg3: memref<2048x512xbf16, #tpu.memory_space<vmem>>, %arg4: memref<1x512xf32, #tpu.memory_space<vmem>>, %arg5: memref<1x512xf32, #tpu.memory_space<vmem>>, %arg6: memref<512x2048xbf16, #tpu.memory_space<vmem>>, %arg7: memref<1x2048xf32, #tpu.memory_space<vmem>>, %arg8: memref<16x2048xf32, #tpu.memory_space<vmem>>, %arg9: memref<16x2048xf32, #tpu.memory_space<vmem>>) attributes {dimension_semantics = [#tpu.dimension_semantics<parallel>, #tpu.dimension_semantics<arbitrary>], iteration_bounds = array<i64: 1, 1>, scalar_prefetch = 0 : i64, scratch_operands = 1 : i64, tpu.core_type = #tpu.core_type<tc>, window_params = [{pipeline_mode = #tpu.pipeline_mode<synchronous>, transform_indices = @transform_0, window_bounds = array<i64: 16, 2048>}, {transform_indices = @transform_1, window_bounds = array<i64: 2048, 512>}, {transform_indices = @transform_2, window_bounds = array<i64: 1, 512>}, {transform_indices = @transform_3, window_bounds = array<i64: 1, 512>}, {transform_indices = @transform_4, window_bounds = array<i64: 512, 2048>}, {transform_indices = @transform_5, window_bounds = array<i64: 1, 2048>}, {transform_indices = @transform_6, window_bounds = array<i64: 16, 2048>}]} {
    %c0_i32 = arith.constant 0 : i32
    %0 = arith.cmpi eq, %arg1, %c0_i32 : i32
    %1 = arith.extui %0 : i1 to i32
    %c0_i32_0 = arith.constant 0 : i32
    %2 = arith.cmpi ne, %1, %c0_i32_0 : i32
    scf.if %2 {
      %c0_23 = arith.constant 0 : index
      %c0_24 = arith.constant 0 : index
      %38 = vector.load %arg7[%c0_23, %c0_24] : memref<1x2048xf32, #tpu.memory_space<vmem>>, vector<1x2048xf32>
      %39 = vector.shape_cast %38 : vector<1x2048xf32> to vector<1x2048xf32>
      %40 = vector.broadcast %39 : vector<1x2048xf32> to vector<16x2048xf32>
      %c0_25 = arith.constant 0 : index
      %c0_26 = arith.constant 0 : index
      %41 = vector.load %arg9[%c0_25, %c0_26] : memref<16x2048xf32, #tpu.memory_space<vmem>>, vector<16x2048xf32>
      tpu.vector_store %arg9[%c0_25, %c0_26], %40 {strides = array<i32>} : memref<16x2048xf32, #tpu.memory_space<vmem>>, vector<16x2048xf32>,
    } else {
    }
    %c0 = arith.constant 0 : index
    %c0_1 = arith.constant 0 : index
    %3 = vector.load %arg2[%c0, %c0_1] : memref<16x2048xbf16, #tpu.memory_space<vmem>>, vector<16x2048xbf16>
    %c0_2 = arith.constant 0 : index
    %c0_3 = arith.constant 0 : index
    %4 = vector.load %arg3[%c0_2, %c0_3] : memref<2048x512xbf16, #tpu.memory_space<vmem>>, vector<2048x512xbf16>
    %cst = arith.constant dense<0.000000e+00> : vector<16x512xf32>
    %5 = tpu.matmul %3, %4, %cst {dimension_numbers = #tpu.dot_dimension_numbers<[1], [0], [0], [1], [0, 0, 1, 1], [], []>} : vector<16x2048xbf16>, vector<2048x512xbf16>, vector<16x512xf32> -> vector<16x512xf32>
    %cst_4 = arith.constant dense<0.000000e+00> : vector<512xf32>
    %6 = vector.multi_reduction <add>, %5, %cst_4 [0] : vector<16x512xf32> to vector<512xf32>
    %7 = vector.shape_cast %6 : vector<512xf32> to vector<1x512xf32>
    %cst_5 = arith.constant 6.250000e-02 : f32
    %8 = vector.broadcast %cst_5 : f32 to vector<1x512xf32>
    %9 = arith.mulf %7, %8 : vector<1x512xf32>
    %10 = vector.broadcast %9 : vector<1x512xf32> to vector<16x512xf32>
    %11 = arith.subf %5, %10 : vector<16x512xf32>
    %12 = arith.mulf %11, %11 : vector<16x512xf32>
    %cst_6 = arith.constant dense<0.000000e+00> : vector<512xf32>
    %13 = vector.multi_reduction <add>, %12, %cst_6 [0] : vector<16x512xf32> to vector<512xf32>
    %14 = vector.shape_cast %13 : vector<512xf32> to vector<1x512xf32>
    %cst_7 = arith.constant 6.250000e-02 : f32
    %15 = vector.broadcast %cst_7 : f32 to vector<1x512xf32>
    %16 = arith.mulf %14, %15 : vector<1x512xf32>
    %c0_8 = arith.constant 0 : index
    %c0_9 = arith.constant 0 : index
    %17 = vector.load %arg4[%c0_8, %c0_9] : memref<1x512xf32, #tpu.memory_space<vmem>>, vector<1x512xf32>
    %cst_10 = arith.constant 9.99999974E-6 : f32
    %18 = vector.broadcast %cst_10 : f32 to vector<1x512xf32>
    %19 = arith.addf %16, %18 : vector<1x512xf32>
    %20 = math.rsqrt %19 : vector<1x512xf32>
    %21 = arith.mulf %17, %20 : vector<1x512xf32>
    %22 = vector.broadcast %21 : vector<1x512xf32> to vector<16x512xf32>
    %23 = arith.mulf %11, %22 : vector<16x512xf32>
    %c0_11 = arith.constant 0 : index
    %c0_12 = arith.constant 0 : index
    %24 = vector.load %arg5[%c0_11, %c0_12] : memref<1x512xf32, #tpu.memory_space<vmem>>, vector<1x512xf32>
    %25 = vector.broadcast %24 : vector<1x512xf32> to vector<16x512xf32>
    %26 = arith.addf %23, %25 : vector<16x512xf32>
    %cst_13 = arith.constant 0.000000e+00 : f32
    %27 = vector.broadcast %cst_13 : f32 to vector<16x512xf32>
    %28 = arith.maximumf %26, %27 : vector<16x512xf32>
    %c0_14 = arith.constant 0 : index
    %c0_15 = arith.constant 0 : index
    %29 = vector.load %arg9[%c0_14, %c0_15] : memref<16x2048xf32, #tpu.memory_space<vmem>>, vector<16x2048xf32>
    %30 = arith.truncf %28 : vector<16x512xf32> to vector<16x512xbf16>
    %c0_16 = arith.constant 0 : index
    %c0_17 = arith.constant 0 : index
    %31 = vector.load %arg6[%c0_16, %c0_17] : memref<512x2048xbf16, #tpu.memory_space<vmem>>, vector<512x2048xbf16>
    %cst_18 = arith.constant dense<0.000000e+00> : vector<16x2048xf32>
    %32 = tpu.matmul %30, %31, %cst_18 {dimension_numbers = #tpu.dot_dimension_numbers<[1], [0], [0], [1], [0, 0, 1, 1], [], []>} : vector<16x512xbf16>, vector<512x2048xbf16>, vector<16x2048xf32> -> vector<16x2048xf32>
    %33 = arith.addf %29, %32 : vector<16x2048xf32>
    %c0_19 = arith.constant 0 : index
    %c0_20 = arith.constant 0 : index
    %34 = vector.load %arg9[%c0_19, %c0_20] : memref<16x2048xf32, #tpu.memory_space<vmem>>, vector<16x2048xf32>
    tpu.vector_store %arg9[%c0_19, %c0_20], %33 {strides = array<i32>} : memref<16x2048xf32, #tpu.memory_space<vmem>>, vector<16x2048xf32>,
    %c0_i32_21 = arith.constant 0 : i32
    %35 = arith.cmpi eq, %arg1, %c0_i32_21 : i32
    %36 = arith.extui %35 : i1 to i32
    %c0_i32_22 = arith.constant 0 : i32
    %37 = arith.cmpi ne, %36, %c0_i32_22 : i32
    scf.if %37 {
      %c0_23 = arith.constant 0 : index
      %c0_24 = arith.constant 0 : index
      %38 = vector.load %arg9[%c0_23, %c0_24] : memref<16x2048xf32, #tpu.memory_space<vmem>>, vector<16x2048xf32>
      %c0_25 = arith.constant 0 : index
      %c0_26 = arith.constant 0 : index
      %39 = vector.load %arg8[%c0_25, %c0_26] : memref<16x2048xf32, #tpu.memory_space<vmem>>, vector<16x2048xf32>
      tpu.vector_store %arg8[%c0_25, %c0_26], %38 {strides = array<i32>} : memref<16x2048xf32, #tpu.memory_space<vmem>>, vector<16x2048xf32>,
    } else {
    }
    return
  }
  func.func @transform_0(%arg0: i32, %arg1: i32) -> (i32, i32) {
    %c0_i32 = arith.constant 0 : i32
    %c0_i32_0 = arith.constant 0 : i32
    %c0_i32_1 = arith.constant 0 : i32
    return %c0_i32, %c0_i32_0 : i32, i32
  }
  func.func @transform_1(%arg0: i32, %arg1: i32) -> (i32, i32) {
    %c0_i32 = arith.constant 0 : i32
    %c0_i32_0 = arith.constant 0 : i32
    return %c0_i32, %arg1 : i32, i32
  }
  func.func @transform_2(%arg0: i32, %arg1: i32) -> (i32, i32) {
    %c0_i32 = arith.constant 0 : i32
    %c0_i32_0 = arith.constant 0 : i32
    return %c0_i32, %arg1 : i32, i32
  }
  func.func @transform_3(%arg0: i32, %arg1: i32) -> (i32, i32) {
    %c0_i32 = arith.constant 0 : i32
    %c0_i32_0 = arith.constant 0 : i32
    return %c0_i32, %arg1 : i32, i32
  }
  func.func @transform_4(%arg0: i32, %arg1: i32) -> (i32, i32) {
    %c0_i32 = arith.constant 0 : i32
    return %arg1, %arg0 : i32, i32
  }
  func.func @transform_5(%arg0: i32, %arg1: i32) -> (i32, i32) {
    %c0_i32 = arith.constant 0 : i32
    %c0_i32_0 = arith.constant 0 : i32
    return %c0_i32, %arg0 : i32, i32
  }
  func.func @transform_6(%arg0: i32, %arg1: i32) -> (i32, i32) {
    %c0_i32 = arith.constant 0 : i32
    %c0_i32_0 = arith.constant 0 : i32
    return %c0_i32, %arg0 : i32, i32
  }
}

</mosaic_0001>

<bundles_post_ra>
// kernel: tpu_custom_call.1
= control target key start
LH: loop header
LB: loop body
LE: loop exit
PB: predicated region body
PF: predicated region fallthrough
CT: control target
= control target key end

     0   :  { %11 = vsyncpa [#allocation4], 0  ;;  %s10649_s0 = inlined_call_operand.hbm [shape: bf16[16,2048], index: 0, kind: input, shape index: {}]   ;;  %s10650_s1 = inlined_call_operand.hbm [shape: bf16[2048,512], index: 1, kind: input, shape index: {}]   ;;  %s10651_s2 = inlined_call_operand.hbm [shape: f32[1,512], index: 2, kind: input, shape index: {}]   ;;  %s10652_s3 = inlined_call_operand.hbm [shape: f32[1,512], index: 3, kind: input, shape index: {}]   ;;  %s10653_s4 = inlined_call_operand.hbm [shape: bf16[512,2048], index: 4, kind: input, shape index: {}]   ;;  %s10654_s5 = inlined_call_operand.hbm [shape: f32[1,2048], index: 5, kind: input, shape index: {}]   ;;  %s10655_s6 = inlined_call_operand.hbm [shape: f32[16,2048], index: 6, kind: output, shape index: {}]  }
   0x1   :  { %12 = vsyncpa [#allocation7], 0 }
   0x2   :  { %13 = vsyncpa [#allocation10], 0 }
   0x3   :  { %14 = vsyncpa [#allocation13], 0 }
   0x4   :  { %15 = vsyncpa [#allocation5], 0  ;;  %s10291_s21 = smov [#allocation6]   ;;  %s10127_s25 = scalar_lea.hbm %s10650_s1, 65536 }
   0x5   :  { %s33_s22 = sshll.u32 %s10291_s21, 4  ;;  %p10128_p0 = scmp.ne.s32.totalorder %s10650_s1, %s10127_s25  ;;  %s34_s22 = int_to_ptr.vmem [resolvable:$true] %s33_s22 }
   0x6   :  { %p10131_p1 = scmp.lt.u32.totalorder %s10127_s25, %s10650_s1 }
   0x8   :  { %p10133_p2 = pnand %p10131_p1, %p10128_p0 }
   0xa   :  { %10136 = shalt.err (!%p10133_p2)
}
   0xb   :  { %s10137_s30 = scalar_lea.vmem %s34_s22, 65536  ;;  %p10142_p4 = scmp.lt.s32.totalorder %s34_s22, %s34_s22 }
   0xc   :  { %p10138_p3 = scmp.ne.s32.totalorder %s34_s22, %s10137_s30  ;;  %p10143_p5 = scmp.lt.s32.totalorder %s10137_s30, %s10137_s30 }
   0xe   :  { %p10144_p6 = por %p10143_p5, %p10142_p4 }
  0x10   :  { %p10145_p7 = pnand %p10144_p6, %p10138_p3 }
  0x12   :  { %10148 = shalt.err (!%p10145_p7)
}
  0x13   :  { %s10292_s7 = smov 256   ;;  %s10293_s8 = smov 16  }
  0x14   :  { %39 = dma.hbm_to_vmem [thread:$0]  %s10650_s1, 65536, %s34_s22, [#allocation7], %s10292_s7, %s10292_s7, %s10293_s8  }
  0x15   :  { %s10294_s11 = smov [#allocation9]   ;;  %s10295_s13 = smov [#allocation3]  }
  0x16   :  { %s56_s12 = sshll.u32 %s10294_s11, 4  ;;  %s21_s14 = sshll.u32 %s10295_s13, 4  ;;  %s57_s12 = int_to_ptr.vmem [resolvable:$true] %s56_s12  ;;  %s22_s14 = int_to_ptr.vmem [resolvable:$true] %s21_s14 }
  0x17   :  { %s10149_s17 = scalar_lea.hbm %s10652_s3, 64 }
  0x18   :  { %p10150_p8 = scmp.ne.s32.totalorder %s10652_s3, %s10149_s17  ;;  %p10153_p9 = scmp.lt.u32.totalorder %s10149_s17, %s10652_s3 }
  0x1a   :  { %p10155_p10 = pnand %p10153_p9, %p10150_p8 }
  0x1c   :  { %10158 = shalt.err (!%p10155_p10)
}
  0x1d   :  { %s10159_s1 = scalar_lea.vmem %s57_s12, 64  ;;  %p10164_p12 = scmp.lt.s32.totalorder %s57_s12, %s57_s12 }
  0x1e   :  { %p10160_p11 = scmp.ne.s32.totalorder %s57_s12, %s10159_s1  ;;  %p10165_p13 = scmp.lt.s32.totalorder %s10159_s1, %s10159_s1 }
  0x20   :  { %p10166_p0 = por %p10165_p13, %p10164_p12 }
  0x22   :  { %p10167_p1 = pnand %p10166_p0, %p10160_p11 }
  0x24   :  { %10170 = shalt.err (!%p10167_p1)
}
  0x25   :  { %59 = dma.hbm_to_vmem [thread:$0]  %s10652_s3, 64, %s57_s12, [#allocation10]  }
  0x26   :  { %s10171_s26 = scalar_lea.hbm %s10649_s0, 2048 }
  0x27   :  { %p10172_p2 = scmp.ne.s32.totalorder %s10649_s0, %s10171_s26  ;;  %p10175_p3 = scmp.lt.u32.totalorder %s10171_s26, %s10649_s0 }
  0x29   :  { %p10177_p4 = pnand %p10175_p3, %p10172_p2 }
  0x2b   :  { %10180 = shalt.err (!%p10177_p4)
}
  0x2c   :  { %s10181_s7 = scalar_lea.vmem %s22_s14, 2048  ;;  %p10186_p6 = scmp.lt.s32.totalorder %s22_s14, %s22_s14 }
  0x2d   :  { %p10182_p5 = scmp.ne.s32.totalorder %s22_s14, %s10181_s7  ;;  %p10187_p7 = scmp.lt.s32.totalorder %s10181_s7, %s10181_s7 }
  0x2f   :  { %p10188_p8 = por %p10187_p7, %p10186_p6 }
  0x31   :  { %p10189_p9 = pnand %p10188_p8, %p10182_p5 }
  0x33   :  { %10192 = shalt.err (!%p10189_p9)
}
  0x34   :  { %s10296_s3 = smov 1024   ;;  %s10297_s8 = smov 64  }
  0x35   :  { %27 = dma.hbm_to_vmem [thread:$0]  %s10649_s0, 2048, %s22_s14, [#allocation4], %s10296_s3, %s10296_s3, %s10297_s8  }
  0x36   :  { %s10298_s11 = smov [#allocation8]   ;;  %s10299_s13 = smov [#allocation11]  }
  0x37   :  { %s46_s12 = sshll.u32 %s10298_s11, 4  ;;  %s65_s15 = sshll.u32 %s10299_s13, 4  ;;  %s47_s12 = int_to_ptr.vmem [resolvable:$true] %s46_s12  ;;  %s66_s15 = int_to_ptr.vmem [resolvable:$true] %s65_s15 }
  0x38   :  { %s10193_s18 = scalar_lea.hbm %s10651_s2, 64 }
  0x39   :  { %p10194_p10 = scmp.ne.s32.totalorder %s10651_s2, %s10193_s18  ;;  %p10197_p11 = scmp.lt.u32.totalorder %s10193_s18, %s10651_s2 }
  0x3b   :  { %p10199_p12 = pnand %p10197_p11, %p10194_p10 }
  0x3d   :  { %10202 = shalt.err (!%p10199_p12)
}
  0x3e   :  { %s10203_s0 = scalar_lea.vmem %s47_s12, 64  ;;  %p10208_p0 = scmp.lt.s32.totalorder %s47_s12, %s47_s12 }
  0x3f   :  { %p10204_p13 = scmp.ne.s32.totalorder %s47_s12, %s10203_s0  ;;  %p10209_p1 = scmp.lt.s32.totalorder %s10203_s0, %s10203_s0 }
  0x41   :  { %p10210_p2 = por %p10209_p1, %p10208_p0 }
  0x43   :  { %p10211_p3 = pnand %p10210_p2, %p10204_p13 }
  0x45   :  { %10214 = shalt.err (!%p10211_p3)
}
  0x46   :  { %49 = dma.hbm_to_vmem [thread:$0]  %s10651_s2, 64, %s47_s12, [#allocation7]  }
  0x47   :  { %s10215_s25 = scalar_lea.hbm %s10653_s4, 65536 }
  0x48   :  { %p10216_p4 = scmp.ne.s32.totalorder %s10653_s4, %s10215_s25  ;;  %p10219_p5 = scmp.lt.u32.totalorder %s10215_s25, %s10653_s4 }
  0x4a   :  { %p10221_p6 = pnand %p10219_p5, %p10216_p4 }
  0x4c   :  { %10224 = shalt.err (!%p10221_p6)
}
  0x4d   :  { %s10225_s30 = scalar_lea.vmem %s66_s15, 65536  ;;  %p10230_p8 = scmp.lt.s32.totalorder %s66_s15, %s66_s15 }
  0x4e   :  { %p10226_p7 = scmp.ne.s32.totalorder %s66_s15, %s10225_s30  ;;  %p10231_p9 = scmp.lt.s32.totalorder %s10225_s30, %s10225_s30 }
  0x50   :  { %p10232_p10 = por %p10231_p9, %p10230_p8 }
  0x52   :  { %p10233_p11 = pnand %p10232_p10, %p10226_p7 }
  0x54   :  { %10236 = shalt.err (!%p10233_p11)
}
  0x55   :  { %71 = dma.hbm_to_vmem [thread:$0]  %s10653_s4, 65536, %s66_s15, [#allocation10], %s10296_s3, %s10296_s3, %s10297_s8  }
  0x56   :  { %s10300_s9 = smov [#allocation12]   ;;  %s10237_s13 = scalar_lea.hbm %s10654_s5, 256 }
  0x57   :  { %s78_s10 = sshll.u32 %s10300_s9, 4  ;;  %p10238_p12 = scmp.ne.s32.totalorder %s10654_s5, %s10237_s13  ;;  %s79_s10 = int_to_ptr.vmem [resolvable:$true] %s78_s10 }
  0x58   :  { %p10241_p13 = scmp.lt.u32.totalorder %s10237_s13, %s10654_s5 }
  0x5a   :  { %p10243_p0 = pnand %p10241_p13, %p10238_p12 }
  0x5c   :  { %10246 = shalt.err (!%p10243_p0)
}
  0x5d   :  { %s10247_s20 = scalar_lea.vmem %s79_s10, 256  ;;  %p10252_p2 = scmp.lt.s32.totalorder %s79_s10, %s79_s10 }
  0x5e   :  { %p10248_p1 = scmp.ne.s32.totalorder %s79_s10, %s10247_s20  ;;  %p10253_p3 = scmp.lt.s32.totalorder %s10247_s20, %s10247_s20 }
  0x60   :  { %p10254_p4 = por %p10253_p3, %p10252_p2 }
  0x62   :  { %p10255_p5 = pnand %p10254_p4, %p10248_p1 }
  0x64   :  { %10258 = shalt.err (!%p10255_p5)
}
  0x65   :  { %81 = dma.hbm_to_vmem [thread:$0]  %s10654_s5, 256, %s79_s10, [#allocation13]  }
  0x66   :  { %10281 = dma.done.wait [#allocation4], 2048  }
  0x67   :  { %10282 = vsyncadd [#allocation4], 4294965248 }
  0x68   :  { %10283 = dma.done.wait [#allocation7], 65600  }
  0x69   :  { %10284 = vsyncadd [#allocation7], 4294901696 }
  0x6a   :  { %10285 = dma.done.wait [#allocation10], 65600  }
  0x6b   :  { %10286 = vsyncadd [#allocation10], 4294901696 }
  0x6c   :  { %10287 = dma.done.wait [#allocation13], 256  }
  0x6d   :  { %10288 = vsyncadd [#allocation13], 4294967040  ;;  %v9351_v0 = vld [vmem:[#allocation6 + $0x4] ss:$16 sps:$4 sm:$0xff]   ;;  %v9353_v1 = vld [vmem:[#allocation6 + $0xc] ss:$16 sps:$4 sm:$0xff]  }
  0x6e   :  { %3388 = vmatprep.subr.bf16.mxu0 %v9351_v0  ;;  %v9355_v2 = vld [vmem:[#allocation6] ss:$16 sps:$4 sm:$0xff]   ;;  %v9356_v3 = vld [vmem:[#allocation6 + $0x8] ss:$16 sps:$4 sm:$0xff]   ;;  %3732 = vmatprep.subr.bf16.mxu1 %v9353_v1  ;;  %v9357_v4 = vld [vmem:[#allocation6 + $0x24] ss:$16 sps:$4 sm:$0xff]  }
  0x6f   :  { %3389 = vmatpush1.bf16.msra.mxu0 %v9355_v2  ;;  %3733 = vmatpush1.bf16.msra.mxu1 %v9356_v3  ;;  %v9359_v5 = vld [vmem:[#allocation6 + $0x2c] ss:$16 sps:$4 sm:$0xff]   ;;  %v9361_v6 = vld [vmem:[#allocation6 + $0x20] ss:$16 sps:$4 sm:$0xff]   ;;  %v9362_v7 = vld [vmem:[#allocation6 + $0x28] ss:$16 sps:$4 sm:$0xff]  }
  0x70   :  { %3390 = vmatprep.subr.bf16.mxu0 %v9357_v4  ;;  %3734 = vmatprep.subr.bf16.mxu1 %v9359_v5  ;;  %v9363_v8 = vld [vmem:[#allocation6 + $0x44] ss:$16 sps:$4 sm:$0xff]   ;;  %v9365_v9 = vld [vmem:[#allocation6 + $0x4c] ss:$16 sps:$4 sm:$0xff]   ;;  %v9367_v10 = vld [vmem:[#allocation6 + $0x40] ss:$16 sps:$4 sm:$0xff]  }
  0x71   :  { %v9368_v11 = vld [vmem:[#allocation6 + $0x48] ss:$16 sps:$4 sm:$0xff]   ;;  %v9369_v12 = vld [vmem:[#allocation6 + $0x64] ss:$16 sps:$4 sm:$0xff]   ;;  %v9371_v13 = vld [vmem:[#allocation6 + $0x6c] ss:$16 sps:$4 sm:$0xff]  }
  0x72   :  { %v9373_v14 = vld [vmem:[#allocation6 + $0x60] ss:$16 sps:$4 sm:$0xff]   ;;  %v9374_v15 = vld [vmem:[#allocation6 + $0x68] ss:$16 sps:$4 sm:$0xff]   ;;  %v9375_v16 = vld [vmem:[#allocation6 + $0x84] ss:$16 sps:$4 sm:$0xff]  }
  0x73   :  { %3391 = vmatpush1.bf16.msra.mxu0 %v9361_v6  ;;  %3735 = vmatpush1.bf16.msra.mxu1 %v9362_v7  ;;  %v9377_v17 = vld [vmem:[#allocation6 + $0x8c] ss:$16 sps:$4 sm:$0xff]   ;;  %v9379_v18 = vld [vmem:[#allocation6 + $0x80] ss:$16 sps:$4 sm:$0xff]   ;;  %v9380_v19 = vld [vmem:[#allocation6 + $0x88] ss:$16 sps:$4 sm:$0xff]  }
  0x74   :  { %3392 = vmatprep.subr.bf16.mxu0 %v9363_v8  ;;  %3736 = vmatprep.subr.bf16.mxu1 %v9365_v9  ;;  %v9381_v20 = vld [vmem:[#allocation6 + $0xa4] ss:$16 sps:$4 sm:$0xff]   ;;  %v9383_v21 = vld [vmem:[#allocation6 + $0xac] ss:$16 sps:$4 sm:$0xff]   ;;  %v9385_v22 = vld [vmem:[#allocation6 + $0xa0] ss:$16 sps:$4 sm:$0xff]  }
  0x75   :  { %v9386_v23 = vld [vmem:[#allocation6 + $0xa8] ss:$16 sps:$4 sm:$0xff]   ;;  %v9387_v24 = vld [vmem:[#allocation6 + $0xc4] ss:$16 sps:$4 sm:$0xff]   ;;  %v9389_v25 = vld [vmem:[#allocation6 + $0xcc] ss:$16 sps:$4 sm:$0xff]  }
  0x76   :  { %v9391_v26 = vld [vmem:[#allocation6 + $0xc0] ss:$16 sps:$4 sm:$0xff]   ;;  %v9392_v27 = vld [vmem:[#allocation6 + $0xc8] ss:$16 sps:$4 sm:$0xff]   ;;  %v9393_v28 = vld [vmem:[#allocation6 + $0xe4] ss:$16 sps:$4 sm:$0xff]  }
  0x77   :  { %3393 = vmatpush1.bf16.msra.mxu0 %v9367_v10  ;;  %3737 = vmatpush1.bf16.msra.mxu1 %v9368_v11  ;;  %v9395_v29 = vld [vmem:[#allocation6 + $0xec] ss:$16 sps:$4 sm:$0xff]   ;;  %v9397_v30 = vld [vmem:[#allocation6 + $0xe0] ss:$16 sps:$4 sm:$0xff]   ;;  %v9398_v31 = vld [vmem:[#allocation6 + $0xe8] ss:$16 sps:$4 sm:$0xff]  }
  0x78   :  { %3394 = vmatprep.subr.bf16.mxu0 %v9369_v12  ;;  %3738 = vmatprep.subr.bf16.mxu1 %v9371_v13  ;;  %v9399_v32 = vld [vmem:[#allocation6 + $0x104] ss:$16 sps:$4 sm:$0xff]   ;;  %v9401_v33 = vld [vmem:[#allocation6 + $0x10c] ss:$16 sps:$4 sm:$0xff]   ;;  %v9403_v34 = vld [vmem:[#allocation6 + $0x100] ss:$16 sps:$4 sm:$0xff]  }
  0x79   :  { %v9404_v35 = vld [vmem:[#allocation6 + $0x108] ss:$16 sps:$4 sm:$0xff]   ;;  %v9405_v36 = vld [vmem:[#allocation6 + $0x124] ss:$16 sps:$4 sm:$0xff]   ;;  %v9407_v37 = vld [vmem:[#allocation6 + $0x12c] ss:$16 sps:$4 sm:$0xff]  }
  0x7a   :  { %v9409_v38 = vld [vmem:[#allocation6 + $0x120] ss:$16 sps:$4 sm:$0xff]   ;;  %v9410_v39 = vld [vmem:[#allocation6 + $0x128] ss:$16 sps:$4 sm:$0xff]   ;;  %v9411_v40 = vld [vmem:[#allocation6 + $0x144] ss:$16 sps:$4 sm:$0xff]  }
  0x7b   :  { %3395 = vmatpush1.bf16.msra.mxu0 %v9373_v14  ;;  %3739 = vmatpush1.bf16.msra.mxu1 %v9374_v15  ;;  %v9413_v41 = vld [vmem:[#allocation6 + $0x14c] ss:$16 sps:$4 sm:$0xff]   ;;  %v9415_v42 = vld [vmem:[#allocation6 + $0x140] ss:$16 sps:$4 sm:$0xff]   ;;  %v9416_v43 = vld [vmem:[#allocation6 + $0x148] ss:$16 sps:$4 sm:$0xff]  }
  0x7c   :  { %3396 = vmatprep.subr.bf16.mxu0 %v9375_v16  ;;  %3740 = vmatprep.subr.bf16.mxu1 %v9377_v17  ;;  %v9417_v44 = vld [vmem:[#allocation6 + $0x164] ss:$16 sps:$4 sm:$0xff]   ;;  %v9419_v45 = vld [vmem:[#allocation6 + $0x16c] ss:$16 sps:$4 sm:$0xff]   ;;  %v9421_v48 = vld [vmem:[#allocation6 + $0x160] ss:$16 sps:$4 sm:$0xff]  }
  0x7d   :  { %v220_v46 = vld [vmem:[#allocation3] sm:$0xff]  ;;  %v9422_v49 = vld [vmem:[#allocation6 + $0x168] ss:$16 sps:$4 sm:$0xff]   ;;  %v9425_v52 = vld [vmem:[#allocation6 + $0x18c] ss:$16 sps:$4 sm:$0xff]   ;;  %s10302_s5 = smov [#allocation14]  }
  0x7e   :  { %v228_v47 = vld [vmem:[#allocation3 + $0x40] sm:$0xff]  ;;  %v9428_v54 = vld [vmem:[#allocation6 + $0x188] ss:$16 sps:$4 sm:$0xff]   ;;  %v9431_v56 = vld [vmem:[#allocation6 + $0x1ac] ss:$16 sps:$4 sm:$0xff]   ;;  %s8194_s8 = sshll.u32 %s10302_s5, 4  ;;  %s8195_s8 = int_to_ptr.vmem [resolvable:$true] %s8194_s8 }
  0x7f   :  { %3397 = vmatpush1.bf16.msra.mxu0 %v9379_v18  ;;  %3741 = vmatpush1.bf16.msra.mxu1 %v9380_v19  ;;  %v8210_v50 = vcombine.high %v220_v46, %v228_v47  ;;  %v9423_v51 = vld [vmem:[#allocation6 + $0x184] ss:$16 sps:$4 sm:$0xff]   ;;  %v9427_v53 = vld [vmem:[#allocation6 + $0x180] ss:$16 sps:$4 sm:$0xff]   ;;  %v9434_v58 = vld [vmem:[#allocation6 + $0x1a8] ss:$16 sps:$4 sm:$0xff]   ;;  %v8209_v5 = vcombine.low %v220_v46, %v228_v47  ;;  %p10264_p7 = scmp.lt.s32.totalorder %s8195_s8, %s8195_s8 }
  0x80   :  { %3398 = vmatprep.subr.bf16.mxu0 %v9381_v20  ;;  %3742 = vmatprep.subr.bf16.mxu1 %v9383_v21  ;;  %v9429_v55 = vld [vmem:[#allocation6 + $0x1a4] ss:$16 sps:$4 sm:$0xff]   ;;  %v9433_v57 = vld [vmem:[#allocation6 + $0x1a0] ss:$16 sps:$4 sm:$0xff]   ;;  %v9437_v60 = vld [vmem:[#allocation6 + $0x1cc] ss:$16 sps:$4 sm:$0xff]  }
  0x81   :  { %3420 = vmatprep.mubr.bf16.mxu0 %v8210_v50  ;;  %3764 = vmatprep.mubr.bf16.mxu1 %v8210_v50  ;;  %v9435_v59 = vld [vmem:[#allocation6 + $0x1c4] ss:$16 sps:$4 sm:$0xff]   ;;  %v9439_v61 = vld [vmem:[#allocation6 + $0x1c0] ss:$16 sps:$4 sm:$0xff]   ;;  %v9440_v62 = vld [vmem:[#allocation6 + $0x1c8] ss:$16 sps:$4 sm:$0xff]  }
  0x82   :  { %v9441_v63 = vld [vmem:[#allocation6 + $0x1e4] ss:$16 sps:$4 sm:$0xff]   ;;  %v9443_v0 = vld [vmem:[#allocation6 + $0x1ec] ss:$16 sps:$4 sm:$0xff]   ;;  %v9445_v1 = vld [vmem:[#allocation6 + $0x1e0] ss:$16 sps:$4 sm:$0xff]  }
  0x83   :  { %3399 = vmatpush1.bf16.msra.mxu0 %v9385_v22  ;;  %3743 = vmatpush1.bf16.msra.mxu1 %v9386_v23  ;;  %v9446_v2 = vld [vmem:[#allocation6 + $0x1e8] ss:$16 sps:$4 sm:$0xff]   ;;  %v9449_v3 = vld [vmem:[#allocation6 + $0x204] ss:$16 sps:$4 sm:$0xff]   ;;  %v9452_v4 = vld [vmem:[#allocation6 + $0x20c] ss:$16 sps:$4 sm:$0xff]  }
  0x84   :  { %3400 = vmatprep.subr.bf16.mxu0 %v9387_v24  ;;  %3744 = vmatprep.subr.bf16.mxu1 %v9389_v25  ;;  %v9447_v6 = vld [vmem:[#allocation6 + $0x200] ss:$16 sps:$4 sm:$0xff]   ;;  %v9450_v7 = vld [vmem:[#allocation6 + $0x208] ss:$16 sps:$4 sm:$0xff]   ;;  %v9455_v8 = vld [vmem:[#allocation6 + $0x224] ss:$16 sps:$4 sm:$0xff]  }
  0x85   :  { %v9458_v9 = vld [vmem:[#allocation6 + $0x22c] ss:$16 sps:$4 sm:$0xff]   ;;  %v9453_v10 = vld [vmem:[#allocation6 + $0x220] ss:$16 sps:$4 sm:$0xff]   ;;  %v9456_v11 = vld [vmem:[#allocation6 + $0x228] ss:$16 sps:$4 sm:$0xff]  }
  0x86   :  { %v9461_v12 = vld [vmem:[#allocation6 + $0x244] ss:$16 sps:$4 sm:$0xff]   ;;  %v9464_v13 = vld [vmem:[#allocation6 + $0x24c] ss:$16 sps:$4 sm:$0xff]   ;;  %v9459_v14 = vld [vmem:[#allocation6 + $0x240] ss:$16 sps:$4 sm:$0xff]  }
  0x87   :  { %3401 = vmatpush1.bf16.msra.mxu0 %v9391_v26  ;;  %3745 = vmatpush1.bf16.msra.mxu1 %v9392_v27  ;;  %v9462_v15 = vld [vmem:[#allocation6 + $0x248] ss:$16 sps:$4 sm:$0xff]   ;;  %v9467_v16 = vld [vmem:[#allocation6 + $0x264] ss:$16 sps:$4 sm:$0xff]   ;;  %v9470_v17 = vld [vmem:[#allocation6 + $0x26c] ss:$16 sps:$4 sm:$0xff]  }
  0x88   :  { %3402 = vmatprep.subr.bf16.mxu0 %v9393_v28  ;;  %3746 = vmatprep.subr.bf16.mxu1 %v9395_v29  ;;  %v9465_v18 = vld [vmem:[#allocation6 + $0x260] ss:$16 sps:$4 sm:$0xff]   ;;  %v9468_v19 = vld [vmem:[#allocation6 + $0x268] ss:$16 sps:$4 sm:$0xff]   ;;  %v9473_v20 = vld [vmem:[#allocation6 + $0x284] ss:$16 sps:$4 sm:$0xff]  }
  0x89   :  { %v9476_v21 = vld [vmem:[#allocation6 + $0x28c] ss:$16 sps:$4 sm:$0xff]   ;;  %v9471_v22 = vld [vmem:[#allocation6 + $0x280] ss:$16 sps:$4 sm:$0xff]   ;;  %v9474_v23 = vld [vmem:[#allocation6 + $0x288] ss:$16 sps:$4 sm:$0xff]  }
  0x8a   :  { %v9479_v24 = vld [vmem:[#allocation6 + $0x2a4] ss:$16 sps:$4 sm:$0xff]   ;;  %v9482_v25 = vld [vmem:[#allocation6 + $0x2ac] ss:$16 sps:$4 sm:$0xff]   ;;  %v9477_v26 = vld [vmem:[#allocation6 + $0x2a0] ss:$16 sps:$4 sm:$0xff]  }
  0x8b   :  { %3403 = vmatpush1.bf16.msra.mxu0 %v9397_v30  ;;  %3747 = vmatpush1.bf16.msra.mxu1 %v9398_v31  ;;  %v9480_v27 = vld [vmem:[#allocation6 + $0x2a8] ss:$16 sps:$4 sm:$0xff]   ;;  %v9485_v28 = vld [vmem:[#allocation6 + $0x2c4] ss:$16 sps:$4 sm:$0xff]   ;;  %v9488_v29 = vld [vmem:[#allocation6 + $0x2cc] ss:$16 sps:$4 sm:$0xff]  }
  0x8c   :  { %3404 = vmatprep.subr.bf16.mxu0 %v9399_v32  ;;  %3748 = vmatprep.subr.bf16.mxu1 %v9401_v33  ;;  %v10418_v30 = vld [vmem:[#allocation3 + $0x8] sm:$0xff]  ;;  %v9483_v32 = vld [vmem:[#allocation6 + $0x2c0] ss:$16 sps:$4 sm:$0xff]   ;;  %v9509_v47 = vld [vmem:[#allocation6 + $0x344] ss:$16 sps:$4 sm:$0xff]   ;;  %s10259_s15 = scalar_lea.vmem %s8195_s8, 4096 }
  0x8d   :  { %v10420_v31 = vld [vmem:[#allocation3 + $0x48] sm:$0xff]  ;;  %p10260_p6 = scmp.ne.s32.totalorder %s8195_s8, %s10259_s15  ;;  %p10265_p8 = scmp.lt.s32.totalorder %s10259_s15, %s10259_s15 }
  0x8e   :  { %v9486_v33 = vld [vmem:[#allocation6 + $0x2c8] ss:$16 sps:$4 sm:$0xff]  }
  0x8f   :  { %3405 = vmatpush1.bf16.msra.mxu0 %v9403_v34  ;;  %3749 = vmatpush1.bf16.msra.mxu1 %v9404_v35  ;;  %v8212_v34 = vcombine.high %v10418_v30, %v10420_v31  ;;  %v9491_v35 = vld [vmem:[#allocation6 + $0x2e4] ss:$16 sps:$4 sm:$0xff]   ;;  %v9504_v46 = vld [vmem:[#allocation6 + $0x328] ss:$16 sps:$4 sm:$0xff]   ;;  %p10266_p9 = por %p10265_p8, %p10264_p7 }
  0x90   :  { %3406 = vmatprep.subr.bf16.mxu0 %v9405_v36  ;;  %3750 = vmatprep.subr.bf16.mxu1 %v9407_v37  ;;  %v9494_v36 = vld [vmem:[#allocation6 + $0x2ec] ss:$16 sps:$4 sm:$0xff]   ;;  %v9489_v37 = vld [vmem:[#allocation6 + $0x2e0] ss:$16 sps:$4 sm:$0xff]   ;;  %v9510_v50 = vld [vmem:[#allocation6 + $0x348] ss:$16 sps:$4 sm:$0xff]  }
  0x91   :  { %p10267_p10 = pnand %p10266_p9, %p10260_p6 }
  0x93   :  { %3407 = vmatpush1.bf16.msra.mxu0 %v9409_v38  ;;  %3751 = vmatpush1.bf16.msra.mxu1 %v9410_v39  ;;  %v9492_v38 = vld [vmem:[#allocation6 + $0x2e8] ss:$16 sps:$4 sm:$0xff]   ;;  %v9497_v39 = vld [vmem:[#allocation6 + $0x304] ss:$16 sps:$4 sm:$0xff]  }
  0x94   :  { %3408 = vmatprep.subr.bf16.mxu0 %v9411_v40  ;;  %3752 = vmatprep.subr.bf16.mxu1 %v9413_v41  ;;  %v9500_v40 = vld [vmem:[#allocation6 + $0x30c] ss:$16 sps:$4 sm:$0xff]   ;;  %v9495_v41 = vld [vmem:[#allocation6 + $0x300] ss:$16 sps:$4 sm:$0xff]  }
  0x97   :  { %3409 = vmatpush1.bf16.msra.mxu0 %v9415_v42  ;;  %3753 = vmatpush1.bf16.msra.mxu1 %v9416_v43  ;;  %v9498_v42 = vld [vmem:[#allocation6 + $0x308] ss:$16 sps:$4 sm:$0xff]   ;;  %v9503_v43 = vld [vmem:[#allocation6 + $0x324] ss:$16 sps:$4 sm:$0xff]  }
  0x98   :  { %3410 = vmatprep.subr.bf16.mxu0 %v9417_v44  ;;  %3754 = vmatprep.subr.bf16.mxu1 %v9419_v45  ;;  %v9506_v44 = vld [vmem:[#allocation6 + $0x32c] ss:$16 sps:$4 sm:$0xff]   ;;  %v9501_v45 = vld [vmem:[#allocation6 + $0x320] ss:$16 sps:$4 sm:$0xff]  }
  0x9b   :  { %3411 = vmatpush1.bf16.msra.mxu0 %v9421_v48  ;;  %3755 = vmatpush1.bf16.msra.mxu1 %v9422_v49  ;;  %v9512_v48 = vld [vmem:[#allocation6 + $0x34c] ss:$16 sps:$4 sm:$0xff]   ;;  %v9507_v49 = vld [vmem:[#allocation6 + $0x340] ss:$16 sps:$4 sm:$0xff]  }
  0x9c   :  { %3412 = vmatprep.subr.bf16.mxu0 %v9423_v51  ;;  %3756 = vmatprep.subr.bf16.mxu1 %v9425_v52  ;;  %v9515_v51 = vld [vmem:[#allocation6 + $0x364] ss:$16 sps:$4 sm:$0xff]   ;;  %v9518_v52 = vld [vmem:[#allocation6 + $0x36c] ss:$16 sps:$4 sm:$0xff]  }
  0x9f   :  { %3413 = vmatpush1.bf16.msra.mxu0 %v9427_v53  ;;  %3757 = vmatpush1.bf16.msra.mxu1 %v9428_v54  ;;  %v9513_v53 = vld [vmem:[#allocation6 + $0x360] ss:$16 sps:$4 sm:$0xff]   ;;  %v9516_v54 = vld [vmem:[#allocation6 + $0x368] ss:$16 sps:$4 sm:$0xff]  }
  0xa0   :  { %3414 = vmatprep.subr.bf16.mxu0 %v9429_v55  ;;  %3758 = vmatprep.subr.bf16.mxu1 %v9431_v56  ;;  %v9521_v55 = vld [vmem:[#allocation6 + $0x384] ss:$16 sps:$4 sm:$0xff]   ;;  %v9524_v56 = vld [vmem:[#allocation6 + $0x38c] ss:$16 sps:$4 sm:$0xff]  }
  0xa3   :  { %3415 = vmatpush1.bf16.msra.mxu0 %v9433_v57  ;;  %3759 = vmatpush1.bf16.msra.mxu1 %v9434_v58  ;;  %v9519_v57 = vld [vmem:[#allocation6 + $0x380] ss:$16 sps:$4 sm:$0xff]   ;;  %v9522_v58 = vld [vmem:[#allocation6 + $0x388] ss:$16 sps:$4 sm:$0xff]  }
  0xa4   :  { %3416 = vmatprep.subr.bf16.mxu0 %v9435_v59  ;;  %3760 = vmatprep.subr.bf16.mxu1 %v9437_v60  ;;  %v9527_v59 = vld [vmem:[#allocation6 + $0x3a4] ss:$16 sps:$4 sm:$0xff]   ;;  %v9530_v60 = vld [vmem:[#allocation6 + $0x3ac] ss:$16 sps:$4 sm:$0xff]  }
  0xa7   :  { %3417 = vmatpush1.bf16.msra.mxu0 %v9439_v61  ;;  %3761 = vmatpush1.bf16.msra.mxu1 %v9440_v62  ;;  %v9525_v61 = vld [vmem:[#allocation6 + $0x3a0] ss:$16 sps:$4 sm:$0xff]   ;;  %v9528_v62 = vld [vmem:[#allocation6 + $0x3a8] ss:$16 sps:$4 sm:$0xff]  }
  0xa8   :  { %3418 = vmatprep.subr.bf16.mxu0 %v9441_v63  ;;  %3762 = vmatprep.subr.bf16.mxu1 %v9443_v0  ;;  %v9533_v63 = vld [vmem:[#allocation6 + $0x3c4] ss:$16 sps:$4 sm:$0xff]   ;;  %v9536_v0 = vld [vmem:[#allocation6 + $0x3cc] ss:$16 sps:$4 sm:$0xff]  }
  0xab   :  { %3419 = vmatpush1.bf16.msra.mxu0 %v9445_v1  ;;  %3763 = vmatpush1.bf16.msra.mxu1 %v9446_v2  ;;  %v9531_v1 = vld [vmem:[#allocation6 + $0x3c0] ss:$16 sps:$4 sm:$0xff]   ;;  %v9534_v2 = vld [vmem:[#allocation6 + $0x3c8] ss:$16 sps:$4 sm:$0xff]  }
  0xac   :  { %3431 = vmatprep.subr.bf16.mxu0 %v9449_v3  ;;  %3775 = vmatprep.subr.bf16.mxu1 %v9452_v4  ;;  %v9539_v3 = vld [vmem:[#allocation6 + $0x3e4] ss:$16 sps:$4 sm:$0xff]   ;;  %v9542_v4 = vld [vmem:[#allocation6 + $0x3ec] ss:$16 sps:$4 sm:$0xff]  }
  0xae   :  { %3421 = vmatmul.mubr.bf16.vlgmr.msra.gmra.mrb[0].mxu0 %v8209_v5  ;;  %3765 = vmatmul.mubr.bf16.vlgmr.msra.gmra.mrb[0].mxu1 %v8209_v5  ;;  %v9537_v5 = vld [vmem:[#allocation6 + $0x3e0] ss:$16 sps:$4 sm:$0xff]  }
  0xaf   :  { %3432 = vmatpush1.bf16.msra.mxu0 %v9447_v6  ;;  %3776 = vmatpush1.bf16.msra.mxu1 %v9450_v7  ;;  %v9540_v6 = vld [vmem:[#allocation6 + $0x3e8] ss:$16 sps:$4 sm:$0xff]   ;;  %v9545_v7 = vld [vmem:[#allocation6 + $0x404] ss:$16 sps:$4 sm:$0xff]  }
  0xb0   :  { %3433 = vmatprep.subr.bf16.mxu0 %v9455_v8  ;;  %3777 = vmatprep.subr.bf16.mxu1 %v9458_v9  ;;  %v9548_v8 = vld [vmem:[#allocation6 + $0x40c] ss:$16 sps:$4 sm:$0xff]   ;;  %v8211_v9 = vcombine.low %v10418_v30, %v10420_v31  ;;  %v9570_v30 = vld [vmem:[#allocation6 + $0x488] ss:$16 sps:$4 sm:$0xff]   ;;  %v9575_v31 = vld [vmem:[#allocation6 + $0x4a4] ss:$16 sps:$4 sm:$0xff]  }
  0xb1   :  { %3463 = vmatprep.mubr.bf16.mxu0 %v8212_v34  ;;  %3807 = vmatprep.mubr.bf16.mxu1 %v8212_v34  ;;  %v9576_v34 = vld [vmem:[#allocation6 + $0x4a8] ss:$16 sps:$4 sm:$0xff]  }
  0xb3   :  { %3434 = vmatpush1.bf16.msra.mxu0 %v9453_v10  ;;  %3778 = vmatpush1.bf16.msra.mxu1 %v9456_v11  ;;  %v9543_v10 = vld [vmem:[#allocation6 + $0x400] ss:$16 sps:$4 sm:$0xff]   ;;  %v9546_v11 = vld [vmem:[#allocation6 + $0x408] ss:$16 sps:$4 sm:$0xff]  }
  0xb4   :  { %3435 = vmatprep.subr.bf16.mxu0 %v9461_v12  ;;  %3779 = vmatprep.subr.bf16.mxu1 %v9464_v13  ;;  %v9551_v12 = vld [vmem:[#allocation6 + $0x424] ss:$16 sps:$4 sm:$0xff]   ;;  %v9554_v13 = vld [vmem:[#allocation6 + $0x42c] ss:$16 sps:$4 sm:$0xff]  }
  0xb7   :  { %3436 = vmatpush1.bf16.msra.mxu0 %v9459_v14  ;;  %3780 = vmatpush1.bf16.msra.mxu1 %v9462_v15  ;;  %v10426_v14 = vld [vmem:[#allocation3 + $0x10] sm:$0xff] }
  0xb8   :  { %3437 = vmatprep.subr.bf16.mxu0 %v9467_v16  ;;  %3781 = vmatprep.subr.bf16.mxu1 %v9470_v17  ;;  %v10428_v15 = vld [vmem:[#allocation3 + $0x50] sm:$0xff] }
  0xb9   :  { %v8214_v16 = vcombine.high %v10426_v14, %v10428_v15  ;;  %v9549_v17 = vld [vmem:[#allocation6 + $0x420] ss:$16 sps:$4 sm:$0xff]  }
  0xbb   :  { %3438 = vmatpush1.bf16.msra.mxu0 %v9465_v18  ;;  %3782 = vmatpush1.bf16.msra.mxu1 %v9468_v19  ;;  %v9552_v18 = vld [vmem:[#allocation6 + $0x428] ss:$16 sps:$4 sm:$0xff]   ;;  %v9557_v19 = vld [vmem:[#allocation6 + $0x444] ss:$16 sps:$4 sm:$0xff]  }
  0xbc   :  { %3439 = vmatprep.subr.bf16.mxu0 %v9473_v20  ;;  %3783 = vmatprep.subr.bf16.mxu1 %v9476_v21  ;;  %v9560_v20 = vld [vmem:[#allocation6 + $0x44c] ss:$16 sps:$4 sm:$0xff]   ;;  %v9555_v21 = vld [vmem:[#allocation6 + $0x440] ss:$16 sps:$4 sm:$0xff]  }
  0xbf   :  { %3440 = vmatpush1.bf16.msra.mxu0 %v9471_v22  ;;  %3784 = vmatpush1.bf16.msra.mxu1 %v9474_v23  ;;  %v9558_v22 = vld [vmem:[#allocation6 + $0x448] ss:$16 sps:$4 sm:$0xff]   ;;  %v9563_v23 = vld [vmem:[#allocation6 + $0x464] ss:$16 sps:$4 sm:$0xff]  }
  0xc0   :  { %3441 = vmatprep.subr.bf16.mxu0 %v9479_v24  ;;  %3785 = vmatprep.subr.bf16.mxu1 %v9482_v25  ;;  %v9566_v24 = vld [vmem:[#allocation6 + $0x46c] ss:$16 sps:$4 sm:$0xff]   ;;  %v9561_v25 = vld [vmem:[#allocation6 + $0x460] ss:$16 sps:$4 sm:$0xff]  }
  0xc3   :  { %3442 = vmatpush1.bf16.msra.mxu0 %v9477_v26  ;;  %3786 = vmatpush1.bf16.msra.mxu1 %v9480_v27  ;;  %v9564_v26 = vld [vmem:[#allocation6 + $0x468] ss:$16 sps:$4 sm:$0xff]   ;;  %v9569_v27 = vld [vmem:[#allocation6 + $0x484] ss:$16 sps:$4 sm:$0xff]  }
  0xc4   :  { %3443 = vmatprep.subr.bf16.mxu0 %v9485_v28  ;;  %3787 = vmatprep.subr.bf16.mxu1 %v9488_v29  ;;  %v9572_v28 = vld [vmem:[#allocation6 + $0x48c] ss:$16 sps:$4 sm:$0xff]   ;;  %v9567_v29 = vld [vmem:[#allocation6 + $0x480] ss:$16 sps:$4 sm:$0xff]  }
  0xc7   :  { %3444 = vmatpush1.bf16.msra.mxu0 %v9483_v32  ;;  %3788 = vmatpush1.bf16.msra.mxu1 %v9486_v33  ;;  %v9578_v32 = vld [vmem:[#allocation6 + $0x4ac] ss:$16 sps:$4 sm:$0xff]   ;;  %v9573_v33 = vld [vmem:[#allocation6 + $0x4a0] ss:$16 sps:$4 sm:$0xff]  }
  0xc8   :  { %3445 = vmatprep.subr.bf16.mxu0 %v9491_v35  ;;  %3789 = vmatprep.subr.bf16.mxu1 %v9494_v36  ;;  %v9581_v35 = vld [vmem:[#allocation6 + $0x4c4] ss:$16 sps:$4 sm:$0xff]   ;;  %v9584_v36 = vld [vmem:[#allocation6 + $0x4cc] ss:$16 sps:$4 sm:$0xff]  }
  0xcb   :  { %3446 = vmatpush1.bf16.msra.mxu0 %v9489_v37  ;;  %3790 = vmatpush1.bf16.msra.mxu1 %v9492_v38  ;;  %v9579_v37 = vld [vmem:[#allocation6 + $0x4c0] ss:$16 sps:$4 sm:$0xff]   ;;  %v9582_v38 = vld [vmem:[#allocation6 + $0x4c8] ss:$16 sps:$4 sm:$0xff]  }
  0xcc   :  { %3447 = vmatprep.subr.bf16.mxu0 %v9497_v39  ;;  %3791 = vmatprep.subr.bf16.mxu1 %v9500_v40  ;;  %v9587_v39 = vld [vmem:[#allocation6 + $0x4e4] ss:$16 sps:$4 sm:$0xff]   ;;  %v9590_v40 = vld [vmem:[#allocation6 + $0x4ec] ss:$16 sps:$4 sm:$0xff]  }
  0xcf   :  { %3448 = vmatpush1.bf16.msra.mxu0 %v9495_v41  ;;  %3792 = vmatpush1.bf16.msra.mxu1 %v9498_v42  ;;  %v9585_v41 = vld [vmem:[#allocation6 + $0x4e0] ss:$16 sps:$4 sm:$0xff]   ;;  %v9588_v42 = vld [vmem:[#allocation6 + $0x4e8] ss:$16 sps:$4 sm:$0xff]  }
  0xd0   :  { %3449 = vmatprep.subr.bf16.mxu0 %v9503_v43  ;;  %3793 = vmatprep.subr.bf16.mxu1 %v9506_v44  ;;  %v9593_v43 = vld [vmem:[#allocation6 + $0x504] ss:$16 sps:$4 sm:$0xff]   ;;  %v9596_v44 = vld [vmem:[#allocation6 + $0x50c] ss:$16 sps:$4 sm:$0xff]  }
  0xd3   :  { %3450 = vmatpush1.bf16.msra.mxu0 %v9501_v45  ;;  %3794 = vmatpush1.bf16.msra.mxu1 %v9504_v46  ;;  %v9591_v45 = vld [vmem:[#allocation6 + $0x500] ss:$16 sps:$4 sm:$0xff]   ;;  %v9594_v46 = vld [vmem:[#allocation6 + $0x508] ss:$16 sps:$4 sm:$0xff]  }
  0xd4   :  { %3451 = vmatprep.subr.bf16.mxu0 %v9509_v47  ;;  %3795 = vmatprep.subr.bf16.mxu1 %v9512_v48  ;;  %v9599_v47 = vld [vmem:[#allocation6 + $0x524] ss:$16 sps:$4 sm:$0xff]   ;;  %v9602_v48 = vld [vmem:[#allocation6 + $0x52c] ss:$16 sps:$4 sm:$0xff]  }
  0xd7   :  { %3452 = vmatpush1.bf16.msra.mxu0 %v9507_v49  ;;  %3796 = vmatpush1.bf16.msra.mxu1 %v9510_v50  ;;  %v9597_v49 = vld [vmem:[#allocation6 + $0x520] ss:$16 sps:$4 sm:$0xff]   ;;  %v9600_v50 = vld [vmem:[#allocation6 + $0x528] ss:$16 sps:$4 sm:$0xff]  }
  0xd8   :  { %3453 = vmatprep.subr.bf16.mxu0 %v9515_v51  ;;  %3797 = vmatprep.subr.bf16.mxu1 %v9518_v52  ;;  %v9605_v51 = vld [vmem:[#allocation6 + $0x544] ss:$16 sps:$4 sm:$0xff]   ;;  %v9608_v52 = vld [vmem:[#allocation6 + $0x54c] ss:$16 sps:$4 sm:$0xff]  }
  0xdb   :  { %3454 = vmatpush1.bf16.msra.mxu0 %v9513_v53  ;;  %3798 = vmatpush1.bf16.msra.mxu1 %v9516_v54  ;;  %v9603_v53 = vld [vmem:[#allocation6 + $0x540] ss:$16 sps:$4 sm:$0xff]   ;;  %v9606_v54 = vld [vmem:[#allocation6 + $0x548] ss:$16 sps:$4 sm:$0xff]  }
  0xdc   :  { %3455 = vmatprep.subr.bf16.mxu0 %v9521_v55  ;;  %3799 = vmatprep.subr.bf16.mxu1 %v9524_v56  ;;  %v9611_v55 = vld [vmem:[#allocation6 + $0x564] ss:$16 sps:$4 sm:$0xff]   ;;  %v9614_v56 = vld [vmem:[#allocation6 + $0x56c] ss:$16 sps:$4 sm:$0xff]  }
  0xdf   :  { %3456 = vmatpush1.bf16.msra.mxu0 %v9519_v57  ;;  %3800 = vmatpush1.bf16.msra.mxu1 %v9522_v58  ;;  %v9609_v57 = vld [vmem:[#allocation6 + $0x560] ss:$16 sps:$4 sm:$0xff]   ;;  %v9612_v58 = vld [vmem:[#allocation6 + $0x568] ss:$16 sps:$4 sm:$0xff]  }
  0xe0   :  { %3457 = vmatprep.subr.bf16.mxu0 %v9527_v59  ;;  %3801 = vmatprep.subr.bf16.mxu1 %v9530_v60  ;;  %v9617_v59 = vld [vmem:[#allocation6 + $0x584] ss:$16 sps:$4 sm:$0xff]   ;;  %v9620_v60 = vld [vmem:[#allocation6 + $0x58c] ss:$16 sps:$4 sm:$0xff]  }
  0xe3   :  { %3458 = vmatpush1.bf16.msra.mxu0 %v9525_v61  ;;  %3802 = vmatpush1.bf16.msra.mxu1 %v9528_v62  ;;  %v9615_v61 = vld [vmem:[#allocation6 + $0x580] ss:$16 sps:$4 sm:$0xff]   ;;  %v9618_v62 = vld [vmem:[#allocation6 + $0x588] ss:$16 sps:$4 sm:$0xff]  }
  0xe4   :  { %3459 = vmatprep.subr.bf16.mxu0 %v9533_v63  ;;  %3803 = vmatprep.subr.bf16.mxu1 %v9536_v0  ;;  %v9623_v63 = vld [vmem:[#allocation6 + $0x5a4] ss:$16 sps:$4 sm:$0xff]   ;;  %v9626_v0 = vld [vmem:[#allocation6 + $0x5ac] ss:$16 sps:$4 sm:$0xff]  }
  0xe7   :  { %3460 = vmatpush1.bf16.msra.mxu0 %v9531_v1  ;;  %3804 = vmatpush1.bf16.msra.mxu1 %v9534_v2  ;;  %v9621_v1 = vld [vmem:[#allocation6 + $0x5a0] ss:$16 sps:$4 sm:$0xff]   ;;  %v9624_v2 = vld [vmem:[#allocation6 + $0x5a8] ss:$16 sps:$4 sm:$0xff]  }
  0xe8   :  { %3461 = vmatprep.subr.bf16.mxu0 %v9539_v3  ;;  %3805 = vmatprep.subr.bf16.mxu1 %v9542_v4  ;;  %v9629_v3 = vld [vmem:[#allocation6 + $0x5c4] ss:$16 sps:$4 sm:$0xff]   ;;  %v9632_v4 = vld [vmem:[#allocation6 + $0x5cc] ss:$16 sps:$4 sm:$0xff]  }
  0xeb   :  { %3462 = vmatpush1.bf16.msra.mxu0 %v9537_v5  ;;  %3806 = vmatpush1.bf16.msra.mxu1 %v9540_v6  ;;  %v9627_v5 = vld [vmem:[#allocation6 + $0x5c0] ss:$16 sps:$4 sm:$0xff]   ;;  %v9630_v6 = vld [vmem:[#allocation6 + $0x5c8] ss:$16 sps:$4 sm:$0xff]  }
  0xec   :  { %3474 = vmatprep.subr.bf16.mxu0 %v9545_v7  ;;  %3818 = vmatprep.subr.bf16.mxu1 %v9548_v8  ;;  %v9635_v7 = vld [vmem:[#allocation6 + $0x5e4] ss:$16 sps:$4 sm:$0xff]   ;;  %v9638_v8 = vld [vmem:[#allocation6 + $0x5ec] ss:$16 sps:$4 sm:$0xff]  }
  0xee   :  { %3464 = vmatmul.mubr.bf16.vlgmr.msra.gmra.mrb[0].mxu0 %v8211_v9  ;;  %3808 = vmatmul.mubr.bf16.vlgmr.msra.gmra.mrb[0].mxu1 %v8211_v9  ;;  %v9633_v9 = vld [vmem:[#allocation6 + $0x5e0] ss:$16 sps:$4 sm:$0xff]  }
  0xef   :  { %3475 = vmatpush1.bf16.msra.mxu0 %v9543_v10  ;;  %3819 = vmatpush1.bf16.msra.mxu1 %v9546_v11  ;;  %v9636_v10 = vld [vmem:[#allocation6 + $0x5e8] ss:$16 sps:$4 sm:$0xff]   ;;  %v9641_v11 = vld [vmem:[#allocation6 + $0x604] ss:$16 sps:$4 sm:$0xff]  }
  0xf0   :  { %3476 = vmatprep.subr.bf16.mxu0 %v9551_v12  ;;  %3820 = vmatprep.subr.bf16.mxu1 %v9554_v13  ;;  %v9644_v12 = vld [vmem:[#allocation6 + $0x60c] ss:$16 sps:$4 sm:$0xff]   ;;  %v9639_v13 = vld [vmem:[#allocation6 + $0x600] ss:$16 sps:$4 sm:$0xff]  }
  0xf1   :  { %3506 = vmatprep.mubr.bf16.mxu0 %v8214_v16  ;;  %3850 = vmatprep.mubr.bf16.mxu1 %v8214_v16  ;;  %v9642_v16 = vld [vmem:[#allocation6 + $0x608] ss:$16 sps:$4 sm:$0xff]  }
  0xf3   :  { %3477 = vmatpush1.bf16.msra.mxu0 %v9549_v17  ;;  %3821 = vmatpush1.bf16.msra.mxu1 %v9552_v18  ;;  %v8213_v17 = vcombine.low %v10426_v14, %v10428_v15  ;;  %v10434_v18 = vld [vmem:[#allocation3 + $0x18] sm:$0xff]  ;;  %v9653_v14 = vld [vmem:[#allocation6 + $0x644] ss:$16 sps:$4 sm:$0xff]  }
  0xf4   :  { %3478 = vmatprep.subr.bf16.mxu0 %v9557_v19  ;;  %3822 = vmatprep.subr.bf16.mxu1 %v9560_v20  ;;  %v10436_v19 = vld [vmem:[#allocation3 + $0x58] sm:$0xff]  ;;  %v9647_v20 = vld [vmem:[#allocation6 + $0x624] ss:$16 sps:$4 sm:$0xff]  }
  0xf5   :  { %v9656_v15 = vld [vmem:[#allocation6 + $0x64c] ss:$16 sps:$4 sm:$0xff]  }
  0xf7   :  { %3479 = vmatpush1.bf16.msra.mxu0 %v9555_v21  ;;  %3823 = vmatpush1.bf16.msra.mxu1 %v9558_v22  ;;  %v9650_v21 = vld [vmem:[#allocation6 + $0x62c] ss:$16 sps:$4 sm:$0xff]   ;;  %v8216_v22 = vcombine.high %v10434_v18, %v10436_v19 }
  0xf8   :  { %3480 = vmatprep.subr.bf16.mxu0 %v9563_v23  ;;  %3824 = vmatprep.subr.bf16.mxu1 %v9566_v24  ;;  %v9645_v23 = vld [vmem:[#allocation6 + $0x620] ss:$16 sps:$4 sm:$0xff]   ;;  %v9648_v24 = vld [vmem:[#allocation6 + $0x628] ss:$16 sps:$4 sm:$0xff]  }
  0xfb   :  { %3481 = vmatpush1.bf16.msra.mxu0 %v9561_v25  ;;  %3825 = vmatpush1.bf16.msra.mxu1 %v9564_v26  ;;  %v9651_v25 = vld [vmem:[#allocation6 + $0x640] ss:$16 sps:$4 sm:$0xff]   ;;  %v9654_v26 = vld [vmem:[#allocation6 + $0x648] ss:$16 sps:$4 sm:$0xff]  }
  0xfc   :  { %3482 = vmatprep.subr.bf16.mxu0 %v9569_v27  ;;  %3826 = vmatprep.subr.bf16.mxu1 %v9572_v28  ;;  %v9659_v27 = vld [vmem:[#allocation6 + $0x664] ss:$16 sps:$4 sm:$0xff]   ;;  %v9662_v28 = vld [vmem:[#allocation6 + $0x66c] ss:$16 sps:$4 sm:$0xff]  }
  0xff   :  { %3483 = vmatpush1.bf16.msra.mxu0 %v9567_v29  ;;  %3827 = vmatpush1.bf16.msra.mxu1 %v9570_v30  ;;  %v9657_v29 = vld [vmem:[#allocation6 + $0x660] ss:$16 sps:$4 sm:$0xff]   ;;  %v9660_v30 = vld [vmem:[#allocation6 + $0x668] ss:$16 sps:$4 sm:$0xff]  }
 0x100   :  { %3484 = vmatprep.subr.bf16.mxu0 %v9575_v31  ;;  %3828 = vmatprep.subr.bf16.mxu1 %v9578_v32  ;;  %v9665_v31 = vld [vmem:[#allocation6 + $0x684] ss:$16 sps:$4 sm:$0xff]   ;;  %v9668_v32 = vld [vmem:[#allocation6 + $0x68c] ss:$16 sps:$4 sm:$0xff]  }
 0x103   :  { %3485 = vmatpush1.bf16.msra.mxu0 %v9573_v33  ;;  %3829 = vmatpush1.bf16.msra.mxu1 %v9576_v34  ;;  %v9663_v33 = vld [vmem:[#allocation6 + $0x680] ss:$16 sps:$4 sm:$0xff]   ;;  %v9666_v34 = vld [vmem:[#allocation6 + $0x688] ss:$16 sps:$4 sm:$0xff]  }
 0x104   :  { %3486 = vmatprep.subr.bf16.mxu0 %v9581_v35  ;;  %3830 = vmatprep.subr.bf16.mxu1 %v9584_v36  ;;  %v9671_v35 = vld [vmem:[#allocation6 + $0x6a4] ss:$16 sps:$4 sm:$0xff]   ;;  %v9674_v36 = vld [vmem:[#allocation6 + $0x6ac] ss:$16 sps:$4 sm:$0xff]  }
 0x107   :  { %3487 = vmatpush1.bf16.msra.mxu0 %v9579_v37  ;;  %3831 = vmatpush1.bf16.msra.mxu1 %v9582_v38  ;;  %v9669_v37 = vld [vmem:[#allocation6 + $0x6a0] ss:$16 sps:$4 sm:$0xff]   ;;  %v9672_v38 = vld [vmem:[#allocation6 + $0x6a8] ss:$16 sps:$4 sm:$0xff]  }
 0x108   :  { %3488 = vmatprep.subr.bf16.mxu0 %v9587_v39  ;;  %3832 = vmatprep.subr.bf16.mxu1 %v9590_v40  ;;  %v9677_v39 = vld [vmem:[#allocation6 + $0x6c4] ss:$16 sps:$4 sm:$0xff]   ;;  %v9680_v40 = vld [vmem:[#allocation6 + $0x6cc] ss:$16 sps:$4 sm:$0xff]  }
 0x10b   :  { %3489 = vmatpush1.bf16.msra.mxu0 %v9585_v41  ;;  %3833 = vmatpush1.bf16.msra.mxu1 %v9588_v42  ;;  %v9675_v41 = vld [vmem:[#allocation6 + $0x6c0] ss:$16 sps:$4 sm:$0xff]   ;;  %v9678_v42 = vld [vmem:[#allocation6 + $0x6c8] ss:$16 sps:$4 sm:$0xff]  }
 0x10c   :  { %3490 = vmatprep.subr.bf16.mxu0 %v9593_v43  ;;  %3834 = vmatprep.subr.bf16.mxu1 %v9596_v44  ;;  %v9683_v43 = vld [vmem:[#allocation6 + $0x6e4] ss:$16 sps:$4 sm:$0xff]   ;;  %v9686_v44 = vld [vmem:[#allocation6 + $0x6ec] ss:$16 sps:$4 sm:$0xff]  }
 0x10f   :  { %3491 = vmatpush1.bf16.msra.mxu0 %v9591_v45  ;;  %3835 = vmatpush1.bf16.msra.mxu1 %v9594_v46  ;;  %v9681_v45 = vld [vmem:[#allocation6 + $0x6e0] ss:$16 sps:$4 sm:$0xff]   ;;  %v9684_v46 = vld [vmem:[#allocation6 + $0x6e8] ss:$16 sps:$4 sm:$0xff]  }
 0x110   :  { %3492 = vmatprep.subr.bf16.mxu0 %v9599_v47  ;;  %3836 = vmatprep.subr.bf16.mxu1 %v9602_v48  ;;  %v9689_v47 = vld [vmem:[#allocation6 + $0x704] ss:$16 sps:$4 sm:$0xff]   ;;  %v9692_v48 = vld [vmem:[#allocation6 + $0x70c] ss:$16 sps:$4 sm:$0xff]  }
 0x113   :  { %3493 = vmatpush1.bf16.msra.mxu0 %v9597_v49  ;;  %3837 = vmatpush1.bf16.msra.mxu1 %v9600_v50  ;;  %v9687_v49 = vld [vmem:[#allocation6 + $0x700] ss:$16 sps:$4 sm:$0xff]   ;;  %v9690_v50 = vld [vmem:[#allocation6 + $0x708] ss:$16 sps:$4 sm:$0xff]  }
 0x114   :  { %3494 = vmatprep.subr.bf16.mxu0 %v9605_v51  ;;  %3838 = vmatprep.subr.bf16.mxu1 %v9608_v52  ;;  %v9695_v51 = vld [vmem:[#allocation6 + $0x724] ss:$16 sps:$4 sm:$0xff]   ;;  %v9698_v52 = vld [vmem:[#allocation6 + $0x72c] ss:$16 sps:$4 sm:$0xff]  }
 0x117   :  { %3495 = vmatpush1.bf16.msra.mxu0 %v9603_v53  ;;  %3839 = vmatpush1.bf16.msra.mxu1 %v9606_v54  ;;  %v9693_v53 = vld [vmem:[#allocation6 + $0x720] ss:$16 sps:$4 sm:$0xff]   ;;  %v9696_v54 = vld [vmem:[#allocation6 + $0x728] ss:$16 sps:$4 sm:$0xff]  }
 0x118   :  { %3496 = vmatprep.subr.bf16.mxu0 %v9611_v55  ;;  %3840 = vmatprep.subr.bf16.mxu1 %v9614_v56  ;;  %v9701_v55 = vld [vmem:[#allocation6 + $0x744] ss:$16 sps:$4 sm:$0xff]   ;;  %v9704_v56 = vld [vmem:[#allocation6 + $0x74c] ss:$16 sps:$4 sm:$0xff]  }
 0x11b   :  { %3497 = vmatpush1.bf16.msra.mxu0 %v9609_v57  ;;  %3841 = vmatpush1.bf16.msra.mxu1 %v9612_v58  ;;  %v9699_v57 = vld [vmem:[#allocation6 + $0x740] ss:$16 sps:$4 sm:$0xff]   ;;  %v9702_v58 = vld [vmem:[#allocation6 + $0x748] ss:$16 sps:$4 sm:$0xff]  }
 0x11c   :  { %3498 = vmatprep.subr.bf16.mxu0 %v9617_v59  ;;  %3842 = vmatprep.subr.bf16.mxu1 %v9620_v60  ;;  %v9707_v59 = vld [vmem:[#allocation6 + $0x764] ss:$16 sps:$4 sm:$0xff]   ;;  %v9710_v60 = vld [vmem:[#allocation6 + $0x76c] ss:$16 sps:$4 sm:$0xff]  }
 0x11f   :  { %3499 = vmatpush1.bf16.msra.mxu0 %v9615_v61  ;;  %3843 = vmatpush1.bf16.msra.mxu1 %v9618_v62  ;;  %v9705_v61 = vld [vmem:[#allocation6 + $0x760] ss:$16 sps:$4 sm:$0xff]   ;;  %v9708_v62 = vld [vmem:[#allocation6 + $0x768] ss:$16 sps:$4 sm:$0xff]  }
 0x120   :  { %3500 = vmatprep.subr.bf16.mxu0 %v9623_v63  ;;  %3844 = vmatprep.subr.bf16.mxu1 %v9626_v0  ;;  %v9713_v63 = vld [vmem:[#allocation6 + $0x784] ss:$16 sps:$4 sm:$0xff]   ;;  %v9716_v0 = vld [vmem:[#allocation6 + $0x78c] ss:$16 sps:$4 sm:$0xff]  }
 0x123   :  { %3501 = vmatpush1.bf16.msra.mxu0 %v9621_v1  ;;  %3845 = vmatpush1.bf16.msra.mxu1 %v9624_v2  ;;  %v9711_v1 = vld [vmem:[#allocation6 + $0x780] ss:$16 sps:$4 sm:$0xff]   ;;  %v9714_v2 = vld [vmem:[#allocation6 + $0x788] ss:$16 sps:$4 sm:$0xff]  }
 0x124   :  { %3502 = vmatprep.subr.bf16.mxu0 %v9629_v3  ;;  %3846 = vmatprep.subr.bf16.mxu1 %v9632_v4  ;;  %v9719_v3 = vld [vmem:[#allocation6 + $0x7a4] ss:$16 sps:$4 sm:$0xff]   ;;  %v9722_v4 = vld [vmem:[#allocation6 + $0x7ac] ss:$16 sps:$4 sm:$0xff]  }
 0x127   :  { %3503 = vmatpush1.bf16.msra.mxu0 %v9627_v5  ;;  %3847 = vmatpush1.bf16.msra.mxu1 %v9630_v6  ;;  %v9717_v5 = vld [vmem:[#allocation6 + $0x7a0] ss:$16 sps:$4 sm:$0xff]   ;;  %v9720_v6 = vld [vmem:[#allocation6 + $0x7a8] ss:$16 sps:$4 sm:$0xff]  }
 0x128   :  { %3504 = vmatprep.subr.bf16.mxu0 %v9635_v7  ;;  %3848 = vmatprep.subr.bf16.mxu1 %v9638_v8  ;;  %v9725_v7 = vld [vmem:[#allocation6 + $0x7c4] ss:$16 sps:$4 sm:$0xff]   ;;  %v9728_v8 = vld [vmem:[#allocation6 + $0x7cc] ss:$16 sps:$4 sm:$0xff]  }
 0x12b   :  { %3505 = vmatpush1.bf16.msra.mxu0 %v9633_v9  ;;  %3849 = vmatpush1.bf16.msra.mxu1 %v9636_v10  ;;  %v9723_v9 = vld [vmem:[#allocation6 + $0x7c0] ss:$16 sps:$4 sm:$0xff]   ;;  %v9726_v10 = vld [vmem:[#allocation6 + $0x7c8] ss:$16 sps:$4 sm:$0xff]  }
 0x12c   :  { %3517 = vmatprep.subr.bf16.mxu0 %v9641_v11  ;;  %3861 = vmatprep.subr.bf16.mxu1 %v9644_v12  ;;  %v9731_v11 = vld [vmem:[#allocation6 + $0x7e4] ss:$16 sps:$4 sm:$0xff]   ;;  %v9734_v12 = vld [vmem:[#allocation6 + $0x7ec] ss:$16 sps:$4 sm:$0xff]  }
 0x12e   :  { %3507 = vmatmul.mubr.bf16.vlgmr.msra.gmra.mrb[0].mxu0 %v8213_v17  ;;  %3851 = vmatmul.mubr.bf16.vlgmr.msra.gmra.mrb[0].mxu1 %v8213_v17  ;;  %v9737_v17 = vld [vmem:[#allocation6 + $0x804] ss:$16 sps:$4 sm:$0xff]  }
 0x12f   :  { %3518 = vmatpush1.bf16.msra.mxu0 %v9639_v13  ;;  %3862 = vmatpush1.bf16.msra.mxu1 %v9642_v16  ;;  %v9729_v13 = vld [vmem:[#allocation6 + $0x7e0] ss:$16 sps:$4 sm:$0xff]   ;;  %v9732_v16 = vld [vmem:[#allocation6 + $0x7e8] ss:$16 sps:$4 sm:$0xff]  }
 0x130   :  { %3519 = vmatprep.subr.bf16.mxu0 %v9647_v20  ;;  %3863 = vmatprep.subr.bf16.mxu1 %v9650_v21  ;;  %v9740_v20 = vld [vmem:[#allocation6 + $0x80c] ss:$16 sps:$4 sm:$0xff]   ;;  %v10440_v21 = vld [vmem:[#allocation3 + $0x20] sm:$0xff] }
 0x131   :  { %3549 = vmatprep.mubr.bf16.mxu0 %v8216_v22  ;;  %3893 = vmatprep.mubr.bf16.mxu1 %v8216_v22  ;;  %v8215_v22 = vcombine.low %v10434_v18, %v10436_v19  ;;  %v9749_v18 = vld [vmem:[#allocation6 + $0x844] ss:$16 sps:$4 sm:$0xff]   ;;  %v9752_v19 = vld [vmem:[#allocation6 + $0x84c] ss:$16 sps:$4 sm:$0xff]  }
 0x133   :  { %3520 = vmatpush1.bf16.msra.mxu0 %v9645_v23  ;;  %3864 = vmatpush1.bf16.msra.mxu1 %v9648_v24  ;;  %v10444_v23 = vld [vmem:[#allocation3 + $0x60] sm:$0xff] }
 0x134   :  { %3521 = vmatprep.subr.bf16.mxu0 %v9653_v14  ;;  %3865 = vmatprep.subr.bf16.mxu1 %v9656_v15  ;;  %v9735_v24 = vld [vmem:[#allocation6 + $0x800] ss:$16 sps:$4 sm:$0xff]   ;;  %v9738_v14 = vld [vmem:[#allocation6 + $0x808] ss:$16 sps:$4 sm:$0xff]   ;;  %v9743_v15 = vld [vmem:[#allocation6 + $0x824] ss:$16 sps:$4 sm:$0xff]  }
 0x137   :  { %3522 = vmatpush1.bf16.msra.mxu0 %v9651_v25  ;;  %3866 = vmatpush1.bf16.msra.mxu1 %v9654_v26  ;;  %v9746_v25 = vld [vmem:[#allocation6 + $0x82c] ss:$16 sps:$4 sm:$0xff]   ;;  %v8218_v26 = vcombine.high %v10440_v21, %v10444_v23 }
 0x138   :  { %3523 = vmatprep.subr.bf16.mxu0 %v9659_v27  ;;  %3867 = vmatprep.subr.bf16.mxu1 %v9662_v28  ;;  %v9741_v27 = vld [vmem:[#allocation6 + $0x820] ss:$16 sps:$4 sm:$0xff]   ;;  %v9744_v28 = vld [vmem:[#allocation6 + $0x828] ss:$16 sps:$4 sm:$0xff]  }
 0x13b   :  { %3524 = vmatpush1.bf16.msra.mxu0 %v9657_v29  ;;  %3868 = vmatpush1.bf16.msra.mxu1 %v9660_v30  ;;  %v9747_v29 = vld [vmem:[#allocation6 + $0x840] ss:$16 sps:$4 sm:$0xff]   ;;  %v9750_v30 = vld [vmem:[#allocation6 + $0x848] ss:$16 sps:$4 sm:$0xff]  }
 0x13c   :  { %3525 = vmatprep.subr.bf16.mxu0 %v9665_v31  ;;  %3869 = vmatprep.subr.bf16.mxu1 %v9668_v32  ;;  %v9755_v31 = vld [vmem:[#allocation6 + $0x864] ss:$16 sps:$4 sm:$0xff]   ;;  %v9758_v32 = vld [vmem:[#allocation6 + $0x86c] ss:$16 sps:$4 sm:$0xff]  }
 0x13f   :  { %3526 = vmatpush1.bf16.msra.mxu0 %v9663_v33  ;;  %3870 = vmatpush1.bf16.msra.mxu1 %v9666_v34  ;;  %v9753_v33 = vld [vmem:[#allocation6 + $0x860] ss:$16 sps:$4 sm:$0xff]   ;;  %v9756_v34 = vld [vmem:[#allocation6 + $0x868] ss:$16 sps:$4 sm:$0xff]  }
 0x140   :  { %3527 = vmatprep.subr.bf16.mxu0 %v9671_v35  ;;  %3871 = vmatprep.subr.bf16.mxu1 %v9674_v36  ;;  %v9761_v35 = vld [vmem:[#allocation6 + $0x884] ss:$16 sps:$4 sm:$0xff]   ;;  %v9764_v36 = vld [vmem:[#allocation6 + $0x88c] ss:$16 sps:$4 sm:$0xff]  }
 0x143   :  { %3528 = vmatpush1.bf16.msra.mxu0 %v9669_v37  ;;  %3872 = vmatpush1.bf16.msra.mxu1 %v9672_v38  ;;  %v9759_v37 = vld [vmem:[#allocation6 + $0x880] ss:$16 sps:$4 sm:$0xff]   ;;  %v9762_v38 = vld [vmem:[#allocation6 + $0x888] ss:$16 sps:$4 sm:$0xff]  }
 0x144   :  { %3529 = vmatprep.subr.bf16.mxu0 %v9677_v39  ;;  %3873 = vmatprep.subr.bf16.mxu1 %v9680_v40  ;;  %v9767_v39 = vld [vmem:[#allocation6 + $0x8a4] ss:$16 sps:$4 sm:$0xff]   ;;  %v9770_v40 = vld [vmem:[#allocation6 + $0x8ac] ss:$16 sps:$4 sm:$0xff]  }
 0x147   :  { %3530 = vmatpush1.bf16.msra.mxu0 %v9675_v41  ;;  %3874 = vmatpush1.bf16.msra.mxu1 %v9678_v42  ;;  %v9765_v41 = vld [vmem:[#allocation6 + $0x8a0] ss:$16 sps:$4 sm:$0xff]   ;;  %v9768_v42 = vld [vmem:[#allocation6 + $0x8a8] ss:$16 sps:$4 sm:$0xff]  }
 0x148   :  { %3531 = vmatprep.subr.bf16.mxu0 %v9683_v43  ;;  %3875 = vmatprep.subr.bf16.mxu1 %v9686_v44  ;;  %v9773_v43 = vld [vmem:[#allocation6 + $0x8c4] ss:$16 sps:$4 sm:$0xff]   ;;  %v9776_v44 = vld [vmem:[#allocation6 + $0x8cc] ss:$16 sps:$4 sm:$0xff]  }
 0x14b   :  { %3532 = vmatpush1.bf16.msra.mxu0 %v9681_v45  ;;  %3876 = vmatpush1.bf16.msra.mxu1 %v9684_v46  ;;  %v9771_v45 = vld [vmem:[#allocation6 + $0x8c0] ss:$16 sps:$4 sm:$0xff]   ;;  %v9774_v46 = vld [vmem:[#allocation6 + $0x8c8] ss:$16 sps:$4 sm:$0xff]  }
 0x14c   :  { %3533 = vmatprep.subr.bf16.mxu0 %v9689_v47  ;;  %3877 = vmatprep.subr.bf16.mxu1 %v9692_v48  ;;  %v9779_v47 = vld [vmem:[#allocation6 + $0x8e4] ss:$16 sps:$4 sm:$0xff]   ;;  %v9782_v48 = vld [vmem:[#allocation6 + $0x8ec] ss:$16 sps:$4 sm:$0xff]  }
 0x14f   :  { %3534 = vmatpush1.bf16.msra.mxu0 %v9687_v49  ;;  %3878 = vmatpush1.bf16.msra.mxu1 %v9690_v50  ;;  %v9777_v49 = vld [vmem:[#allocation6 + $0x8e0] ss:$16 sps:$4 sm:$0xff]   ;;  %v9780_v50 = vld [vmem:[#allocation6 + $0x8e8] ss:$16 sps:$4 sm:$0xff]  }
 0x150   :  { %3535 = vmatprep.subr.bf16.mxu0 %v9695_v51  ;;  %3879 = vmatprep.subr.bf16.mxu1 %v9698_v52  ;;  %v9785_v51 = vld [vmem:[#allocation6 + $0x904] ss:$16 sps:$4 sm:$0xff]   ;;  %v9788_v52 = vld [vmem:[#allocation6 + $0x90c] ss:$16 sps:$4 sm:$0xff]  }
 0x153   :  { %3536 = vmatpush1.bf16.msra.mxu0 %v9693_v53  ;;  %3880 = vmatpush1.bf16.msra.mxu1 %v9696_v54  ;;  %v9783_v53 = vld [vmem:[#allocation6 + $0x900] ss:$16 sps:$4 sm:$0xff]   ;;  %v9786_v54 = vld [vmem:[#allocation6 + $0x908] ss:$16 sps:$4 sm:$0xff]  }
 0x154   :  { %3537 = vmatprep.subr.bf16.mxu0 %v9701_v55  ;;  %3881 = vmatprep.subr.bf16.mxu1 %v9704_v56  ;;  %v9791_v55 = vld [vmem:[#allocation6 + $0x924] ss:$16 sps:$4 sm:$0xff]   ;;  %v9794_v56 = vld [vmem:[#allocation6 + $0x92c] ss:$16 sps:$4 sm:$0xff]  }
 0x157   :  { %3538 = vmatpush1.bf16.msra.mxu0 %v9699_v57  ;;  %3882 = vmatpush1.bf16.msra.mxu1 %v9702_v58  ;;  %v9789_v57 = vld [vmem:[#allocation6 + $0x920] ss:$16 sps:$4 sm:$0xff]   ;;  %v9792_v58 = vld [vmem:[#allocation6 + $0x928] ss:$16 sps:$4 sm:$0xff]  }
 0x158   :  { %3539 = vmatprep.subr.bf16.mxu0 %v9707_v59  ;;  %3883 = vmatprep.subr.bf16.mxu1 %v9710_v60  ;;  %v9797_v59 = vld [vmem:[#allocation6 + $0x944] ss:$16 sps:$4 sm:$0xff]   ;;  %v9800_v60 = vld [vmem:[#allocation6 + $0x94c] ss:$16 sps:$4 sm:$0xff]  }
 0x15b   :  { %3540 = vmatpush1.bf16.msra.mxu0 %v9705_v61  ;;  %3884 = vmatpush1.bf16.msra.mxu1 %v9708_v62  ;;  %v9795_v61 = vld [vmem:[#allocation6 + $0x940] ss:$16 sps:$4 sm:$0xff]   ;;  %v9798_v62 = vld [vmem:[#allocation6 + $0x948] ss:$16 sps:$4 sm:$0xff]  }
 0x15c   :  { %3541 = vmatprep.subr.bf16.mxu0 %v9713_v63  ;;  %3885 = vmatprep.subr.bf16.mxu1 %v9716_v0  ;;  %v9803_v63 = vld [vmem:[#allocation6 + $0x964] ss:$16 sps:$4 sm:$0xff]   ;;  %v9806_v0 = vld [vmem:[#allocation6 + $0x96c] ss:$16 sps:$4 sm:$0xff]  }
 0x15f   :  { %3542 = vmatpush1.bf16.msra.mxu0 %v9711_v1  ;;  %3886 = vmatpush1.bf16.msra.mxu1 %v9714_v2  ;;  %v9801_v1 = vld [vmem:[#allocation6 + $0x960] ss:$16 sps:$4 sm:$0xff]   ;;  %v9804_v2 = vld [vmem:[#allocation6 + $0x968] ss:$16 sps:$4 sm:$0xff]  }
 0x160   :  { %3543 = vmatprep.subr.bf16.mxu0 %v9719_v3  ;;  %3887 = vmatprep.subr.bf16.mxu1 %v9722_v4  ;;  %v9809_v3 = vld [vmem:[#allocation6 + $0x984] ss:$16 sps:$4 sm:$0xff]   ;;  %v9812_v4 = vld [vmem:[#allocation6 + $0x98c] ss:$16 sps:$4 sm:$0xff]  }
 0x163   :  { %3544 = vmatpush1.bf16.msra.mxu0 %v9717_v5  ;;  %3888 = vmatpush1.bf16.msra.mxu1 %v9720_v6  ;;  %v9807_v5 = vld [vmem:[#allocation6 + $0x980] ss:$16 sps:$4 sm:$0xff]   ;;  %v9810_v6 = vld [vmem:[#allocation6 + $0x988] ss:$16 sps:$4 sm:$0xff]  }
 0x164   :  { %3545 = vmatprep.subr.bf16.mxu0 %v9725_v7  ;;  %3889 = vmatprep.subr.bf16.mxu1 %v9728_v8  ;;  %v9815_v7 = vld [vmem:[#allocation6 + $0x9a4] ss:$16 sps:$4 sm:$0xff]   ;;  %v9818_v8 = vld [vmem:[#allocation6 + $0x9ac] ss:$16 sps:$4 sm:$0xff]  }
 0x167   :  { %3546 = vmatpush1.bf16.msra.mxu0 %v9723_v9  ;;  %3890 = vmatpush1.bf16.msra.mxu1 %v9726_v10  ;;  %v9813_v9 = vld [vmem:[#allocation6 + $0x9a0] ss:$16 sps:$4 sm:$0xff]   ;;  %v9816_v10 = vld [vmem:[#allocation6 + $0x9a8] ss:$16 sps:$4 sm:$0xff]  }
 0x168   :  { %3547 = vmatprep.subr.bf16.mxu0 %v9731_v11  ;;  %3891 = vmatprep.subr.bf16.mxu1 %v9734_v12  ;;  %v9821_v11 = vld [vmem:[#allocation6 + $0x9c4] ss:$16 sps:$4 sm:$0xff]   ;;  %v9824_v12 = vld [vmem:[#allocation6 + $0x9cc] ss:$16 sps:$4 sm:$0xff]  }
 0x16b   :  { %3548 = vmatpush1.bf16.msra.mxu0 %v9729_v13  ;;  %3892 = vmatpush1.bf16.msra.mxu1 %v9732_v16  ;;  %v9819_v13 = vld [vmem:[#allocation6 + $0x9c0] ss:$16 sps:$4 sm:$0xff]   ;;  %v9822_v16 = vld [vmem:[#allocation6 + $0x9c8] ss:$16 sps:$4 sm:$0xff]  }
 0x16c   :  { %3560 = vmatprep.subr.bf16.mxu0 %v9737_v17  ;;  %3904 = vmatprep.subr.bf16.mxu1 %v9740_v20  ;;  %v9827_v17 = vld [vmem:[#allocation6 + $0x9e4] ss:$16 sps:$4 sm:$0xff]   ;;  %v9830_v20 = vld [vmem:[#allocation6 + $0x9ec] ss:$16 sps:$4 sm:$0xff]  }
 0x16e   :  { %3550 = vmatmul.mubr.bf16.vlgmr.msra.gmra.mrb[0].mxu0 %v8215_v22  ;;  %3894 = vmatmul.mubr.bf16.vlgmr.msra.gmra.mrb[0].mxu1 %v8215_v22  ;;  %v9825_v22 = vld [vmem:[#allocation6 + $0x9e0] ss:$16 sps:$4 sm:$0xff]  }
 0x16f   :  { %3561 = vmatpush1.bf16.msra.mxu0 %v9735_v24  ;;  %3905 = vmatpush1.bf16.msra.mxu1 %v9738_v14  ;;  %v9828_v24 = vld [vmem:[#allocation6 + $0x9e8] ss:$16 sps:$4 sm:$0xff]   ;;  %v9833_v14 = vld [vmem:[#allocation6 + $0xa04] ss:$16 sps:$4 sm:$0xff]  }
 0x170   :  { %3562 = vmatprep.subr.bf16.mxu0 %v9743_v15  ;;  %3906 = vmatprep.subr.bf16.mxu1 %v9746_v25  ;;  %v9836_v15 = vld [vmem:[#allocation6 + $0xa0c] ss:$16 sps:$4 sm:$0xff]  }
 0x171   :  { %3592 = vmatprep.mubr.bf16.mxu0 %v8218_v26  ;;  %3936 = vmatprep.mubr.bf16.mxu1 %v8218_v26  ;;  %v10448_v25 = vld [vmem:[#allocation3 + $0x28] sm:$0xff] }
 0x172   :  { %v10450_v26 = vld [vmem:[#allocation3 + $0x68] sm:$0xff] }
 0x173   :  { %3563 = vmatpush1.bf16.msra.mxu0 %v9741_v27  ;;  %3907 = vmatpush1.bf16.msra.mxu1 %v9744_v28  ;;  %v8217_v27 = vcombine.low %v10440_v21, %v10444_v23  ;;  %v9831_v28 = vld [vmem:[#allocation6 + $0xa00] ss:$16 sps:$4 sm:$0xff]   ;;  %v9845_v21 = vld [vmem:[#allocation6 + $0xa44] ss:$16 sps:$4 sm:$0xff]   ;;  %v9848_v23 = vld [vmem:[#allocation6 + $0xa4c] ss:$16 sps:$4 sm:$0xff]  }
 0x174   :  { %3564 = vmatprep.subr.bf16.mxu0 %v9749_v18  ;;  %3908 = vmatprep.subr.bf16.mxu1 %v9752_v19  ;;  %v9834_v18 = vld [vmem:[#allocation6 + $0xa08] ss:$16 sps:$4 sm:$0xff]   ;;  %v9839_v19 = vld [vmem:[#allocation6 + $0xa24] ss:$16 sps:$4 sm:$0xff]  }
 0x177   :  { %3565 = vmatpush1.bf16.msra.mxu0 %v9747_v29  ;;  %3909 = vmatpush1.bf16.msra.mxu1 %v9750_v30  ;;  %v9842_v29 = vld [vmem:[#allocation6 + $0xa2c] ss:$16 sps:$4 sm:$0xff]   ;;  %v8220_v30 = vcombine.high %v10448_v25, %v10450_v26 }
 0x178   :  { %3566 = vmatprep.subr.bf16.mxu0 %v9755_v31  ;;  %3910 = vmatprep.subr.bf16.mxu1 %v9758_v32  ;;  %v9837_v31 = vld [vmem:[#allocation6 + $0xa20] ss:$16 sps:$4 sm:$0xff]   ;;  %v9840_v32 = vld [vmem:[#allocation6 + $0xa28] ss:$16 sps:$4 sm:$0xff]  }
 0x17b   :  { %3567 = vmatpush1.bf16.msra.mxu0 %v9753_v33  ;;  %3911 = vmatpush1.bf16.msra.mxu1 %v9756_v34  ;;  %v9843_v33 = vld [vmem:[#allocation6 + $0xa40] ss:$16 sps:$4 sm:$0xff]   ;;  %v9846_v34 = vld [vmem:[#allocation6 + $0xa48] ss:$16 sps:$4 sm:$0xff]  }
 0x17c   :  { %3568 = vmatprep.subr.bf16.mxu0 %v9761_v35  ;;  %3912 = vmatprep.subr.bf16.mxu1 %v9764_v36  ;;  %v9851_v35 = vld [vmem:[#allocation6 + $0xa64] ss:$16 sps:$4 sm:$0xff]   ;;  %v9854_v36 = vld [vmem:[#allocation6 + $0xa6c] ss:$16 sps:$4 sm:$0xff]  }
 0x17f   :  { %3569 = vmatpush1.bf16.msra.mxu0 %v9759_v37  ;;  %3913 = vmatpush1.bf16.msra.mxu1 %v9762_v38  ;;  %v9849_v37 = vld [vmem:[#allocation6 + $0xa60] ss:$16 sps:$4 sm:$0xff]   ;;  %v9852_v38 = vld [vmem:[#allocation6 + $0xa68] ss:$16 sps:$4 sm:$0xff]  }
 0x180   :  { %3570 = vmatprep.subr.bf16.mxu0 %v9767_v39  ;;  %3914 = vmatprep.subr.bf16.mxu1 %v9770_v40  ;;  %v9857_v39 = vld [vmem:[#allocation6 + $0xa84] ss:$16 sps:$4 sm:$0xff]   ;;  %v9860_v40 = vld [vmem:[#allocation6 + $0xa8c] ss:$16 sps:$4 sm:$0xff]  }
 0x183   :  { %3571 = vmatpush1.bf16.msra.mxu0 %v9765_v41  ;;  %3915 = vmatpush1.bf16.msra.mxu1 %v9768_v42  ;;  %v9855_v41 = vld [vmem:[#allocation6 + $0xa80] ss:$16 sps:$4 sm:$0xff]   ;;  %v9858_v42 = vld [vmem:[#allocation6 + $0xa88] ss:$16 sps:$4 sm:$0xff]  }
 0x184   :  { %3572 = vmatprep.subr.bf16.mxu0 %v9773_v43  ;;  %3916 = vmatprep.subr.bf16.mxu1 %v9776_v44  ;;  %v9863_v43 = vld [vmem:[#allocation6 + $0xaa4] ss:$16 sps:$4 sm:$0xff]   ;;  %v9866_v44 = vld [vmem:[#allocation6 + $0xaac] ss:$16 sps:$4 sm:$0xff]  }
 0x187   :  { %3573 = vmatpush1.bf16.msra.mxu0 %v9771_v45  ;;  %3917 = vmatpush1.bf16.msra.mxu1 %v9774_v46  ;;  %v9861_v45 = vld [vmem:[#allocation6 + $0xaa0] ss:$16 sps:$4 sm:$0xff]   ;;  %v9864_v46 = vld [vmem:[#allocation6 + $0xaa8] ss:$16 sps:$4 sm:$0xff]  }
 0x188   :  { %3574 = vmatprep.subr.bf16.mxu0 %v9779_v47  ;;  %3918 = vmatprep.subr.bf16.mxu1 %v9782_v48  ;;  %v9869_v47 = vld [vmem:[#allocation6 + $0xac4] ss:$16 sps:$4 sm:$0xff]   ;;  %v9872_v48 = vld [vmem:[#allocation6 + $0xacc] ss:$16 sps:$4 sm:$0xff]  }
 0x18b   :  { %3575 = vmatpush1.bf16.msra.mxu0 %v9777_v49  ;;  %3919 = vmatpush1.bf16.msra.mxu1 %v9780_v50  ;;  %v9867_v49 = vld [vmem:[#allocation6 + $0xac0] ss:$16 sps:$4 sm:$0xff]   ;;  %v9870_v50 = vld [vmem:[#allocation6 + $0xac8] ss:$16 sps:$4 sm:$0xff]  }
 0x18c   :  { %3576 = vmatprep.subr.bf16.mxu0 %v9785_v51  ;;  %3920 = vmatprep.subr.bf16.mxu1 %v9788_v52  ;;  %v9875_v51 = vld [vmem:[#allocation6 + $0xae4] ss:$16 sps:$4 sm:$0xff]   ;;  %v9878_v52 = vld [vmem:[#allocation6 + $0xaec] ss:$16 sps:$4 sm:$0xff]  }
 0x18f   :  { %3577 = vmatpush1.bf16.msra.mxu0 %v9783_v53  ;;  %3921 = vmatpush1.bf16.msra.mxu1 %v9786_v54  ;;  %v9873_v53 = vld [vmem:[#allocation6 + $0xae0] ss:$16 sps:$4 sm:$0xff]   ;;  %v9876_v54 = vld [vmem:[#allocation6 + $0xae8] ss:$16 sps:$4 sm:$0xff]  }
 0x190   :  { %3578 = vmatprep.subr.bf16.mxu0 %v9791_v55  ;;  %3922 = vmatprep.subr.bf16.mxu1 %v9794_v56  ;;  %v9881_v55 = vld [vmem:[#allocation6 + $0xb04] ss:$16 sps:$4 sm:$0xff]   ;;  %v9884_v56 = vld [vmem:[#allocation6 + $0xb0c] ss:$16 sps:$4 sm:$0xff]  }
 0x193   :  { %3579 = vmatpush1.bf16.msra.mxu0 %v9789_v57  ;;  %3923 = vmatpush1.bf16.msra.mxu1 %v9792_v58  ;;  %v9879_v57 = vld [vmem:[#allocation6 + $0xb00] ss:$16 sps:$4 sm:$0xff]   ;;  %v9882_v58 = vld [vmem:[#allocation6 + $0xb08] ss:$16 sps:$4 sm:$0xff]  }
 0x194   :  { %3580 = vmatprep.subr.bf16.mxu0 %v9797_v59  ;;  %3924 = vmatprep.subr.bf16.mxu1 %v9800_v60  ;;  %v9887_v59 = vld [vmem:[#allocation6 + $0xb24] ss:$16 sps:$4 sm:$0xff]   ;;  %v9890_v60 = vld [vmem:[#allocation6 + $0xb2c] ss:$16 sps:$4 sm:$0xff]  }
 0x197   :  { %3581 = vmatpush1.bf16.msra.mxu0 %v9795_v61  ;;  %3925 = vmatpush1.bf16.msra.mxu1 %v9798_v62  ;;  %v9885_v61 = vld [vmem:[#allocation6 + $0xb20] ss:$16 sps:$4 sm:$0xff]   ;;  %v9888_v62 = vld [vmem:[#allocation6 + $0xb28] ss:$16 sps:$4 sm:$0xff]  }
 0x198   :  { %3582 = vmatprep.subr.bf16.mxu0 %v9803_v63  ;;  %3926 = vmatprep.subr.bf16.mxu1 %v9806_v0  ;;  %v9893_v63 = vld [vmem:[#allocation6 + $0xb44] ss:$16 sps:$4 sm:$0xff]   ;;  %v9896_v0 = vld [vmem:[#allocation6 + $0xb4c] ss:$16 sps:$4 sm:$0xff]  }
 0x19b   :  { %3583 = vmatpush1.bf16.msra.mxu0 %v9801_v1  ;;  %3927 = vmatpush1.bf16.msra.mxu1 %v9804_v2  ;;  %v9891_v1 = vld [vmem:[#allocation6 + $0xb40] ss:$16 sps:$4 sm:$0xff]   ;;  %v9894_v2 = vld [vmem:[#allocation6 + $0xb48] ss:$16 sps:$4 sm:$0xff]  }
 0x19c   :  { %3584 = vmatprep.subr.bf16.mxu0 %v9809_v3  ;;  %3928 = vmatprep.subr.bf16.mxu1 %v9812_v4  ;;  %v9899_v3 = vld [vmem:[#allocation6 + $0xb64] ss:$16 sps:$4 sm:$0xff]   ;;  %v9902_v4 = vld [vmem:[#allocation6 + $0xb6c] ss:$16 sps:$4 sm:$0xff]  }
 0x19f   :  { %3585 = vmatpush1.bf16.msra.mxu0 %v9807_v5  ;;  %3929 = vmatpush1.bf16.msra.mxu1 %v9810_v6  ;;  %v9897_v5 = vld [vmem:[#allocation6 + $0xb60] ss:$16 sps:$4 sm:$0xff]   ;;  %v9900_v6 = vld [vmem:[#allocation6 + $0xb68] ss:$16 sps:$4 sm:$0xff]  }
 0x1a0   :  { %3586 = vmatprep.subr.bf16.mxu0 %v9815_v7  ;;  %3930 = vmatprep.subr.bf16.mxu1 %v9818_v8  ;;  %v9905_v7 = vld [vmem:[#allocation6 + $0xb84] ss:$16 sps:$4 sm:$0xff]   ;;  %v9908_v8 = vld [vmem:[#allocation6 + $0xb8c] ss:$16 sps:$4 sm:$0xff]  }
 0x1a3   :  { %3587 = vmatpush1.bf16.msra.mxu0 %v9813_v9  ;;  %3931 = vmatpush1.bf16.msra.mxu1 %v9816_v10  ;;  %v9903_v9 = vld [vmem:[#allocation6 + $0xb80] ss:$16 sps:$4 sm:$0xff]   ;;  %v9906_v10 = vld [vmem:[#allocation6 + $0xb88] ss:$16 sps:$4 sm:$0xff]  }
 0x1a4   :  { %3588 = vmatprep.subr.bf16.mxu0 %v9821_v11  ;;  %3932 = vmatprep.subr.bf16.mxu1 %v9824_v12  ;;  %v9911_v11 = vld [vmem:[#allocation6 + $0xba4] ss:$16 sps:$4 sm:$0xff]   ;;  %v9914_v12 = vld [vmem:[#allocation6 + $0xbac] ss:$16 sps:$4 sm:$0xff]  }
 0x1a7   :  { %3589 = vmatpush1.bf16.msra.mxu0 %v9819_v13  ;;  %3933 = vmatpush1.bf16.msra.mxu1 %v9822_v16  ;;  %v9909_v13 = vld [vmem:[#allocation6 + $0xba0] ss:$16 sps:$4 sm:$0xff]   ;;  %v9912_v16 = vld [vmem:[#allocation6 + $0xba8] ss:$16 sps:$4 sm:$0xff]  }
 0x1a8   :  { %3590 = vmatprep.subr.bf16.mxu0 %v9827_v17  ;;  %3934 = vmatprep.subr.bf16.mxu1 %v9830_v20  ;;  %v9917_v17 = vld [vmem:[#allocation6 + $0xbc4] ss:$16 sps:$4 sm:$0xff]   ;;  %v9920_v20 = vld [vmem:[#allocation6 + $0xbcc] ss:$16 sps:$4 sm:$0xff]  }
 0x1ab   :  { %3591 = vmatpush1.bf16.msra.mxu0 %v9825_v22  ;;  %3935 = vmatpush1.bf16.msra.mxu1 %v9828_v24  ;;  %v9915_v22 = vld [vmem:[#allocation6 + $0xbc0] ss:$16 sps:$4 sm:$0xff]   ;;  %v9918_v24 = vld [vmem:[#allocation6 + $0xbc8] ss:$16 sps:$4 sm:$0xff]  }
 0x1ac   :  { %3603 = vmatprep.subr.bf16.mxu0 %v9833_v14  ;;  %3947 = vmatprep.subr.bf16.mxu1 %v9836_v15  ;;  %v9923_v14 = vld [vmem:[#allocation6 + $0xbe4] ss:$16 sps:$4 sm:$0xff]   ;;  %v9926_v15 = vld [vmem:[#allocation6 + $0xbec] ss:$16 sps:$4 sm:$0xff]  }
 0x1ae   :  { %3593 = vmatmul.mubr.bf16.vlgmr.msra.gmra.mrb[0].mxu0 %v8217_v27  ;;  %3937 = vmatmul.mubr.bf16.vlgmr.msra.gmra.mrb[0].mxu1 %v8217_v27  ;;  %v9921_v27 = vld [vmem:[#allocation6 + $0xbe0] ss:$16 sps:$4 sm:$0xff]  }
 0x1af   :  { %3604 = vmatpush1.bf16.msra.mxu0 %v9831_v28  ;;  %3948 = vmatpush1.bf16.msra.mxu1 %v9834_v18  ;;  %v9924_v28 = vld [vmem:[#allocation6 + $0xbe8] ss:$16 sps:$4 sm:$0xff]   ;;  %v9929_v18 = vld [vmem:[#allocation6 + $0xc04] ss:$16 sps:$4 sm:$0xff]  }
 0x1b0   :  { %3605 = vmatprep.subr.bf16.mxu0 %v9839_v19  ;;  %3949 = vmatprep.subr.bf16.mxu1 %v9842_v29  ;;  %v9932_v19 = vld [vmem:[#allocation6 + $0xc0c] ss:$16 sps:$4 sm:$0xff]   ;;  %v8219_v29 = vcombine.low %v10448_v25, %v10450_v26  ;;  %v9933_v25 = vld [vmem:[#allocation6 + $0xc20] ss:$16 sps:$4 sm:$0xff]   ;;  %v9936_v26 = vld [vmem:[#allocation6 + $0xc28] ss:$16 sps:$4 sm:$0xff]  }
 0x1b1   :  { %3635 = vmatprep.mubr.bf16.mxu0 %v8220_v30  ;;  %3979 = vmatprep.mubr.bf16.mxu1 %v8220_v30  ;;  %v10458_v30 = vld [vmem:[#allocation3 + $0x30] sm:$0xff] }
 0x1b3   :  { %3606 = vmatpush1.bf16.msra.mxu0 %v9837_v31  ;;  %3950 = vmatpush1.bf16.msra.mxu1 %v9840_v32  ;;  %v10460_v31 = vld [vmem:[#allocation3 + $0x70] sm:$0xff] }
 0x1b4   :  { %3607 = vmatprep.subr.bf16.mxu0 %v9845_v21  ;;  %3951 = vmatprep.subr.bf16.mxu1 %v9848_v23  ;;  %v9927_v32 = vld [vmem:[#allocation6 + $0xc00] ss:$16 sps:$4 sm:$0xff]   ;;  %v9930_v21 = vld [vmem:[#allocation6 + $0xc08] ss:$16 sps:$4 sm:$0xff]   ;;  %v9935_v23 = vld [vmem:[#allocation6 + $0xc24] ss:$16 sps:$4 sm:$0xff]  }
 0x1b7   :  { %3608 = vmatpush1.bf16.msra.mxu0 %v9843_v33  ;;  %3952 = vmatpush1.bf16.msra.mxu1 %v9846_v34  ;;  %v9938_v33 = vld [vmem:[#allocation6 + $0xc2c] ss:$16 sps:$4 sm:$0xff]   ;;  %v8222_v34 = vcombine.high %v10458_v30, %v10460_v31 }
 0x1b8   :  { %3609 = vmatprep.subr.bf16.mxu0 %v9851_v35  ;;  %3953 = vmatprep.subr.bf16.mxu1 %v9854_v36  ;;  %v9941_v35 = vld [vmem:[#allocation6 + $0xc44] ss:$16 sps:$4 sm:$0xff]   ;;  %v9944_v36 = vld [vmem:[#allocation6 + $0xc4c] ss:$16 sps:$4 sm:$0xff]  }
 0x1bb   :  { %3610 = vmatpush1.bf16.msra.mxu0 %v9849_v37  ;;  %3954 = vmatpush1.bf16.msra.mxu1 %v9852_v38  ;;  %v9939_v37 = vld [vmem:[#allocation6 + $0xc40] ss:$16 sps:$4 sm:$0xff]   ;;  %v9942_v38 = vld [vmem:[#allocation6 + $0xc48] ss:$16 sps:$4 sm:$0xff]  }
 0x1bc   :  { %3611 = vmatprep.subr.bf16.mxu0 %v9857_v39  ;;  %3955 = vmatprep.subr.bf16.mxu1 %v9860_v40  ;;  %v9947_v39 = vld [vmem:[#allocation6 + $0xc64] ss:$16 sps:$4 sm:$0xff]   ;;  %v9950_v40 = vld [vmem:[#allocation6 + $0xc6c] ss:$16 sps:$4 sm:$0xff]  }
 0x1bf   :  { %3612 = vmatpush1.bf16.msra.mxu0 %v9855_v41  ;;  %3956 = vmatpush1.bf16.msra.mxu1 %v9858_v42  ;;  %v9945_v41 = vld [vmem:[#allocation6 + $0xc60] ss:$16 sps:$4 sm:$0xff]   ;;  %v9948_v42 = vld [vmem:[#allocation6 + $0xc68] ss:$16 sps:$4 sm:$0xff]  }
 0x1c0   :  { %3613 = vmatprep.subr.bf16.mxu0 %v9863_v43  ;;  %3957 = vmatprep.subr.bf16.mxu1 %v9866_v44  ;;  %v9953_v43 = vld [vmem:[#allocation6 + $0xc84] ss:$16 sps:$4 sm:$0xff]   ;;  %v9956_v44 = vld [vmem:[#allocation6 + $0xc8c] ss:$16 sps:$4 sm:$0xff]  }
 0x1c3   :  { %3614 = vmatpush1.bf16.msra.mxu0 %v9861_v45  ;;  %3958 = vmatpush1.bf16.msra.mxu1 %v9864_v46  ;;  %v9951_v45 = vld [vmem:[#allocation6 + $0xc80] ss:$16 sps:$4 sm:$0xff]   ;;  %v9954_v46 = vld [vmem:[#allocation6 + $0xc88] ss:$16 sps:$4 sm:$0xff]  }
 0x1c4   :  { %3615 = vmatprep.subr.bf16.mxu0 %v9869_v47  ;;  %3959 = vmatprep.subr.bf16.mxu1 %v9872_v48  ;;  %v9959_v47 = vld [vmem:[#allocation6 + $0xca4] ss:$16 sps:$4 sm:$0xff]   ;;  %v9962_v48 = vld [vmem:[#allocation6 + $0xcac] ss:$16 sps:$4 sm:$0xff]  }
 0x1c7   :  { %3616 = vmatpush1.bf16.msra.mxu0 %v9867_v49  ;;  %3960 = vmatpush1.bf16.msra.mxu1 %v9870_v50  ;;  %v9957_v49 = vld [vmem:[#allocation6 + $0xca0] ss:$16 sps:$4 sm:$0xff]   ;;  %v9960_v50 = vld [vmem:[#allocation6 + $0xca8] ss:$16 sps:$4 sm:$0xff]  }
 0x1c8   :  { %3617 = vmatprep.subr.bf16.mxu0 %v9875_v51  ;;  %3961 = vmatprep.subr.bf16.mxu1 %v9878_v52  ;;  %v9965_v51 = vld [vmem:[#allocation6 + $0xcc4] ss:$16 sps:$4 sm:$0xff]   ;;  %v9968_v52 = vld [vmem:[#allocation6 + $0xccc] ss:$16 sps:$4 sm:$0xff]  }
 0x1cb   :  { %3618 = vmatpush1.bf16.msra.mxu0 %v9873_v53  ;;  %3962 = vmatpush1.bf16.msra.mxu1 %v9876_v54  ;;  %v9963_v53 = vld [vmem:[#allocation6 + $0xcc0] ss:$16 sps:$4 sm:$0xff]   ;;  %v9966_v54 = vld [vmem:[#allocation6 + $0xcc8] ss:$16 sps:$4 sm:$0xff]  }
 0x1cc   :  { %3619 = vmatprep.subr.bf16.mxu0 %v9881_v55  ;;  %3963 = vmatprep.subr.bf16.mxu1 %v9884_v56  ;;  %v9971_v55 = vld [vmem:[#allocation6 + $0xce4] ss:$16 sps:$4 sm:$0xff]   ;;  %v9974_v56 = vld [vmem:[#allocation6 + $0xcec] ss:$16 sps:$4 sm:$0xff]  }
 0x1cf   :  { %3620 = vmatpush1.bf16.msra.mxu0 %v9879_v57  ;;  %3964 = vmatpush1.bf16.msra.mxu1 %v9882_v58  ;;  %v9969_v57 = vld [vmem:[#allocation6 + $0xce0] ss:$16 sps:$4 sm:$0xff]   ;;  %v9972_v58 = vld [vmem:[#allocation6 + $0xce8] ss:$16 sps:$4 sm:$0xff]  }
 0x1d0   :  { %3621 = vmatprep.subr.bf16.mxu0 %v9887_v59  ;;  %3965 = vmatprep.subr.bf16.mxu1 %v9890_v60  ;;  %v9977_v59 = vld [vmem:[#allocation6 + $0xd04] ss:$16 sps:$4 sm:$0xff]   ;;  %v9980_v60 = vld [vmem:[#allocation6 + $0xd0c] ss:$16 sps:$4 sm:$0xff]  }
 0x1d3   :  { %3622 = vmatpush1.bf16.msra.mxu0 %v9885_v61  ;;  %3966 = vmatpush1.bf16.msra.mxu1 %v9888_v62  ;;  %v9975_v61 = vld [vmem:[#allocation6 + $0xd00] ss:$16 sps:$4 sm:$0xff]   ;;  %v9978_v62 = vld [vmem:[#allocation6 + $0xd08] ss:$16 sps:$4 sm:$0xff]  }
 0x1d4   :  { %3623 = vmatprep.subr.bf16.mxu0 %v9893_v63  ;;  %3967 = vmatprep.subr.bf16.mxu1 %v9896_v0  ;;  %v9983_v63 = vld [vmem:[#allocation6 + $0xd24] ss:$16 sps:$4 sm:$0xff]   ;;  %v9986_v0 = vld [vmem:[#allocation6 + $0xd2c] ss:$16 sps:$4 sm:$0xff]  }
 0x1d7   :  { %3624 = vmatpush1.bf16.msra.mxu0 %v9891_v1  ;;  %3968 = vmatpush1.bf16.msra.mxu1 %v9894_v2  ;;  %v9981_v1 = vld [vmem:[#allocation6 + $0xd20] ss:$16 sps:$4 sm:$0xff]   ;;  %v9984_v2 = vld [vmem:[#allocation6 + $0xd28] ss:$16 sps:$4 sm:$0xff]  }
 0x1d8   :  { %3625 = vmatprep.subr.bf16.mxu0 %v9899_v3  ;;  %3969 = vmatprep.subr.bf16.mxu1 %v9902_v4  ;;  %v9989_v3 = vld [vmem:[#allocation6 + $0xd44] ss:$16 sps:$4 sm:$0xff]   ;;  %v9992_v4 = vld [vmem:[#allocation6 + $0xd4c] ss:$16 sps:$4 sm:$0xff]  }
 0x1db   :  { %3626 = vmatpush1.bf16.msra.mxu0 %v9897_v5  ;;  %3970 = vmatpush1.bf16.msra.mxu1 %v9900_v6  ;;  %v9987_v5 = vld [vmem:[#allocation6 + $0xd40] ss:$16 sps:$4 sm:$0xff]   ;;  %v9990_v6 = vld [vmem:[#allocation6 + $0xd48] ss:$16 sps:$4 sm:$0xff]  }
 0x1dc   :  { %3627 = vmatprep.subr.bf16.mxu0 %v9905_v7  ;;  %3971 = vmatprep.subr.bf16.mxu1 %v9908_v8  ;;  %v9995_v7 = vld [vmem:[#allocation6 + $0xd64] ss:$16 sps:$4 sm:$0xff]   ;;  %v9998_v8 = vld [vmem:[#allocation6 + $0xd6c] ss:$16 sps:$4 sm:$0xff]  }
 0x1df   :  { %3628 = vmatpush1.bf16.msra.mxu0 %v9903_v9  ;;  %3972 = vmatpush1.bf16.msra.mxu1 %v9906_v10  ;;  %v9993_v9 = vld [vmem:[#allocation6 + $0xd60] ss:$16 sps:$4 sm:$0xff]   ;;  %v9996_v10 = vld [vmem:[#allocation6 + $0xd68] ss:$16 sps:$4 sm:$0xff]  }
 0x1e0   :  { %3629 = vmatprep.subr.bf16.mxu0 %v9911_v11  ;;  %3973 = vmatprep.subr.bf16.mxu1 %v9914_v12  ;;  %v10001_v11 = vld [vmem:[#allocation6 + $0xd84] ss:$16 sps:$4 sm:$0xff]   ;;  %v10004_v12 = vld [vmem:[#allocation6 + $0xd8c] ss:$16 sps:$4 sm:$0xff]  }
 0x1e3   :  { %3630 = vmatpush1.bf16.msra.mxu0 %v9909_v13  ;;  %3974 = vmatpush1.bf16.msra.mxu1 %v9912_v16  ;;  %v9999_v13 = vld [vmem:[#allocation6 + $0xd80] ss:$16 sps:$4 sm:$0xff]   ;;  %v10002_v16 = vld [vmem:[#allocation6 + $0xd88] ss:$16 sps:$4 sm:$0xff]  }
 0x1e4   :  { %3631 = vmatprep.subr.bf16.mxu0 %v9917_v17  ;;  %3975 = vmatprep.subr.bf16.mxu1 %v9920_v20  ;;  %v10007_v17 = vld [vmem:[#allocation6 + $0xda4] ss:$16 sps:$4 sm:$0xff]   ;;  %v10010_v20 = vld [vmem:[#allocation6 + $0xdac] ss:$16 sps:$4 sm:$0xff]  }
 0x1e7   :  { %3632 = vmatpush1.bf16.msra.mxu0 %v9915_v22  ;;  %3976 = vmatpush1.bf16.msra.mxu1 %v9918_v24  ;;  %v10005_v22 = vld [vmem:[#allocation6 + $0xda0] ss:$16 sps:$4 sm:$0xff]   ;;  %v10008_v24 = vld [vmem:[#allocation6 + $0xda8] ss:$16 sps:$4 sm:$0xff]  }
 0x1e8   :  { %3633 = vmatprep.subr.bf16.mxu0 %v9923_v14  ;;  %3977 = vmatprep.subr.bf16.mxu1 %v9926_v15  ;;  %v10013_v14 = vld [vmem:[#allocation6 + $0xdc4] ss:$16 sps:$4 sm:$0xff]   ;;  %v10016_v15 = vld [vmem:[#allocation6 + $0xdcc] ss:$16 sps:$4 sm:$0xff]  }
 0x1eb   :  { %3634 = vmatpush1.bf16.msra.mxu0 %v9921_v27  ;;  %3978 = vmatpush1.bf16.msra.mxu1 %v9924_v28  ;;  %v10011_v27 = vld [vmem:[#allocation6 + $0xdc0] ss:$16 sps:$4 sm:$0xff]   ;;  %v10014_v28 = vld [vmem:[#allocation6 + $0xdc8] ss:$16 sps:$4 sm:$0xff]  }
 0x1ec   :  { %3646 = vmatprep.subr.bf16.mxu0 %v9929_v18  ;;  %3990 = vmatprep.subr.bf16.mxu1 %v9932_v19  ;;  %v10019_v18 = vld [vmem:[#allocation6 + $0xde4] ss:$16 sps:$4 sm:$0xff]   ;;  %v10022_v19 = vld [vmem:[#allocation6 + $0xdec] ss:$16 sps:$4 sm:$0xff]  }
 0x1ee   :  { %3636 = vmatmul.mubr.bf16.vlgmr.msra.gmra.mrb[0].mxu0 %v8219_v29  ;;  %3980 = vmatmul.mubr.bf16.vlgmr.msra.gmra.mrb[0].mxu1 %v8219_v29  ;;  %v10017_v29 = vld [vmem:[#allocation6 + $0xde0] ss:$16 sps:$4 sm:$0xff]  }
 0x1ef   :  { %3647 = vmatpush1.bf16.msra.mxu0 %v9927_v32  ;;  %3991 = vmatpush1.bf16.msra.mxu1 %v9930_v21  ;;  %v10020_v32 = vld [vmem:[#allocation6 + $0xde8] ss:$16 sps:$4 sm:$0xff]   ;;  %v10025_v21 = vld [vmem:[#allocation6 + $0xe04] ss:$16 sps:$4 sm:$0xff]  }
 0x1f0   :  { %3648 = vmatprep.subr.bf16.mxu0 %v9935_v23  ;;  %3992 = vmatprep.subr.bf16.mxu1 %v9938_v33  ;;  %v10028_v23 = vld [vmem:[#allocation6 + $0xe0c] ss:$16 sps:$4 sm:$0xff]   ;;  %v8221_v33 = vcombine.low %v10458_v30, %v10460_v31  ;;  %v10029_v30 = vld [vmem:[#allocation6 + $0xe20] ss:$16 sps:$4 sm:$0xff]   ;;  %v10032_v31 = vld [vmem:[#allocation6 + $0xe28] ss:$16 sps:$4 sm:$0xff]  }
 0x1f1   :  { %3678 = vmatprep.mubr.bf16.mxu0 %v8222_v34  ;;  %4022 = vmatprep.mubr.bf16.mxu1 %v8222_v34  ;;  %v10466_v34 = vld [vmem:[#allocation3 + $0x38] sm:$0xff] }
 0x1f3   :  { %3649 = vmatpush1.bf16.msra.mxu0 %v9933_v25  ;;  %3993 = vmatpush1.bf16.msra.mxu1 %v9936_v26  ;;  %v10468_v25 = vld [vmem:[#allocation3 + $0x78] sm:$0xff]  ;;  %v10023_v26 = vld [vmem:[#allocation6 + $0xe00] ss:$16 sps:$4 sm:$0xff]  }
 0x1f4   :  { %3650 = vmatprep.subr.bf16.mxu0 %v9941_v35  ;;  %3994 = vmatprep.subr.bf16.mxu1 %v9944_v36  ;;  %v10026_v35 = vld [vmem:[#allocation6 + $0xe08] ss:$16 sps:$4 sm:$0xff]   ;;  %v10031_v36 = vld [vmem:[#allocation6 + $0xe24] ss:$16 sps:$4 sm:$0xff]  }
 0x1f7   :  { %3651 = vmatpush1.bf16.msra.mxu0 %v9939_v37  ;;  %3995 = vmatpush1.bf16.msra.mxu1 %v9942_v38  ;;  %v10034_v37 = vld [vmem:[#allocation6 + $0xe2c] ss:$16 sps:$4 sm:$0xff]   ;;  %v8224_v38 = vcombine.high %v10466_v34, %v10468_v25 }
 0x1f8   :  { %3652 = vmatprep.subr.bf16.mxu0 %v9947_v39  ;;  %3996 = vmatprep.subr.bf16.mxu1 %v9950_v40  ;;  %v10037_v39 = vld [vmem:[#allocation6 + $0xe44] ss:$16 sps:$4 sm:$0xff]   ;;  %v10040_v40 = vld [vmem:[#allocation6 + $0xe4c] ss:$16 sps:$4 sm:$0xff]  }
 0x1fb   :  { %3653 = vmatpush1.bf16.msra.mxu0 %v9945_v41  ;;  %3997 = vmatpush1.bf16.msra.mxu1 %v9948_v42  ;;  %v10035_v41 = vld [vmem:[#allocation6 + $0xe40] ss:$16 sps:$4 sm:$0xff]   ;;  %v10038_v42 = vld [vmem:[#allocation6 + $0xe48] ss:$16 sps:$4 sm:$0xff]  }
 0x1fc   :  { %3654 = vmatprep.subr.bf16.mxu0 %v9953_v43  ;;  %3998 = vmatprep.subr.bf16.mxu1 %v9956_v44  ;;  %v10043_v43 = vld [vmem:[#allocation6 + $0xe64] ss:$16 sps:$4 sm:$0xff]   ;;  %v10046_v44 = vld [vmem:[#allocation6 + $0xe6c] ss:$16 sps:$4 sm:$0xff]  }
 0x1ff   :  { %3655 = vmatpush1.bf16.msra.mxu0 %v9951_v45  ;;  %3999 = vmatpush1.bf16.msra.mxu1 %v9954_v46  ;;  %v10041_v45 = vld [vmem:[#allocation6 + $0xe60] ss:$16 sps:$4 sm:$0xff]   ;;  %v10044_v46 = vld [vmem:[#allocation6 + $0xe68] ss:$16 sps:$4 sm:$0xff]  }
 0x200   :  { %3656 = vmatprep.subr.bf16.mxu0 %v9959_v47  ;;  %4000 = vmatprep.subr.bf16.mxu1 %v9962_v48  ;;  %v10049_v47 = vld [vmem:[#allocation6 + $0xe84] ss:$16 sps:$4 sm:$0xff]   ;;  %v10052_v48 = vld [vmem:[#allocation6 + $0xe8c] ss:$16 sps:$4 sm:$0xff]  }
 0x203   :  { %3657 = vmatpush1.bf16.msra.mxu0 %v9957_v49  ;;  %4001 = vmatpush1.bf16.msra.mxu1 %v9960_v50  ;;  %v10047_v49 = vld [vmem:[#allocation6 + $0xe80] ss:$16 sps:$4 sm:$0xff]   ;;  %v10050_v50 = vld [vmem:[#allocation6 + $0xe88] ss:$16 sps:$4 sm:$0xff]  }
 0x204   :  { %3658 = vmatprep.subr.bf16.mxu0 %v9965_v51  ;;  %4002 = vmatprep.subr.bf16.mxu1 %v9968_v52  ;;  %v10055_v51 = vld [vmem:[#allocation6 + $0xea4] ss:$16 sps:$4 sm:$0xff]   ;;  %v10058_v52 = vld [vmem:[#allocation6 + $0xeac] ss:$16 sps:$4 sm:$0xff]  }
 0x207   :  { %3659 = vmatpush1.bf16.msra.mxu0 %v9963_v53  ;;  %4003 = vmatpush1.bf16.msra.mxu1 %v9966_v54  ;;  %v10053_v53 = vld [vmem:[#allocation6 + $0xea0] ss:$16 sps:$4 sm:$0xff]   ;;  %v10056_v54 = vld [vmem:[#allocation6 + $0xea8] ss:$16 sps:$4 sm:$0xff]  }
 0x208   :  { %3660 = vmatprep.subr.bf16.mxu0 %v9971_v55  ;;  %4004 = vmatprep.subr.bf16.mxu1 %v9974_v56  ;;  %v10061_v55 = vld [vmem:[#allocation6 + $0xec4] ss:$16 sps:$4 sm:$0xff]   ;;  %v10064_v56 = vld [vmem:[#allocation6 + $0xecc] ss:$16 sps:$4 sm:$0xff]  }
 0x20b   :  { %3661 = vmatpush1.bf16.msra.mxu0 %v9969_v57  ;;  %4005 = vmatpush1.bf16.msra.mxu1 %v9972_v58  ;;  %v10059_v57 = vld [vmem:[#allocation6 + $0xec0] ss:$16 sps:$4 sm:$0xff]   ;;  %v10062_v58 = vld [vmem:[#allocation6 + $0xec8] ss:$16 sps:$4 sm:$0xff]  }
 0x20c   :  { %3662 = vmatprep.subr.bf16.mxu0 %v9977_v59  ;;  %4006 = vmatprep.subr.bf16.mxu1 %v9980_v60  ;;  %v10067_v59 = vld [vmem:[#allocation6 + $0xee4] ss:$16 sps:$4 sm:$0xff]   ;;  %v10070_v60 = vld [vmem:[#allocation6 + $0xeec] ss:$16 sps:$4 sm:$0xff]  }
 0x20f   :  { %3663 = vmatpush1.bf16.msra.mxu0 %v9975_v61  ;;  %4007 = vmatpush1.bf16.msra.mxu1 %v9978_v62  ;;  %v10065_v61 = vld [vmem:[#allocation6 + $0xee0] ss:$16 sps:$4 sm:$0xff]   ;;  %v10068_v62 = vld [vmem:[#allocation6 + $0xee8] ss:$16 sps:$4 sm:$0xff]  }
 0x210   :  { %3664 = vmatprep.subr.bf16.mxu0 %v9983_v63  ;;  %4008 = vmatprep.subr.bf16.mxu1 %v9986_v0  ;;  %v10073_v63 = vld [vmem:[#allocation6 + $0xf04] ss:$16 sps:$4 sm:$0xff]   ;;  %v10076_v0 = vld [vmem:[#allocation6 + $0xf0c] ss:$16 sps:$4 sm:$0xff]  }
 0x213   :  { %3665 = vmatpush1.bf16.msra.mxu0 %v9981_v1  ;;  %4009 = vmatpush1.bf16.msra.mxu1 %v9984_v2  ;;  %v10071_v1 = vld [vmem:[#allocation6 + $0xf00] ss:$16 sps:$4 sm:$0xff]   ;;  %v10074_v2 = vld [vmem:[#allocation6 + $0xf08] ss:$16 sps:$4 sm:$0xff]  }
 0x214   :  { %3666 = vmatprep.subr.bf16.mxu0 %v9989_v3  ;;  %4010 = vmatprep.subr.bf16.mxu1 %v9992_v4  ;;  %v10079_v3 = vld [vmem:[#allocation6 + $0xf24] ss:$16 sps:$4 sm:$0xff]   ;;  %v10082_v4 = vld [vmem:[#allocation6 + $0xf2c] ss:$16 sps:$4 sm:$0xff]  }
 0x217   :  { %3667 = vmatpush1.bf16.msra.mxu0 %v9987_v5  ;;  %4011 = vmatpush1.bf16.msra.mxu1 %v9990_v6  ;;  %v10077_v5 = vld [vmem:[#allocation6 + $0xf20] ss:$16 sps:$4 sm:$0xff]   ;;  %v10080_v6 = vld [vmem:[#allocation6 + $0xf28] ss:$16 sps:$4 sm:$0xff]  }
 0x218   :  { %3668 = vmatprep.subr.bf16.mxu0 %v9995_v7  ;;  %4012 = vmatprep.subr.bf16.mxu1 %v9998_v8  ;;  %v10085_v7 = vld [vmem:[#allocation6 + $0xf44] ss:$16 sps:$4 sm:$0xff]   ;;  %v10088_v8 = vld [vmem:[#allocation6 + $0xf4c] ss:$16 sps:$4 sm:$0xff]  }
 0x21b   :  { %3669 = vmatpush1.bf16.msra.mxu0 %v9993_v9  ;;  %4013 = vmatpush1.bf16.msra.mxu1 %v9996_v10  ;;  %v10083_v9 = vld [vmem:[#allocation6 + $0xf40] ss:$16 sps:$4 sm:$0xff]   ;;  %v10086_v10 = vld [vmem:[#allocation6 + $0xf48] ss:$16 sps:$4 sm:$0xff]  }
 0x21c   :  { %3670 = vmatprep.subr.bf16.mxu0 %v10001_v11  ;;  %4014 = vmatprep.subr.bf16.mxu1 %v10004_v12  ;;  %v10091_v11 = vld [vmem:[#allocation6 + $0xf64] ss:$16 sps:$4 sm:$0xff]   ;;  %v10094_v12 = vld [vmem:[#allocation6 + $0xf6c] ss:$16 sps:$4 sm:$0xff]  }
 0x21f   :  { %3671 = vmatpush1.bf16.msra.mxu0 %v9999_v13  ;;  %4015 = vmatpush1.bf16.msra.mxu1 %v10002_v16  ;;  %v10089_v13 = vld [vmem:[#allocation6 + $0xf60] ss:$16 sps:$4 sm:$0xff]   ;;  %v10092_v16 = vld [vmem:[#allocation6 + $0xf68] ss:$16 sps:$4 sm:$0xff]  }
 0x220   :  { %3672 = vmatprep.subr.bf16.mxu0 %v10007_v17  ;;  %4016 = vmatprep.subr.bf16.mxu1 %v10010_v20  ;;  %v10097_v17 = vld [vmem:[#allocation6 + $0xf84] ss:$16 sps:$4 sm:$0xff]   ;;  %v10100_v20 = vld [vmem:[#allocation6 + $0xf8c] ss:$16 sps:$4 sm:$0xff]  }
 0x223   :  { %3673 = vmatpush1.bf16.msra.mxu0 %v10005_v22  ;;  %4017 = vmatpush1.bf16.msra.mxu1 %v10008_v24  ;;  %v10095_v22 = vld [vmem:[#allocation6 + $0xf80] ss:$16 sps:$4 sm:$0xff]   ;;  %v10098_v24 = vld [vmem:[#allocation6 + $0xf88] ss:$16 sps:$4 sm:$0xff]  }
 0x224   :  { %3674 = vmatprep.subr.bf16.mxu0 %v10013_v14  ;;  %4018 = vmatprep.subr.bf16.mxu1 %v10016_v15  ;;  %v10103_v14 = vld [vmem:[#allocation6 + $0xfa4] ss:$16 sps:$4 sm:$0xff]   ;;  %v10106_v15 = vld [vmem:[#allocation6 + $0xfac] ss:$16 sps:$4 sm:$0xff]  }
 0x227   :  { %3675 = vmatpush1.bf16.msra.mxu0 %v10011_v27  ;;  %4019 = vmatpush1.bf16.msra.mxu1 %v10014_v28  ;;  %v10101_v27 = vld [vmem:[#allocation6 + $0xfa0] ss:$16 sps:$4 sm:$0xff]   ;;  %v10104_v28 = vld [vmem:[#allocation6 + $0xfa8] ss:$16 sps:$4 sm:$0xff]  }
 0x228   :  { %3676 = vmatprep.subr.bf16.mxu0 %v10019_v18  ;;  %4020 = vmatprep.subr.bf16.mxu1 %v10022_v19  ;;  %v10109_v18 = vld [vmem:[#allocation6 + $0xfc4] ss:$16 sps:$4 sm:$0xff]   ;;  %v10112_v19 = vld [vmem:[#allocation6 + $0xfcc] ss:$16 sps:$4 sm:$0xff]  }
 0x22b   :  { %3677 = vmatpush1.bf16.msra.mxu0 %v10017_v29  ;;  %4021 = vmatpush1.bf16.msra.mxu1 %v10020_v32  ;;  %v10107_v29 = vld [vmem:[#allocation6 + $0xfc0] ss:$16 sps:$4 sm:$0xff]   ;;  %v10110_v32 = vld [vmem:[#allocation6 + $0xfc8] ss:$16 sps:$4 sm:$0xff]  }
 0x22c   :  { %3689 = vmatprep.subr.bf16.mxu0 %v10025_v21  ;;  %4033 = vmatprep.subr.bf16.mxu1 %v10028_v23  ;;  %v10115_v21 = vld [vmem:[#allocation6 + $0xfe4] ss:$16 sps:$4 sm:$0xff]   ;;  %v10118_v23 = vld [vmem:[#allocation6 + $0xfec] ss:$16 sps:$4 sm:$0xff]  }
 0x22e   :  { %3679 = vmatmul.mubr.bf16.vlgmr.msra.gmra.mrb[0].mxu0 %v8221_v33  ;;  %4023 = vmatmul.mubr.bf16.vlgmr.msra.gmra.mrb[0].mxu1 %v8221_v33  ;;  %v10113_v33 = vld [vmem:[#allocation6 + $0xfe0] ss:$16 sps:$4 sm:$0xff]  }
 0x22f   :  { %3690 = vmatpush1.bf16.msra.mxu0 %v10023_v26  ;;  %4034 = vmatpush1.bf16.msra.mxu1 %v10026_v35  ;;  %v10116_v26 = vld [vmem:[#allocation6 + $0xfe8] ss:$16 sps:$4 sm:$0xff]   ;;  %v8223_v35 = vcombine.low %v10466_v34, %v10468_v25  ;;  %v4323_v25 = vld [vmem:[#allocation11 + $0xc8] sm:$0xff] }
 0x230   :  { %3691 = vmatprep.subr.bf16.mxu0 %v10031_v36  ;;  %4035 = vmatprep.subr.bf16.mxu1 %v10034_v37  ;;  %v4298_v36 = vld [vmem:[#allocation11] sm:$0xff] }
 0x231   :  { %3721 = vmatprep.mubr.bf16.mxu0 %v8224_v38  ;;  %4065 = vmatprep.mubr.bf16.mxu1 %v8224_v38  ;;  %v4306_v37 = vld [vmem:[#allocation11 + $0x40] sm:$0xff]  ;;  %v4299_v38 = vld [vmem:[#allocation11 + $0x8] sm:$0xff] }
 0x233   :  { %3692 = vmatpush1.bf16.msra.mxu0 %v10029_v30  ;;  %4036 = vmatpush1.bf16.msra.mxu1 %v10032_v31  ;;  %v8738_v30 = vcombine.high %v4298_v36, %v4306_v37  ;;  %v4307_v31 = vld [vmem:[#allocation11 + $0x48] sm:$0xff] }
 0x234   :  { %3693 = vmatprep.subr.bf16.mxu0 %v10037_v39  ;;  %4037 = vmatprep.subr.bf16.mxu1 %v10040_v40  ;;  %v8737_v39 = vcombine.low %v4298_v36, %v4306_v37  ;;  %v8739_v40 = vcombine.low %v4299_v38, %v4307_v31  ;;  %v4426_v36 = vld [vmem:[#allocation11 + $0x400] sm:$0xff] }
 0x235   :  { %v4434_v37 = vld [vmem:[#allocation11 + $0x440] sm:$0xff] }
 0x237   :  { %3694 = vmatpush1.bf16.msra.mxu0 %v10035_v41  ;;  %4038 = vmatpush1.bf16.msra.mxu1 %v10038_v42  ;;  %v8740_v41 = vcombine.high %v4299_v38, %v4307_v31  ;;  %v4314_v42 = vld [vmem:[#allocation11 + $0x80] sm:$0xff]  ;;  %v4427_v38 = vld [vmem:[#allocation11 + $0x408] sm:$0xff] }
 0x238   :  { %3695 = vmatprep.subr.bf16.mxu0 %v10043_v43  ;;  %4039 = vmatprep.subr.bf16.mxu1 %v10046_v44  ;;  %v4322_v43 = vld [vmem:[#allocation11 + $0xc0] sm:$0xff]  ;;  %v4315_v44 = vld [vmem:[#allocation11 + $0x88] sm:$0xff] }
 0x239   :  { %v8754_v34 = vcombine.high %v4314_v42, %v4322_v43  ;;  %v4435_v31 = vld [vmem:[#allocation11 + $0x448] sm:$0xff] }
 0x23b   :  { %3696 = vmatpush1.bf16.msra.mxu0 %v10041_v45  ;;  %4040 = vmatpush1.bf16.msra.mxu1 %v10044_v46  ;;  %v8753_v45 = vcombine.low %v4314_v42, %v4322_v43  ;;  %v8755_v46 = vcombine.low %v4315_v44, %v4323_v25  ;;  %v4442_v42 = vld [vmem:[#allocation11 + $0x480] sm:$0xff] }
 0x23c   :  { %3697 = vmatprep.subr.bf16.mxu0 %v10049_v47  ;;  %4041 = vmatprep.subr.bf16.mxu1 %v10052_v48  ;;  %v8756_v47 = vcombine.high %v4315_v44, %v4323_v25  ;;  %v4330_v48 = vld [vmem:[#allocation11 + $0x100] sm:$0xff]  ;;  %v4443_v44 = vld [vmem:[#allocation11 + $0x488] sm:$0xff] }
 0x23d   :  { %v4450_v43 = vld [vmem:[#allocation11 + $0x4c0] sm:$0xff]  ;;  %v4451_v25 = vld [vmem:[#allocation11 + $0x4c8] sm:$0xff] }
 0x23f   :  { %3698 = vmatpush1.bf16.msra.mxu0 %v10047_v49  ;;  %4042 = vmatpush1.bf16.msra.mxu1 %v10050_v50  ;;  %v4338_v49 = vld [vmem:[#allocation11 + $0x140] sm:$0xff]  ;;  %v4331_v50 = vld [vmem:[#allocation11 + $0x108] sm:$0xff] }
 0x240   :  { %3699 = vmatprep.subr.bf16.mxu0 %v10055_v51  ;;  %4043 = vmatprep.subr.bf16.mxu1 %v10058_v52  ;;  %v8770_v51 = vcombine.high %v4330_v48, %v4338_v49  ;;  %v4339_v52 = vld [vmem:[#allocation11 + $0x148] sm:$0xff] }
 0x243   :  { %3700 = vmatpush1.bf16.msra.mxu0 %v10053_v53  ;;  %4044 = vmatpush1.bf16.msra.mxu1 %v10056_v54  ;;  %v8769_v53 = vcombine.low %v4330_v48, %v4338_v49  ;;  %v8771_v54 = vcombine.low %v4331_v50, %v4339_v52  ;;  %v4458_v48 = vld [vmem:[#allocation11 + $0x500] sm:$0xff] }
 0x244   :  { %3701 = vmatprep.subr.bf16.mxu0 %v10061_v55  ;;  %4045 = vmatprep.subr.bf16.mxu1 %v10064_v56  ;;  %v8772_v55 = vcombine.high %v4331_v50, %v4339_v52  ;;  %v4346_v56 = vld [vmem:[#allocation11 + $0x180] sm:$0xff]  ;;  %v4459_v50 = vld [vmem:[#allocation11 + $0x508] sm:$0xff] }
 0x245   :  { %v4466_v49 = vld [vmem:[#allocation11 + $0x540] sm:$0xff]  ;;  %v4467_v52 = vld [vmem:[#allocation11 + $0x548] sm:$0xff] }
 0x247   :  { %3702 = vmatpush1.bf16.msra.mxu0 %v10059_v57  ;;  %4046 = vmatpush1.bf16.msra.mxu1 %v10062_v58  ;;  %v4354_v57 = vld [vmem:[#allocation11 + $0x1c0] sm:$0xff]  ;;  %v4347_v58 = vld [vmem:[#allocation11 + $0x188] sm:$0xff] }
 0x248   :  { %3703 = vmatprep.subr.bf16.mxu0 %v10067_v59  ;;  %4047 = vmatprep.subr.bf16.mxu1 %v10070_v60  ;;  %v8786_v59 = vcombine.high %v4346_v56, %v4354_v57  ;;  %v4355_v60 = vld [vmem:[#allocation11 + $0x1c8] sm:$0xff] }
 0x24b   :  { %3704 = vmatpush1.bf16.msra.mxu0 %v10065_v61  ;;  %4048 = vmatpush1.bf16.msra.mxu1 %v10068_v62  ;;  %v8785_v61 = vcombine.low %v4346_v56, %v4354_v57  ;;  %v8787_v62 = vcombine.low %v4347_v58, %v4355_v60  ;;  %v4474_v56 = vld [vmem:[#allocation11 + $0x580] sm:$0xff] }
 0x24c   :  { %3705 = vmatprep.subr.bf16.mxu0 %v10073_v63  ;;  %4049 = vmatprep.subr.bf16.mxu1 %v10076_v0  ;;  %v8788_v63 = vcombine.high %v4347_v58, %v4355_v60  ;;  %v4362_v0 = vld [vmem:[#allocation11 + $0x200] sm:$0xff]  ;;  %v4475_v58 = vld [vmem:[#allocation11 + $0x588] sm:$0xff] }
 0x24d   :  { %v4482_v57 = vld [vmem:[#allocation11 + $0x5c0] sm:$0xff]  ;;  %v4483_v60 = vld [vmem:[#allocation11 + $0x5c8] sm:$0xff] }
 0x24f   :  { %3706 = vmatpush1.bf16.msra.mxu0 %v10071_v1  ;;  %4050 = vmatpush1.bf16.msra.mxu1 %v10074_v2  ;;  %v4370_v1 = vld [vmem:[#allocation11 + $0x240] sm:$0xff]  ;;  %v4363_v2 = vld [vmem:[#allocation11 + $0x208] sm:$0xff] }
 0x250   :  { %3707 = vmatprep.subr.bf16.mxu0 %v10079_v3  ;;  %4051 = vmatprep.subr.bf16.mxu1 %v10082_v4  ;;  %v8802_v3 = vcombine.high %v4362_v0, %v4370_v1  ;;  %v4371_v4 = vld [vmem:[#allocation11 + $0x248] sm:$0xff] }
 0x253   :  { %3708 = vmatpush1.bf16.msra.mxu0 %v10077_v5  ;;  %4052 = vmatpush1.bf16.msra.mxu1 %v10080_v6  ;;  %v8801_v5 = vcombine.low %v4362_v0, %v4370_v1  ;;  %v8803_v6 = vcombine.low %v4363_v2, %v4371_v4  ;;  %v4490_v0 = vld [vmem:[#allocation11 + $0x600] sm:$0xff] }
 0x254   :  { %3709 = vmatprep.subr.bf16.mxu0 %v10085_v7  ;;  %4053 = vmatprep.subr.bf16.mxu1 %v10088_v8  ;;  %v8804_v7 = vcombine.high %v4363_v2, %v4371_v4  ;;  %v4378_v8 = vld [vmem:[#allocation11 + $0x280] sm:$0xff]  ;;  %v4491_v2 = vld [vmem:[#allocation11 + $0x608] sm:$0xff] }
 0x255   :  { %v4498_v1 = vld [vmem:[#allocation11 + $0x640] sm:$0xff]  ;;  %v4499_v4 = vld [vmem:[#allocation11 + $0x648] sm:$0xff] }
 0x257   :  { %3710 = vmatpush1.bf16.msra.mxu0 %v10083_v9  ;;  %4054 = vmatpush1.bf16.msra.mxu1 %v10086_v10  ;;  %v4386_v9 = vld [vmem:[#allocation11 + $0x2c0] sm:$0xff]  ;;  %v4379_v10 = vld [vmem:[#allocation11 + $0x288] sm:$0xff] }
 0x258   :  { %3711 = vmatprep.subr.bf16.mxu0 %v10091_v11  ;;  %4055 = vmatprep.subr.bf16.mxu1 %v10094_v12  ;;  %v8818_v11 = vcombine.high %v4378_v8, %v4386_v9  ;;  %v4387_v12 = vld [vmem:[#allocation11 + $0x2c8] sm:$0xff] }
 0x25b   :  { %3712 = vmatpush1.bf16.msra.mxu0 %v10089_v13  ;;  %4056 = vmatpush1.bf16.msra.mxu1 %v10092_v16  ;;  %v8817_v13 = vcombine.low %v4378_v8, %v4386_v9  ;;  %v8819_v16 = vcombine.low %v4379_v10, %v4387_v12  ;;  %v4506_v8 = vld [vmem:[#allocation11 + $0x680] sm:$0xff] }
 0x25c   :  { %3713 = vmatprep.subr.bf16.mxu0 %v10097_v17  ;;  %4057 = vmatprep.subr.bf16.mxu1 %v10100_v20  ;;  %v8820_v17 = vcombine.high %v4379_v10, %v4387_v12  ;;  %v4394_v20 = vld [vmem:[#allocation11 + $0x300] sm:$0xff]  ;;  %v4507_v10 = vld [vmem:[#allocation11 + $0x688] sm:$0xff] }
 0x25d   :  { %v4514_v9 = vld [vmem:[#allocation11 + $0x6c0] sm:$0xff]  ;;  %v4515_v12 = vld [vmem:[#allocation11 + $0x6c8] sm:$0xff] }
 0x25f   :  { %3714 = vmatpush1.bf16.msra.mxu0 %v10095_v22  ;;  %4058 = vmatpush1.bf16.msra.mxu1 %v10098_v24  ;;  %v4402_v22 = vld [vmem:[#allocation11 + $0x340] sm:$0xff]  ;;  %v4395_v24 = vld [vmem:[#allocation11 + $0x308] sm:$0xff] }
 0x260   :  { %3715 = vmatprep.subr.bf16.mxu0 %v10103_v14  ;;  %4059 = vmatprep.subr.bf16.mxu1 %v10106_v15  ;;  %v8834_v14 = vcombine.high %v4394_v20, %v4402_v22  ;;  %v4403_v15 = vld [vmem:[#allocation11 + $0x348] sm:$0xff] }
 0x263   :  { %3716 = vmatpush1.bf16.msra.mxu0 %v10101_v27  ;;  %4060 = vmatpush1.bf16.msra.mxu1 %v10104_v28  ;;  %v8833_v27 = vcombine.low %v4394_v20, %v4402_v22  ;;  %v8835_v28 = vcombine.low %v4395_v24, %v4403_v15  ;;  %v4522_v20 = vld [vmem:[#allocation11 + $0x700] sm:$0xff] }
 0x264   :  { %3717 = vmatprep.subr.bf16.mxu0 %v10109_v18  ;;  %4061 = vmatprep.subr.bf16.mxu1 %v10112_v19  ;;  %v8836_v18 = vcombine.high %v4395_v24, %v4403_v15  ;;  %v4410_v19 = vld [vmem:[#allocation11 + $0x380] sm:$0xff]  ;;  %v4523_v24 = vld [vmem:[#allocation11 + $0x708] sm:$0xff] }
 0x265   :  { %v4530_v22 = vld [vmem:[#allocation11 + $0x740] sm:$0xff]  ;;  %v4531_v15 = vld [vmem:[#allocation11 + $0x748] sm:$0xff] }
 0x267   :  { %3718 = vmatpush1.bf16.msra.mxu0 %v10107_v29  ;;  %4062 = vmatpush1.bf16.msra.mxu1 %v10110_v32  ;;  %v4418_v29 = vld [vmem:[#allocation11 + $0x3c0] sm:$0xff]  ;;  %v4411_v32 = vld [vmem:[#allocation11 + $0x388] sm:$0xff] }
 0x268   :  { %3719 = vmatprep.subr.bf16.mxu0 %v10115_v21  ;;  %4063 = vmatprep.subr.bf16.mxu1 %v10118_v23  ;;  %v8850_v21 = vcombine.high %v4410_v19, %v4418_v29  ;;  %v4419_v23 = vld [vmem:[#allocation11 + $0x3c8] sm:$0xff] }
 0x26b   :  { %3720 = vmatpush1.bf16.msra.mxu0 %v10113_v33  ;;  %4064 = vmatpush1.bf16.msra.mxu1 %v10116_v26  ;;  %v8849_v33 = vcombine.low %v4410_v19, %v4418_v29  ;;  %v8851_v26 = vcombine.low %v4411_v32, %v4419_v23  ;;  %v4538_v19 = vld [vmem:[#allocation11 + $0x780] sm:$0xff] }
 0x26c   :  { %7370 = vmatprep.subr.bf16.mxu0 %v8738_v30  ;;  %7456 = vmatprep.subr.bf16.mxu1 %v8740_v41  ;;  %v8866_v30 = vcombine.high %v4426_v36, %v4434_v37  ;;  %v8868_v41 = vcombine.high %v4427_v38, %v4435_v31  ;;  %v4546_v29 = vld [vmem:[#allocation11 + $0x7c0] sm:$0xff] }
 0x26e   :  { %3722 = vmatmul.mubr.bf16.vlgmr.msra.gmra.mrb[0].mxu0 %v8223_v35  ;;  %4066 = vmatmul.mubr.bf16.vlgmr.msra.gmra.mrb[0].mxu1 %v8223_v35  ;;  %v8852_v35 = vcombine.high %v4411_v32, %v4419_v23  ;;  %v4539_v32 = vld [vmem:[#allocation11 + $0x788] sm:$0xff] }
 0x26f   :  { %7371 = vmatpush1.bf16.msra.mxu0 %v8737_v39  ;;  %7457 = vmatpush1.bf16.msra.mxu1 %v8739_v40  ;;  %v8865_v39 = vcombine.low %v4426_v36, %v4434_v37  ;;  %v8867_v40 = vcombine.low %v4427_v38, %v4435_v31  ;;  %v4547_v23 = vld [vmem:[#allocation11 + $0x7c8] sm:$0xff]  ;;  %v10474_v36 = vld [vmem:[#allocation11 + $0x800] sm:$0xff] }
 0x270   :  { %7372 = vmatprep.subr.bf16.mxu0 %v8754_v34  ;;  %7458 = vmatprep.subr.bf16.mxu1 %v8756_v47  ;;  %v8882_v34 = vcombine.high %v4442_v42, %v4450_v43  ;;  %v8884_v47 = vcombine.high %v4443_v44, %v4451_v25  ;;  %v10476_v37 = vld [vmem:[#allocation11 + $0x840] sm:$0xff]  ;;  %v10478_v38 = vld [vmem:[#allocation11 + $0x808] sm:$0xff] }
 0x271   :  { %v10482_v31 = vld [vmem:[#allocation11 + $0x848] sm:$0xff] }
 0x273   :  { %7373 = vmatpush1.bf16.msra.mxu0 %v8753_v45  ;;  %7459 = vmatpush1.bf16.msra.mxu1 %v8755_v46  ;;  %v8881_v45 = vcombine.low %v4442_v42, %v4450_v43  ;;  %v8883_v46 = vcombine.low %v4443_v44, %v4451_v25 }
 0x274   :  { %7374 = vmatprep.subr.bf16.mxu0 %v8770_v51  ;;  %7460 = vmatprep.subr.bf16.mxu1 %v8772_v55  ;;  %v8898_v51 = vcombine.high %v4458_v48, %v4466_v49  ;;  %v8900_v55 = vcombine.high %v4459_v50, %v4467_v52 }
 0x277   :  { %7375 = vmatpush1.bf16.msra.mxu0 %v8769_v53  ;;  %7461 = vmatpush1.bf16.msra.mxu1 %v8771_v54  ;;  %v8897_v53 = vcombine.low %v4458_v48, %v4466_v49  ;;  %v8899_v54 = vcombine.low %v4459_v50, %v4467_v52 }
 0x278   :  { %7376 = vmatprep.subr.bf16.mxu0 %v8786_v59  ;;  %7462 = vmatprep.subr.bf16.mxu1 %v8788_v63  ;;  %v8914_v59 = vcombine.high %v4474_v56, %v4482_v57  ;;  %v8916_v63 = vcombine.high %v4475_v58, %v4483_v60 }
 0x27b   :  { %7377 = vmatpush1.bf16.msra.mxu0 %v8785_v61  ;;  %7463 = vmatpush1.bf16.msra.mxu1 %v8787_v62  ;;  %v8913_v61 = vcombine.low %v4474_v56, %v4482_v57  ;;  %v8915_v62 = vcombine.low %v4475_v58, %v4483_v60 }
 0x27c   :  { %7378 = vmatprep.subr.bf16.mxu0 %v8802_v3  ;;  %7464 = vmatprep.subr.bf16.mxu1 %v8804_v7  ;;  %v8930_v3 = vcombine.high %v4490_v0, %v4498_v1  ;;  %v8932_v7 = vcombine.high %v4491_v2, %v4499_v4 }
 0x27f   :  { %7379 = vmatpush1.bf16.msra.mxu0 %v8801_v5  ;;  %7465 = vmatpush1.bf16.msra.mxu1 %v8803_v6  ;;  %v8929_v5 = vcombine.low %v4490_v0, %v4498_v1  ;;  %v8931_v6 = vcombine.low %v4491_v2, %v4499_v4 }
 0x280   :  { %7380 = vmatprep.subr.bf16.mxu0 %v8818_v11  ;;  %7466 = vmatprep.subr.bf16.mxu1 %v8820_v17  ;;  %v8946_v11 = vcombine.high %v4506_v8, %v4514_v9  ;;  %v8948_v17 = vcombine.high %v4507_v10, %v4515_v12 }
 0x283   :  { %7381 = vmatpush1.bf16.msra.mxu0 %v8817_v13  ;;  %7467 = vmatpush1.bf16.msra.mxu1 %v8819_v16  ;;  %v8945_v13 = vcombine.low %v4506_v8, %v4514_v9  ;;  %v8947_v16 = vcombine.low %v4507_v10, %v4515_v12 }
 0x284   :  { %7382 = vmatprep.subr.bf16.mxu0 %v8834_v14  ;;  %7468 = vmatprep.subr.bf16.mxu1 %v8836_v18  ;;  %v8962_v14 = vcombine.high %v4522_v20, %v4530_v22  ;;  %v8964_v18 = vcombine.high %v4523_v24, %v4531_v15 }
 0x287   :  { %7383 = vmatpush1.bf16.msra.mxu0 %v8833_v27  ;;  %7469 = vmatpush1.bf16.msra.mxu1 %v8835_v28  ;;  %v8961_v27 = vcombine.low %v4522_v20, %v4530_v22  ;;  %v8963_v28 = vcombine.low %v4523_v24, %v4531_v15 }
 0x288   :  { %7384 = vmatprep.subr.bf16.mxu0 %v8850_v21  ;;  %7470 = vmatprep.subr.bf16.mxu1 %v8852_v35  ;;  %v8978_v21 = vcombine.high %v4538_v19, %v4546_v29  ;;  %v8980_v35 = vcombine.high %v4539_v32, %v4547_v23 }
 0x28b   :  { %7385 = vmatpush1.bf16.msra.mxu0 %v8849_v33  ;;  %7471 = vmatpush1.bf16.msra.mxu1 %v8851_v26  ;;  %v8977_v33 = vcombine.low %v4538_v19, %v4546_v29  ;;  %v8979_v26 = vcombine.low %v4539_v32, %v4547_v23 }
 0x28c   :  { %7386 = vmatprep.subr.bf16.mxu0 %v8866_v30  ;;  %7472 = vmatprep.subr.bf16.mxu1 %v8868_v41  ;;  %v8994_v30 = vcombine.high %v10474_v36, %v10476_v37  ;;  %v8996_v41 = vcombine.high %v10478_v38, %v10482_v31 }
 0x28f   :  { %7387 = vmatpush1.bf16.msra.mxu0 %v8865_v39  ;;  %7473 = vmatpush1.bf16.msra.mxu1 %v8867_v40  ;;  %v8993_v39 = vcombine.low %v10474_v36, %v10476_v37  ;;  %v8995_v40 = vcombine.low %v10478_v38, %v10482_v31 }
 0x290   :  { %7388 = vmatprep.subr.bf16.mxu0 %v8882_v34  ;;  %7474 = vmatprep.subr.bf16.mxu1 %v8884_v47 }
 0x293   :  { %7389 = vmatpush1.bf16.msra.mxu0 %v8881_v45  ;;  %7475 = vmatpush1.bf16.msra.mxu1 %v8883_v46 }
 0x294   :  { %7390 = vmatprep.subr.bf16.mxu0 %v8898_v51  ;;  %7476 = vmatprep.subr.bf16.mxu1 %v8900_v55 }
 0x297   :  { %7391 = vmatpush1.bf16.msra.mxu0 %v8897_v53  ;;  %7477 = vmatpush1.bf16.msra.mxu1 %v8899_v54 }
 0x298   :  { %7392 = vmatprep.subr.bf16.mxu0 %v8914_v59  ;;  %7478 = vmatprep.subr.bf16.mxu1 %v8916_v63 }
 0x29b   :  { %7393 = vmatpush1.bf16.msra.mxu0 %v8913_v61  ;;  %7479 = vmatpush1.bf16.msra.mxu1 %v8915_v62 }
 0x29c   :  { %7394 = vmatprep.subr.bf16.mxu0 %v8930_v3  ;;  %7480 = vmatprep.subr.bf16.mxu1 %v8932_v7 }
 0x29f   :  { %7395 = vmatpush1.bf16.msra.mxu0 %v8929_v5  ;;  %7481 = vmatpush1.bf16.msra.mxu1 %v8931_v6 }
 0x2a0   :  { %7396 = vmatprep.subr.bf16.mxu0 %v8946_v11  ;;  %7482 = vmatprep.subr.bf16.mxu1 %v8948_v17 }
 0x2a3   :  { %7397 = vmatpush1.bf16.msra.mxu0 %v8945_v13  ;;  %7483 = vmatpush1.bf16.msra.mxu1 %v8947_v16 }
 0x2a4   :  { %7398 = vmatprep.subr.bf16.mxu0 %v8962_v14  ;;  %7484 = vmatprep.subr.bf16.mxu1 %v8964_v18 }
 0x2a7   :  { %7399 = vmatpush1.bf16.msra.mxu0 %v8961_v27  ;;  %7485 = vmatpush1.bf16.msra.mxu1 %v8963_v28 }
 0x2a8   :  { %7400 = vmatprep.subr.bf16.mxu0 %v8978_v21  ;;  %7486 = vmatprep.subr.bf16.mxu1 %v8980_v35 }
 0x2ab   :  { %7401 = vmatpush1.bf16.msra.mxu0 %v8977_v33  ;;  %7487 = vmatpush1.bf16.msra.mxu1 %v8979_v26 }
 0x2ac   :  { %7413 = vmatprep.subr.bf16.mxu0 %v8994_v30  ;;  %7499 = vmatprep.subr.bf16.mxu1 %v8996_v41 }
 0x341   :  { %v3723_v42 = vpop.f32.mrb[0].mxu0  ;;  %v4067_v43 = vpop.f32.mrb[0].mxu1 }
 0x342   :  { %v3725_v44 = vpop.f32.mrb[1].mxu0  ;;  %v4069_v34 = vpop.f32.mrb[1].mxu1 }
 0x343   :  { %v3727_v25 = vpop.f32.mrb[2].mxu0  ;;  %v4071_v45 = vpop.f32.mrb[2].mxu1 }
 0x344   :  { %v4076_v46 = vadd.f32 %v3727_v25, %v3723_v42  ;;  %v4090_v47 = vadd.f32 %v4071_v45, %v4067_v43  ;;  %v3729_v48 = vpop.f32.mrb[3].mxu0  ;;  %v4073_v49 = vpop.f32.mrb[3].mxu1 }
 0x345   :  { %v4083_v50 = vadd.f32 %v3729_v48, %v3725_v44  ;;  %v4097_v51 = vadd.f32 %v4073_v49, %v4069_v34 }
 0x346   :  { %v4077_v52 = vrot.slane %v4076_v46, 4  ;;  %v4091_v53 = vrot.slane %v4090_v47, 4 }
 0x347   :  { %v4084_v54 = vrot.slane %v4083_v50, 4  ;;  %v4098_v55 = vrot.slane %v4097_v51, 4 }
 0x348   :  { %v4078_v56 = vadd.f32 %v4077_v52, %v4076_v46  ;;  %v4092_v57 = vadd.f32 %v4091_v53, %v4090_v47 }
 0x349   :  { %v4085_v58 = vadd.f32 %v4084_v54, %v4083_v50  ;;  %v4099_v59 = vadd.f32 %v4098_v55, %v4097_v51 }
 0x34a   :  { %v4079_v60 = vrot.slane %v4078_v56, 2  ;;  %v4093_v61 = vrot.slane %v4092_v57, 2 }
 0x34b   :  { %v4086_v62 = vrot.slane %v4085_v58, 2  ;;  %v4100_v63 = vrot.slane %v4099_v59, 2 }
 0x34c   :  { %v4080_v0 = vadd.f32 %v4079_v60, %v4078_v56  ;;  %v4094_v1 = vadd.f32 %v4093_v61, %v4092_v57 }
 0x34d   :  { %v4087_v2 = vadd.f32 %v4086_v62, %v4085_v58  ;;  %v4101_v3 = vadd.f32 %v4100_v63, %v4099_v59 }
 0x34e   :  { %v4081_v4 = vrot.slane %v4080_v0, 1  ;;  %v4095_v5 = vrot.slane %v4094_v1, 1 }
 0x34f   :  { %v4088_v6 = vrot.slane %v4087_v2, 1  ;;  %v4102_v7 = vrot.slane %v4101_v3, 1 }
 0x350   :  { %v4082_v8 = vadd.f32 %v4081_v4, %v4080_v0  ;;  %v4096_v9 = vadd.f32 %v4095_v5, %v4094_v1 }
 0x351   :  { %v4089_v10 = vadd.f32 %v4088_v6, %v4087_v2  ;;  %v4103_v11 = vadd.f32 %v4102_v7, %v4101_v3 }
 0x352   :  { %v4104_v12 = vmul.f32 0.0625, %v4082_v8  ;;  %v4106_v13 = vmul.f32 0.0625, %v4096_v9 }
 0x353   :  { %v4105_v16 = vmul.f32 0.0625, %v4089_v10  ;;  %v4107_v17 = vmul.f32 0.0625, %v4103_v11  ;;  %v108_v10 = vlaneseq  ;;  %v10301_v11 = vmov 1966171168  }
 0x354   :  { %v10490_v20 = vsub.f32 %v3723_v42, %v4104_v12  ;;  %v10492_v22 = vsub.f32 %v3727_v25, %v4104_v12  ;;  %v10494_v24 = vsub.f32 %v4067_v43, %v4106_v13  ;;  %v10496_v14 = vsub.f32 %v4071_v45, %v4106_v13 }
 0x355   :  { %v10498_v15 = vsub.f32 %v3725_v44, %v4105_v16  ;;  %v10500_v27 = vsub.f32 %v3729_v48, %v4105_v16  ;;  %v10502_v28 = vsub.f32 %v4069_v34, %v4107_v17  ;;  %v10504_v18 = vsub.f32 %v4073_v49, %v4107_v17 }
 0x356   :  { %v4116_v19 = vmul.f32 %v10490_v20, %v10490_v20  ;;  %v4120_v29 = vmul.f32 %v10492_v22, %v10492_v22  ;;  %v4118_v32 = vmul.f32 %v10494_v24, %v10494_v24  ;;  %v4122_v21 = vmul.f32 %v10496_v14, %v10496_v14 }
 0x357   :  { %v4117_v23 = vmul.f32 %v10498_v15, %v10498_v15  ;;  %v4121_v33 = vmul.f32 %v10500_v27, %v10500_v27  ;;  %v4119_v26 = vmul.f32 %v10502_v28, %v10502_v28  ;;  %v4123_v35 = vmul.f32 %v10504_v18, %v10504_v18 }
 0x358   :  { %v4124_v30 = vadd.f32 %v4120_v29, %v4116_v19  ;;  %v4138_v41 = vadd.f32 %v4122_v21, %v4118_v32  ;;  %v4172_v12 = vunpack.c.l.s4 %v10301_v11  ;;  %v10522_v13 = vshrl.u32 %v108_v10, 7  ;;  %v4571_v10 = vld [vmem:[#allocation11 + $0x888] sm:$0xff] }
 0x359   :  { %v4131_v42 = vadd.f32 %v4121_v33, %v4117_v23  ;;  %v4145_v43 = vadd.f32 %v4123_v35, %v4119_v26 }
 0x35a   :  { %v4125_v44 = vrot.slane %v4124_v30, 4  ;;  %v4139_v34 = vrot.slane %v4138_v41, 4  ;;  %v4173_v16 = vunpack.c.0.s8 %v4172_v12 }
 0x35b   :  { %v4132_v25 = vrot.slane %v4131_v42, 4  ;;  %v4146_v45 = vrot.slane %v4145_v43, 4 }
 0x35c   :  { %v4126_v46 = vadd.f32 %v4125_v44, %v4124_v30  ;;  %v4140_v47 = vadd.f32 %v4139_v34, %v4138_v41  ;;  %v4176_v29 = vsub.s32 %v4173_v16, %v10522_v13  ;;  %v10526_v41 = vsub.s32 0, %v10522_v13 }
 0x35d   :  { %v4133_v48 = vadd.f32 %v4132_v25, %v4131_v42  ;;  %v4147_v49 = vadd.f32 %v4146_v45, %v4145_v43  ;;  %v4156_v42 = vld [vmem:[#allocation8] sm:$0xf]  ;;  %v10529_v43 = vsub.s32 1, %v10522_v13  ;;  %v10532_v44 = vsub.s32 2, %v10522_v13  ;;  %v4224_v45 = vld [vmem:[#allocation9] sm:$0xf] }
 0x35e   :  { %v4127_v50 = vrot.slane %v4126_v46, 2  ;;  %v4141_v51 = vrot.slane %v4140_v47, 2  ;;  %v10535_v34 = vsub.s32 3, %v10522_v13 }
 0x35f   :  { %v4134_v52 = vrot.slane %v4133_v48, 2  ;;  %v4148_v53 = vrot.slane %v4147_v49, 2 }
 0x360   :  { %v4128_v54 = vadd.f32 %v4127_v50, %v4126_v46  ;;  %v4142_v55 = vadd.f32 %v4141_v51, %v4140_v47  ;;  %v4229_v47 = vrot.slane %v4224_v45, %v10526_v41  ;;  %v4241_v50 = vrot.slane %v4224_v45, %v10535_v34 }
 0x361   :  { %v4135_v56 = vadd.f32 %v4134_v52, %v4133_v48  ;;  %v4149_v57 = vadd.f32 %v4148_v53, %v4147_v49  ;;  %v4233_v48 = vrot.slane %v4224_v45, %v10529_v43  ;;  %v4237_v49 = vrot.slane %v4224_v45, %v10532_v44  ;;  %v4610_v45 = vld [vmem:[#allocation11 + $0x9c0] sm:$0xff] }
 0x362   :  { %v4129_v58 = vrot.slane %v4128_v54, 1  ;;  %v4143_v59 = vrot.slane %v4142_v55, 1 }
 0x363   :  { %v4136_v60 = vrot.slane %v4135_v56, 1  ;;  %v4150_v61 = vrot.slane %v4149_v57, 1 }
 0x364   :  { %v4130_v62 = vadd.f32 %v4129_v58, %v4128_v54  ;;  %v4144_v63 = vadd.f32 %v4143_v59, %v4142_v55 }
 0x365   :  { %v4137_v0 = vadd.f32 %v4136_v60, %v4135_v56  ;;  %v4151_v1 = vadd.f32 %v4150_v61, %v4149_v57 }
 0x366   :  { %v4152_v2 = vmul.f32 0.0625, %v4130_v62  ;;  %v4154_v3 = vmul.f32 0.0625, %v4144_v63 }
 0x367   :  { %v4153_v4 = vmul.f32 0.0625, %v4137_v0  ;;  %v4155_v5 = vmul.f32 0.0625, %v4151_v1 }
 0x368   :  { %v4157_v6 = vadd.f32 1e-05, %v4152_v2  ;;  %v4159_v7 = vadd.f32 1e-05, %v4154_v3 }
 0x369   :  { %v4158_v8 = vadd.f32 1e-05, %v4153_v4  ;;  %v4160_v9 = vadd.f32 1e-05, %v4155_v5 }
 0x36a   :  { %10119 = vrsqrt.f32 %v4157_v6 }
 0x36b   :  { %10121 = vrsqrt.f32 %v4159_v7 }
 0x36c   :  { %10123 = vrsqrt.f32 %v4158_v8 }
 0x36d   :  { %10125 = vrsqrt.f32 %v4160_v9  ;;  %v4570_v9 = vld [vmem:[#allocation11 + $0x880] sm:$0xff] }
 0x374   :  { %v10120_v17 = vpop.eup %10119 }
 0x375   :  { %v10122_v19 = vpop.eup %10121 }
 0x376   :  { %v10124_v32 = vpop.eup %10123 }
 0x377   :  { %v10126_v21 = vpop.eup %10125  ;;  %v4169_v23 = vcombine.low %v10120_v17, %v10124_v32 }
 0x378   :  { %v4170_v33 = vcombine.low %v10122_v19, %v10126_v21  ;;  %v4586_v19 = vld [vmem:[#allocation11 + $0x900] sm:$0xff] }
 0x379   :  { %v4177_v26 = vrot.slane %v4169_v23, %v4176_v29  ;;  %v4594_v21 = vld [vmem:[#allocation11 + $0x940] sm:$0xff]  ;;  %v4587_v23 = vld [vmem:[#allocation11 + $0x908] sm:$0xff] }
 0x37a   :  { %v4184_v35 = vrot.slane %v4170_v33, %v4176_v29  ;;  %v4595_v33 = vld [vmem:[#allocation11 + $0x948] sm:$0xff]  ;;  %v9025_v36 = vcombine.low %v4586_v19, %v4594_v21 }
 0x37b   :  { %v9027_v37 = vcombine.low %v4587_v23, %v4595_v33 }
 0x37c   :  { %v4185_v30 = vcombine.low %v4177_v26, %v4184_v35 }
 0x37e   :  { %v4192_v25 = vrot.slane %v4185_v30, %v4176_v29  ;;  %v9026_v30 = vcombine.high %v4586_v19, %v4594_v21  ;;  %v4698_v21 = vld [vmem:[#allocation11 + $0xc80] sm:$0xff] }
 0x380   :  { %v4194_v46 = vmul.f32 %v4192_v25, %v4156_v42  ;;  %v9028_v42 = vcombine.high %v4587_v23, %v4595_v33  ;;  %v4602_v25 = vld [vmem:[#allocation11 + $0x980] sm:$0xff]  ;;  %v4699_v33 = vld [vmem:[#allocation11 + $0xc88] sm:$0xff] }
 0x381   :  { %v9042_v38 = vcombine.high %v4602_v25, %v4610_v45  ;;  %v4706_v23 = vld [vmem:[#allocation11 + $0xcc0] sm:$0xff] }
 0x382   :  { %v4199_v51 = vrot.slane %v4194_v46, %v10526_v41  ;;  %v4203_v52 = vrot.slane %v4194_v46, %v10529_v43  ;;  %v4207_v53 = vrot.slane %v4194_v46, %v10532_v44  ;;  %v4211_v54 = vrot.slane %v4194_v46, %v10535_v34  ;;  %v4603_v46 = vld [vmem:[#allocation11 + $0x988] sm:$0xff] }
 0x384   :  { %v4216_v55 = vmul.f32 %v4199_v51, %v10490_v20  ;;  %v4217_v56 = vmul.f32 %v4203_v52, %v10498_v15  ;;  %v4218_v57 = vmul.f32 %v4207_v53, %v10494_v24  ;;  %v4219_v58 = vmul.f32 %v4211_v54, %v10502_v28 }
 0x385   :  { %v4220_v59 = vmul.f32 %v4199_v51, %v10492_v22  ;;  %v4221_v60 = vmul.f32 %v4203_v52, %v10500_v27  ;;  %v4222_v61 = vmul.f32 %v4207_v53, %v10496_v14  ;;  %v4223_v62 = vmul.f32 %v4211_v54, %v10504_v18  ;;  %v4578_v14 = vld [vmem:[#allocation11 + $0x8c0] sm:$0xff]  ;;  %v4579_v18 = vld [vmem:[#allocation11 + $0x8c8] sm:$0xff] }
 0x386   :  { %v4246_v63 = vadd.f32 %v4229_v47, %v4216_v55  ;;  %v4247_v0 = vadd.f32 %v4233_v48, %v4217_v56  ;;  %v4248_v1 = vadd.f32 %v4237_v49, %v4218_v57  ;;  %v4249_v2 = vadd.f32 %v4241_v50, %v4219_v58  ;;  %v4634_v54 = vld [vmem:[#allocation11 + $0xa80] sm:$0xff]  ;;  %v4635_v56 = vld [vmem:[#allocation11 + $0xa88] sm:$0xff] }
 0x387   :  { %v4250_v3 = vadd.f32 %v4229_v47, %v4220_v59  ;;  %v4251_v20 = vadd.f32 %v4233_v48, %v4221_v60  ;;  %v4252_v4 = vadd.f32 %v4237_v49, %v4222_v61  ;;  %v4253_v15 = vadd.f32 %v4241_v50, %v4223_v62  ;;  %v4611_v47 = vld [vmem:[#allocation11 + $0x9c8] sm:$0xff]  ;;  %v4642_v55 = vld [vmem:[#allocation11 + $0xac0] sm:$0xff] }
 0x388   :  { %v4254_v5 = vmax.f32 %v4246_v63, 0.0  ;;  %v4255_v24 = vmax.f32 %v4247_v0, 0.0  ;;  %v4256_v6 = vmax.f32 %v4248_v1, 0.0  ;;  %v4257_v28 = vmax.f32 %v4249_v2, 0.0  ;;  %v4619_v48 = vld [vmem:[#allocation11 + $0xa08] sm:$0xff]  ;;  %v4650_v62 = vld [vmem:[#allocation11 + $0xb00] sm:$0xff] }
 0x389   :  { %v4258_v7 = vmax.f32 %v4250_v3, 0.0  ;;  %v4259_v22 = vmax.f32 %v4251_v20, 0.0  ;;  %v4260_v8 = vmax.f32 %v4252_v4, 0.0  ;;  %v4261_v27 = vmax.f32 %v4253_v15, 0.0  ;;  %v4627_v49 = vld [vmem:[#allocation11 + $0xa48] sm:$0xff]  ;;  %v4658_v63 = vld [vmem:[#allocation11 + $0xb40] sm:$0xff] }
 0x38a   :  { %v9010_v29 = vcombine.high %v4570_v9, %v4578_v14  ;;  %v9012_v32 = vcombine.high %v4571_v10, %v4579_v18  ;;  %v9009_v26 = vcombine.low %v4570_v9, %v4578_v14  ;;  %v9011_v35 = vcombine.low %v4571_v10, %v4579_v18  ;;  %v4643_v57 = vld [vmem:[#allocation11 + $0xac8] sm:$0xff]  ;;  %v4666_v15 = vld [vmem:[#allocation11 + $0xb80] sm:$0xff] }
 0x38b   :  { %v10553_v11 = vpack.c.bf16 %v4258_v7, %v4254_v5  ;;  %v10555_v12 = vpack.c.bf16 %v4259_v22, %v4255_v24  ;;  %v10557_v16 = vpack.c.bf16 %v4260_v8, %v4256_v6  ;;  %v10559_v17 = vpack.c.bf16 %v4261_v27, %v4257_v28  ;;  %v4651_v0 = vld [vmem:[#allocation11 + $0xb08] sm:$0xff]  ;;  %v4674_v5 = vld [vmem:[#allocation11 + $0xbc0] sm:$0xff] }
 0x38c   :  { %v9044_v31 = vcombine.high %v4603_v46, %v4611_v47  ;;  %v9041_v50 = vcombine.low %v4602_v25, %v4610_v45  ;;  %v9043_v51 = vcombine.low %v4603_v46, %v4611_v47  ;;  %v9060_v53 = vcombine.high %v4619_v48, %v4627_v49  ;;  %v4659_v1 = vld [vmem:[#allocation11 + $0xb48] sm:$0xff]  ;;  %v4682_v27 = vld [vmem:[#allocation11 + $0xc00] sm:$0xff] }
 0x38d   :  { %7402 = vmatprep.mubr.bf16.mxu0 %v10555_v12  ;;  %7488 = vmatprep.mubr.bf16.mxu1 %v10555_v12  ;;  %v9059_v59 = vcombine.low %v4619_v48, %v4627_v49  ;;  %v9074_v60 = vcombine.high %v4634_v54, %v4642_v55  ;;  %v9076_v61 = vcombine.high %v4635_v56, %v4643_v57  ;;  %v4667_v24 = vld [vmem:[#allocation11 + $0xb88] sm:$0xff]  ;;  %v4690_v9 = vld [vmem:[#allocation11 + $0xc40] sm:$0xff] }
 0x38e   :  { %7403 = vmatmul.mubr.bf16.vlgmr.msra.gmra.mrb[4].mxu0 %v10553_v11  ;;  %7489 = vmatmul.mubr.bf16.vlgmr.msra.gmra.mrb[4].mxu1 %v10553_v11  ;;  %v9073_v2 = vcombine.low %v4634_v54, %v4642_v55  ;;  %v9075_v3 = vcombine.low %v4635_v56, %v4643_v57  ;;  %v9090_v20 = vcombine.high %v4650_v62, %v4658_v63  ;;  %v4675_v6 = vld [vmem:[#allocation11 + $0xbc8] sm:$0xff]  ;;  %v4714_v45 = vld [vmem:[#allocation11 + $0xd00] sm:$0xff] }
 0x38f   :  { %7414 = vmatpush1.bf16.msra.mxu0 %v8993_v39  ;;  %7500 = vmatpush1.bf16.msra.mxu1 %v8995_v40  ;;  %v4618_v39 = vld [vmem:[#allocation11 + $0xa00] sm:$0xff]  ;;  %v9092_v4 = vcombine.high %v4651_v0, %v4659_v1  ;;  %v9089_v28 = vcombine.low %v4650_v62, %v4658_v63  ;;  %v9091_v7 = vcombine.low %v4651_v0, %v4659_v1  ;;  %v4683_v14 = vld [vmem:[#allocation11 + $0xc08] sm:$0xff] }
 0x390   :  { %7445 = vmatprep.mubr.bf16.mxu0 %v10559_v17  ;;  %7531 = vmatprep.mubr.bf16.mxu1 %v10559_v17  ;;  %v4626_v40 = vld [vmem:[#allocation11 + $0xa40] sm:$0xff]  ;;  %v9106_v22 = vcombine.high %v4666_v15, %v4674_v5  ;;  %v9108_v8 = vcombine.high %v4667_v24, %v4675_v6  ;;  %v4691_v10 = vld [vmem:[#allocation11 + $0xc48] sm:$0xff]  ;;  %v9105_v18 = vcombine.low %v4666_v15, %v4674_v5 }
 0x391   :  { %7415 = vmatprep.subr.bf16.mxu0 %v9010_v29  ;;  %7501 = vmatprep.subr.bf16.mxu1 %v9012_v32  ;;  %v9058_v52 = vcombine.high %v4618_v39, %v4626_v40  ;;  %v9057_v58 = vcombine.low %v4618_v39, %v4626_v40  ;;  %v9107_v19 = vcombine.low %v4667_v24, %v4675_v6  ;;  %v4722_v46 = vld [vmem:[#allocation11 + $0xd40] sm:$0xff]  ;;  %v4715_v47 = vld [vmem:[#allocation11 + $0xd08] sm:$0xff] }
 0x392   :  { %v9122_v29 = vcombine.high %v4682_v27, %v4690_v9  ;;  %v9124_v32 = vcombine.high %v4683_v14, %v4691_v10  ;;  %v4730_v40 = vld [vmem:[#allocation11 + $0xd80] sm:$0xff]  ;;  %v4731_v49 = vld [vmem:[#allocation11 + $0xd88] sm:$0xff] }
 0x393   :  { %7416 = vmatpush1.bf16.msra.mxu0 %v9009_v26  ;;  %7502 = vmatpush1.bf16.msra.mxu1 %v9011_v35  ;;  %v4707_v26 = vld [vmem:[#allocation11 + $0xcc8] sm:$0xff]  ;;  %v9121_v35 = vcombine.low %v4682_v27, %v4690_v9  ;;  %v4738_v48 = vld [vmem:[#allocation11 + $0xdc0] sm:$0xff] }
 0x394   :  { %7417 = vmatprep.subr.bf16.mxu0 %v9026_v30  ;;  %7503 = vmatprep.subr.bf16.mxu1 %v9028_v42  ;;  %v9123_v30 = vcombine.low %v4683_v14, %v4691_v10  ;;  %v9138_v42 = vcombine.high %v4698_v21, %v4706_v23  ;;  %v9140_v25 = vcombine.high %v4699_v33, %v4707_v26  ;;  %v4746_v55 = vld [vmem:[#allocation11 + $0xe00] sm:$0xff]  ;;  %v4747_v57 = vld [vmem:[#allocation11 + $0xe08] sm:$0xff] }
 0x395   :  { %v4754_v56 = vld [vmem:[#allocation11 + $0xe40] sm:$0xff]  ;;  %v4763_v1 = vld [vmem:[#allocation11 + $0xe88] sm:$0xff] }
 0x396   :  { %v4762_v63 = vld [vmem:[#allocation11 + $0xe80] sm:$0xff]  ;;  %v4779_v6 = vld [vmem:[#allocation11 + $0xf08] sm:$0xff] }
 0x397   :  { %7418 = vmatpush1.bf16.msra.mxu0 %v9025_v36  ;;  %7504 = vmatpush1.bf16.msra.mxu1 %v9027_v37  ;;  %v4723_v36 = vld [vmem:[#allocation11 + $0xd48] sm:$0xff]  ;;  %v9137_v37 = vcombine.low %v4698_v21, %v4706_v23  ;;  %v4770_v0 = vld [vmem:[#allocation11 + $0xec0] sm:$0xff]  ;;  %v4300_v23 = vld [vmem:[#allocation11 + $0x10] sm:$0xff] }
 0x398   :  { %7419 = vmatprep.subr.bf16.mxu0 %v9042_v38  ;;  %7505 = vmatprep.subr.bf16.mxu1 %v9044_v31  ;;  %v9139_v38 = vcombine.low %v4699_v33, %v4707_v26  ;;  %v9154_v31 = vcombine.high %v4714_v45, %v4722_v46  ;;  %v9156_v39 = vcombine.high %v4715_v47, %v4723_v36  ;;  %v4778_v5 = vld [vmem:[#allocation11 + $0xf00] sm:$0xff]  ;;  %v4795_v10 = vld [vmem:[#allocation11 + $0xf88] sm:$0xff]  ;;  %v4308_v33 = vld [vmem:[#allocation11 + $0x50] sm:$0xff] }
 0x399   :  { %v4786_v24 = vld [vmem:[#allocation11 + $0xf40] sm:$0xff]  ;;  %v4301_v26 = vld [vmem:[#allocation11 + $0x18] sm:$0xff] }
 0x39a   :  { %v4794_v9 = vld [vmem:[#allocation11 + $0xf80] sm:$0xff] }
 0x39b   :  { %7420 = vmatpush1.bf16.msra.mxu0 %v9041_v50  ;;  %7506 = vmatpush1.bf16.msra.mxu1 %v9043_v51  ;;  %v4739_v50 = vld [vmem:[#allocation11 + $0xdc8] sm:$0xff]  ;;  %v9153_v51 = vcombine.low %v4714_v45, %v4722_v46  ;;  %v4802_v14 = vld [vmem:[#allocation11 + $0xfc0] sm:$0xff]  ;;  %v4316_v46 = vld [vmem:[#allocation11 + $0x90] sm:$0xff] }
 0x39c   :  { %7421 = vmatprep.subr.bf16.mxu0 %v9058_v52  ;;  %7507 = vmatprep.subr.bf16.mxu1 %v9060_v53  ;;  %v9155_v52 = vcombine.low %v4715_v47, %v4723_v36  ;;  %v9170_v53 = vcombine.high %v4730_v40, %v4738_v48  ;;  %v9172_v54 = vcombine.high %v4731_v49, %v4739_v50  ;;  %v4324_v47 = vld [vmem:[#allocation11 + $0xd0] sm:$0xff]  ;;  %v4317_v36 = vld [vmem:[#allocation11 + $0x98] sm:$0xff] }
 0x39f   :  { %7422 = vmatpush1.bf16.msra.mxu0 %v9057_v58  ;;  %7508 = vmatpush1.bf16.msra.mxu1 %v9059_v59  ;;  %v4755_v58 = vld [vmem:[#allocation11 + $0xe48] sm:$0xff]  ;;  %v9169_v59 = vcombine.low %v4730_v40, %v4738_v48  ;;  %v4332_v48 = vld [vmem:[#allocation11 + $0x110] sm:$0xff] }
 0x3a0   :  { %7423 = vmatprep.subr.bf16.mxu0 %v9074_v60  ;;  %7509 = vmatprep.subr.bf16.mxu1 %v9076_v61  ;;  %v9171_v60 = vcombine.low %v4731_v49, %v4739_v50  ;;  %v9186_v61 = vcombine.high %v4746_v55, %v4754_v56  ;;  %v9188_v62 = vcombine.high %v4747_v57, %v4755_v58  ;;  %v4340_v49 = vld [vmem:[#allocation11 + $0x150] sm:$0xff]  ;;  %v4333_v50 = vld [vmem:[#allocation11 + $0x118] sm:$0xff] }
 0x3a3   :  { %7424 = vmatpush1.bf16.msra.mxu0 %v9073_v2  ;;  %7510 = vmatpush1.bf16.msra.mxu1 %v9075_v3  ;;  %v4771_v2 = vld [vmem:[#allocation11 + $0xec8] sm:$0xff]  ;;  %v9185_v3 = vcombine.low %v4746_v55, %v4754_v56  ;;  %v4348_v56 = vld [vmem:[#allocation11 + $0x190] sm:$0xff] }
 0x3a4   :  { %7425 = vmatprep.subr.bf16.mxu0 %v9090_v20  ;;  %7511 = vmatprep.subr.bf16.mxu1 %v9092_v4  ;;  %v9187_v20 = vcombine.low %v4747_v57, %v4755_v58  ;;  %v9202_v4 = vcombine.high %v4762_v63, %v4770_v0  ;;  %v9204_v15 = vcombine.high %v4763_v1, %v4771_v2  ;;  %v4356_v57 = vld [vmem:[#allocation11 + $0x1d0] sm:$0xff]  ;;  %v4349_v58 = vld [vmem:[#allocation11 + $0x198] sm:$0xff] }
 0x3a7   :  { %7426 = vmatpush1.bf16.msra.mxu0 %v9089_v28  ;;  %7512 = vmatpush1.bf16.msra.mxu1 %v9091_v7  ;;  %v4787_v28 = vld [vmem:[#allocation11 + $0xf48] sm:$0xff]  ;;  %v9201_v7 = vcombine.low %v4762_v63, %v4770_v0  ;;  %v4364_v0 = vld [vmem:[#allocation11 + $0x210] sm:$0xff] }
 0x3a8   :  { %7427 = vmatprep.subr.bf16.mxu0 %v9106_v22  ;;  %7513 = vmatprep.subr.bf16.mxu1 %v9108_v8  ;;  %v9203_v22 = vcombine.low %v4763_v1, %v4771_v2  ;;  %v9218_v8 = vcombine.high %v4778_v5, %v4786_v24  ;;  %v9220_v27 = vcombine.high %v4779_v6, %v4787_v28  ;;  %v4372_v1 = vld [vmem:[#allocation11 + $0x250] sm:$0xff]  ;;  %v4365_v2 = vld [vmem:[#allocation11 + $0x218] sm:$0xff] }
 0x3ab   :  { %7428 = vmatpush1.bf16.msra.mxu0 %v9105_v18  ;;  %7514 = vmatpush1.bf16.msra.mxu1 %v9107_v19  ;;  %v4803_v18 = vld [vmem:[#allocation11 + $0xfc8] sm:$0xff]  ;;  %v9217_v19 = vcombine.low %v4778_v5, %v4786_v24  ;;  %v4380_v24 = vld [vmem:[#allocation11 + $0x290] sm:$0xff] }
 0x3ac   :  { %7429 = vmatprep.subr.bf16.mxu0 %v9122_v29  ;;  %7515 = vmatprep.subr.bf16.mxu1 %v9124_v32  ;;  %v9219_v29 = vcombine.low %v4779_v6, %v4787_v28  ;;  %v9234_v32 = vcombine.high %v4794_v9, %v4802_v14  ;;  %v9236_v21 = vcombine.high %v4795_v10, %v4803_v18  ;;  %v4388_v6 = vld [vmem:[#allocation11 + $0x2d0] sm:$0xff]  ;;  %v4381_v28 = vld [vmem:[#allocation11 + $0x298] sm:$0xff] }
 0x3af   :  { %7430 = vmatpush1.bf16.msra.mxu0 %v9121_v35  ;;  %7516 = vmatpush1.bf16.msra.mxu1 %v9123_v30  ;;  %v4309_v35 = vld [vmem:[#allocation11 + $0x58] sm:$0xff]  ;;  %v9233_v30 = vcombine.low %v4794_v9, %v4802_v14  ;;  %v4396_v14 = vld [vmem:[#allocation11 + $0x310] sm:$0xff] }
 0x3b0   :  { %7431 = vmatprep.subr.bf16.mxu0 %v9138_v42  ;;  %7517 = vmatprep.subr.bf16.mxu1 %v9140_v25  ;;  %v9235_v42 = vcombine.low %v4795_v10, %v4803_v18  ;;  %v8742_v25 = vcombine.high %v4300_v23, %v4308_v33  ;;  %v8744_v45 = vcombine.high %v4301_v26, %v4309_v35  ;;  %v4404_v10 = vld [vmem:[#allocation11 + $0x350] sm:$0xff]  ;;  %v4397_v18 = vld [vmem:[#allocation11 + $0x318] sm:$0xff] }
 0x3b3   :  { %7432 = vmatpush1.bf16.msra.mxu0 %v9137_v37  ;;  %7518 = vmatpush1.bf16.msra.mxu1 %v9139_v38  ;;  %v4325_v37 = vld [vmem:[#allocation11 + $0xd8] sm:$0xff]  ;;  %v8741_v38 = vcombine.low %v4300_v23, %v4308_v33  ;;  %v4412_v33 = vld [vmem:[#allocation11 + $0x390] sm:$0xff] }
 0x3b4   :  { %7433 = vmatprep.subr.bf16.mxu0 %v9154_v31  ;;  %7519 = vmatprep.subr.bf16.mxu1 %v9156_v39  ;;  %v8743_v31 = vcombine.low %v4301_v26, %v4309_v35  ;;  %v8758_v39 = vcombine.high %v4316_v46, %v4324_v47  ;;  %v8760_v40 = vcombine.high %v4317_v36, %v4325_v37  ;;  %v4420_v26 = vld [vmem:[#allocation11 + $0x3d0] sm:$0xff]  ;;  %v4413_v35 = vld [vmem:[#allocation11 + $0x398] sm:$0xff] }
 0x3b7   :  { %7434 = vmatpush1.bf16.msra.mxu0 %v9153_v51  ;;  %7520 = vmatpush1.bf16.msra.mxu1 %v9155_v52  ;;  %v4341_v51 = vld [vmem:[#allocation11 + $0x158] sm:$0xff]  ;;  %v8757_v52 = vcombine.low %v4316_v46, %v4324_v47  ;;  %v4428_v47 = vld [vmem:[#allocation11 + $0x410] sm:$0xff] }
 0x3b8   :  { %7435 = vmatprep.subr.bf16.mxu0 %v9170_v53  ;;  %7521 = vmatprep.subr.bf16.mxu1 %v9172_v54  ;;  %v8759_v53 = vcombine.low %v4317_v36, %v4325_v37  ;;  %v8774_v54 = vcombine.high %v4332_v48, %v4340_v49  ;;  %v8776_v55 = vcombine.high %v4333_v50, %v4341_v51  ;;  %v4436_v36 = vld [vmem:[#allocation11 + $0x450] sm:$0xff]  ;;  %v4429_v37 = vld [vmem:[#allocation11 + $0x418] sm:$0xff] }
 0x3bb   :  { %7436 = vmatpush1.bf16.msra.mxu0 %v9169_v59  ;;  %7522 = vmatpush1.bf16.msra.mxu1 %v9171_v60  ;;  %v4357_v59 = vld [vmem:[#allocation11 + $0x1d8] sm:$0xff]  ;;  %v8773_v60 = vcombine.low %v4332_v48, %v4340_v49  ;;  %v4444_v49 = vld [vmem:[#allocation11 + $0x490] sm:$0xff] }
 0x3bc   :  { %7437 = vmatprep.subr.bf16.mxu0 %v9186_v61  ;;  %7523 = vmatprep.subr.bf16.mxu1 %v9188_v62  ;;  %v8775_v61 = vcombine.low %v4333_v50, %v4341_v51  ;;  %v8790_v62 = vcombine.high %v4348_v56, %v4356_v57  ;;  %v8792_v63 = vcombine.high %v4349_v58, %v4357_v59  ;;  %v4452_v50 = vld [vmem:[#allocation11 + $0x4d0] sm:$0xff]  ;;  %v4445_v51 = vld [vmem:[#allocation11 + $0x498] sm:$0xff] }
 0x3bf   :  { %7438 = vmatpush1.bf16.msra.mxu0 %v9185_v3  ;;  %7524 = vmatpush1.bf16.msra.mxu1 %v9187_v20  ;;  %v4373_v3 = vld [vmem:[#allocation11 + $0x258] sm:$0xff]  ;;  %v8789_v20 = vcombine.low %v4348_v56, %v4356_v57  ;;  %v4460_v57 = vld [vmem:[#allocation11 + $0x510] sm:$0xff] }
 0x3c0   :  { %7439 = vmatprep.subr.bf16.mxu0 %v9202_v4  ;;  %7525 = vmatprep.subr.bf16.mxu1 %v9204_v15  ;;  %v8791_v4 = vcombine.low %v4349_v58, %v4357_v59  ;;  %v8806_v15 = vcombine.high %v4364_v0, %v4372_v1  ;;  %v8808_v5 = vcombine.high %v4365_v2, %v4373_v3  ;;  %v4468_v58 = vld [vmem:[#allocation11 + $0x550] sm:$0xff]  ;;  %v4461_v59 = vld [vmem:[#allocation11 + $0x518] sm:$0xff] }
 0x3c3   :  { %7440 = vmatpush1.bf16.msra.mxu0 %v9201_v7  ;;  %7526 = vmatpush1.bf16.msra.mxu1 %v9203_v22  ;;  %v4389_v7 = vld [vmem:[#allocation11 + $0x2d8] sm:$0xff]  ;;  %v8805_v22 = vcombine.low %v4364_v0, %v4372_v1  ;;  %v4476_v1 = vld [vmem:[#allocation11 + $0x590] sm:$0xff] }
 0x3c4   :  { %7441 = vmatprep.subr.bf16.mxu0 %v9218_v8  ;;  %7527 = vmatprep.subr.bf16.mxu1 %v9220_v27  ;;  %v8807_v8 = vcombine.low %v4365_v2, %v4373_v3  ;;  %v8822_v27 = vcombine.high %v4380_v24, %v4388_v6  ;;  %v8824_v9 = vcombine.high %v4381_v28, %v4389_v7  ;;  %v4484_v2 = vld [vmem:[#allocation11 + $0x5d0] sm:$0xff]  ;;  %v4477_v3 = vld [vmem:[#allocation11 + $0x598] sm:$0xff] }
 0x3c7   :  { %7442 = vmatpush1.bf16.msra.mxu0 %v9217_v19  ;;  %7528 = vmatpush1.bf16.msra.mxu1 %v9219_v29  ;;  %v4405_v19 = vld [vmem:[#allocation11 + $0x358] sm:$0xff]  ;;  %v8821_v29 = vcombine.low %v4380_v24, %v4388_v6  ;;  %v4492_v6 = vld [vmem:[#allocation11 + $0x610] sm:$0xff] }
 0x3c8   :  { %7443 = vmatprep.subr.bf16.mxu0 %v9234_v32  ;;  %7529 = vmatprep.subr.bf16.mxu1 %v9236_v21  ;;  %v8823_v32 = vcombine.low %v4381_v28, %v4389_v7  ;;  %v8838_v21 = vcombine.high %v4396_v14, %v4404_v10  ;;  %v8840_v23 = vcombine.high %v4397_v18, %v4405_v19  ;;  %v4500_v28 = vld [vmem:[#allocation11 + $0x650] sm:$0xff]  ;;  %v4493_v7 = vld [vmem:[#allocation11 + $0x618] sm:$0xff] }
 0x3cb   :  { %7444 = vmatpush1.bf16.msra.mxu0 %v9233_v30  ;;  %7530 = vmatpush1.bf16.msra.mxu1 %v9235_v42  ;;  %v4421_v30 = vld [vmem:[#allocation11 + $0x3d8] sm:$0xff]  ;;  %v8837_v42 = vcombine.low %v4396_v14, %v4404_v10  ;;  %v4508_v10 = vld [vmem:[#allocation11 + $0x690] sm:$0xff] }
 0x3cc   :  { %7542 = vmatprep.subr.bf16.mxu0 %v8742_v25  ;;  %7628 = vmatprep.subr.bf16.mxu1 %v8744_v45  ;;  %v8839_v25 = vcombine.low %v4397_v18, %v4405_v19  ;;  %v8854_v45 = vcombine.high %v4412_v33, %v4420_v26  ;;  %v8856_v46 = vcombine.high %v4413_v35, %v4421_v30  ;;  %v4516_v18 = vld [vmem:[#allocation11 + $0x6d0] sm:$0xff]  ;;  %v4509_v19 = vld [vmem:[#allocation11 + $0x698] sm:$0xff] }
 0x3ce   :  { %7446 = vmatmul.mubr.bf16.vlgmr.msra.gmra.mrb[4].mxu0 %v10557_v16  ;;  %7532 = vmatmul.mubr.bf16.vlgmr.msra.gmra.mrb[4].mxu1 %v10557_v16 }
 0x3cf   :  { %7543 = vmatpush1.bf16.msra.mxu0 %v8741_v38  ;;  %7574 = vmatprep.mubr.bf16.mxu0 %v10555_v12  ;;  %v4437_v38 = vld [vmem:[#allocation11 + $0x458] sm:$0xff] }
 0x3d0   :  { %7629 = vmatpush1.bf16.msra.mxu1 %v8743_v31  ;;  %7660 = vmatprep.mubr.bf16.mxu1 %v10555_v12  ;;  %v8853_v31 = vcombine.low %v4412_v33, %v4420_v26  ;;  %v8872_v48 = vcombine.high %v4429_v37, %v4437_v38  ;;  %v4524_v26 = vld [vmem:[#allocation11 + $0x710] sm:$0xff] }
 0x3d1   :  { %7544 = vmatprep.subr.bf16.mxu0 %v8758_v39  ;;  %7630 = vmatprep.subr.bf16.mxu1 %v8760_v40  ;;  %v8855_v39 = vcombine.low %v4413_v35, %v4421_v30  ;;  %v8870_v40 = vcombine.high %v4428_v47, %v4436_v36  ;;  %v4532_v35 = vld [vmem:[#allocation11 + $0x750] sm:$0xff]  ;;  %v4525_v30 = vld [vmem:[#allocation11 + $0x718] sm:$0xff] }
 0x3d3   :  { %7545 = vmatpush1.bf16.msra.mxu0 %v8757_v52  ;;  %v4453_v52 = vld [vmem:[#allocation11 + $0x4d8] sm:$0xff] }
 0x3d4   :  { %7631 = vmatpush1.bf16.msra.mxu1 %v8759_v53  ;;  %7546 = vmatprep.subr.bf16.mxu0 %v8774_v54  ;;  %v8869_v53 = vcombine.low %v4428_v47, %v4436_v36  ;;  %v8871_v54 = vcombine.low %v4429_v37, %v4437_v38  ;;  %v8888_v56 = vcombine.high %v4445_v51, %v4453_v52  ;;  %v4540_v36 = vld [vmem:[#allocation11 + $0x790] sm:$0xff]  ;;  %v4541_v38 = vld [vmem:[#allocation11 + $0x798] sm:$0xff] }
 0x3d5   :  { %7632 = vmatprep.subr.bf16.mxu1 %v8776_v55  ;;  %v8886_v55 = vcombine.high %v4444_v49, %v4452_v50  ;;  %v4548_v37 = vld [vmem:[#allocation11 + $0x7d0] sm:$0xff] }
 0x3d7   :  { %7547 = vmatpush1.bf16.msra.mxu0 %v8773_v60  ;;  %v4469_v60 = vld [vmem:[#allocation11 + $0x558] sm:$0xff] }
 0x3d8   :  { %7633 = vmatpush1.bf16.msra.mxu1 %v8775_v61  ;;  %7548 = vmatprep.subr.bf16.mxu0 %v8790_v62  ;;  %v8885_v61 = vcombine.low %v4444_v49, %v4452_v50  ;;  %v8887_v62 = vcombine.low %v4445_v51, %v4453_v52  ;;  %v8904_v0 = vcombine.high %v4461_v59, %v4469_v60  ;;  %v4556_v50 = vld [vmem:[#allocation11 + $0x810] sm:$0xff]  ;;  %v4557_v52 = vld [vmem:[#allocation11 + $0x818] sm:$0xff] }
 0x3d9   :  { %7634 = vmatprep.subr.bf16.mxu1 %v8792_v63  ;;  %v8902_v63 = vcombine.high %v4460_v57, %v4468_v58  ;;  %v4564_v51 = vld [vmem:[#allocation11 + $0x850] sm:$0xff] }
 0x3db   :  { %7549 = vmatpush1.bf16.msra.mxu0 %v8789_v20  ;;  %v4485_v20 = vld [vmem:[#allocation11 + $0x5d8] sm:$0xff] }
 0x3dc   :  { %7635 = vmatpush1.bf16.msra.mxu1 %v8791_v4  ;;  %7550 = vmatprep.subr.bf16.mxu0 %v8806_v15  ;;  %v8901_v4 = vcombine.low %v4460_v57, %v4468_v58  ;;  %v8903_v15 = vcombine.low %v4461_v59, %v4469_v60  ;;  %v8920_v24 = vcombine.high %v4477_v3, %v4485_v20  ;;  %v4572_v58 = vld [vmem:[#allocation11 + $0x890] sm:$0xff] }
 0x3dd   :  { %7636 = vmatprep.subr.bf16.mxu1 %v8808_v5  ;;  %v8918_v5 = vcombine.high %v4476_v1, %v4484_v2  ;;  %v4580_v59 = vld [vmem:[#allocation11 + $0x8d0] sm:$0xff]  ;;  %v8997_v60 = vcombine.low %v4556_v50, %v4564_v51 }
 0x3df   :  { %7551 = vmatpush1.bf16.msra.mxu0 %v8805_v22  ;;  %v4501_v22 = vld [vmem:[#allocation11 + $0x658] sm:$0xff] }
 0x3e0   :  { %7637 = vmatpush1.bf16.msra.mxu1 %v8807_v8  ;;  %7552 = vmatprep.subr.bf16.mxu0 %v8822_v27  ;;  %v8917_v8 = vcombine.low %v4476_v1, %v4484_v2  ;;  %v8919_v27 = vcombine.low %v4477_v3, %v4485_v20  ;;  %v8936_v14 = vcombine.high %v4493_v7, %v4501_v22  ;;  %v4588_v1 = vld [vmem:[#allocation11 + $0x910] sm:$0xff]  ;;  %v4589_v20 = vld [vmem:[#allocation11 + $0x918] sm:$0xff] }
 0x3e1   :  { %7638 = vmatprep.subr.bf16.mxu1 %v8824_v9  ;;  %v8934_v9 = vcombine.high %v4492_v6, %v4500_v28  ;;  %v4596_v2 = vld [vmem:[#allocation11 + $0x950] sm:$0xff] }
 0x3e3   :  { %7553 = vmatpush1.bf16.msra.mxu0 %v8821_v29  ;;  %v4517_v29 = vld [vmem:[#allocation11 + $0x6d8] sm:$0xff] }
 0x3e4   :  { %7639 = vmatpush1.bf16.msra.mxu1 %v8823_v32  ;;  %7554 = vmatprep.subr.bf16.mxu0 %v8838_v21  ;;  %v8933_v32 = vcombine.low %v4492_v6, %v4500_v28  ;;  %v8935_v21 = vcombine.low %v4493_v7, %v4501_v22  ;;  %v8952_v33 = vcombine.high %v4509_v19, %v4517_v29  ;;  %v4604_v28 = vld [vmem:[#allocation11 + $0x990] sm:$0xff]  ;;  %v4605_v22 = vld [vmem:[#allocation11 + $0x998] sm:$0xff] }
 0x3e5   :  { %7640 = vmatprep.subr.bf16.mxu1 %v8840_v23  ;;  %v8950_v23 = vcombine.high %v4508_v10, %v4516_v18  ;;  %v4612_v7 = vld [vmem:[#allocation11 + $0x9d0] sm:$0xff] }
 0x3e7   :  { %7555 = vmatpush1.bf16.msra.mxu0 %v8837_v42  ;;  %v4533_v42 = vld [vmem:[#allocation11 + $0x758] sm:$0xff] }
 0x3e8   :  { %7641 = vmatpush1.bf16.msra.mxu1 %v8839_v25  ;;  %7556 = vmatprep.subr.bf16.mxu0 %v8854_v45  ;;  %v8949_v25 = vcombine.low %v4508_v10, %v4516_v18  ;;  %v8951_v45 = vcombine.low %v4509_v19, %v4517_v29  ;;  %v8968_v47 = vcombine.high %v4525_v30, %v4533_v42  ;;  %v4620_v18 = vld [vmem:[#allocation11 + $0xa10] sm:$0xff]  ;;  %v4621_v29 = vld [vmem:[#allocation11 + $0xa18] sm:$0xff] }
 0x3e9   :  { %7642 = vmatprep.subr.bf16.mxu1 %v8856_v46  ;;  %v8966_v46 = vcombine.high %v4524_v26, %v4532_v35  ;;  %v4628_v19 = vld [vmem:[#allocation11 + $0xa50] sm:$0xff] }
 0x3eb   :  { %7557 = vmatpush1.bf16.msra.mxu0 %v8853_v31  ;;  %v4549_v31 = vld [vmem:[#allocation11 + $0x7d8] sm:$0xff] }
 0x3ec   :  { %7643 = vmatpush1.bf16.msra.mxu1 %v8855_v39  ;;  %7558 = vmatprep.subr.bf16.mxu0 %v8870_v40  ;;  %v8965_v39 = vcombine.low %v4524_v26, %v4532_v35  ;;  %v8967_v40 = vcombine.low %v4525_v30, %v4533_v42  ;;  %v8984_v49 = vcombine.high %v4541_v38, %v4549_v31  ;;  %v4636_v35 = vld [vmem:[#allocation11 + $0xa90] sm:$0xff]  ;;  %v4637_v42 = vld [vmem:[#allocation11 + $0xa98] sm:$0xff] }
 0x3ed   :  { %7644 = vmatprep.subr.bf16.mxu1 %v8872_v48  ;;  %v8982_v48 = vcombine.high %v4540_v36, %v4548_v37  ;;  %v4644_v30 = vld [vmem:[#allocation11 + $0xad0] sm:$0xff] }
 0x3ef   :  { %7559 = vmatpush1.bf16.msra.mxu0 %v8869_v53  ;;  %v4565_v53 = vld [vmem:[#allocation11 + $0x858] sm:$0xff] }
 0x3f0   :  { %7645 = vmatpush1.bf16.msra.mxu1 %v8871_v54  ;;  %7560 = vmatprep.subr.bf16.mxu0 %v8886_v55  ;;  %v8981_v54 = vcombine.low %v4540_v36, %v4548_v37  ;;  %v8983_v55 = vcombine.low %v4541_v38, %v4549_v31  ;;  %v9000_v57 = vcombine.high %v4557_v52, %v4565_v53  ;;  %v4652_v37 = vld [vmem:[#allocation11 + $0xb10] sm:$0xff]  ;;  %v4653_v31 = vld [vmem:[#allocation11 + $0xb18] sm:$0xff] }
 0x3f1   :  { %7646 = vmatprep.subr.bf16.mxu1 %v8888_v56  ;;  %v8998_v56 = vcombine.high %v4556_v50, %v4564_v51  ;;  %v4660_v38 = vld [vmem:[#allocation11 + $0xb50] sm:$0xff] }
 0x3f2   :  { %v4668_v51 = vld [vmem:[#allocation11 + $0xb90] sm:$0xff] }
 0x3f3   :  { %7561 = vmatpush1.bf16.msra.mxu0 %v8885_v61  ;;  %v4573_v61 = vld [vmem:[#allocation11 + $0x898] sm:$0xff] }
 0x3f4   :  { %7647 = vmatpush1.bf16.msra.mxu1 %v8887_v62  ;;  %7562 = vmatprep.subr.bf16.mxu0 %v8902_v63  ;;  %v4581_v62 = vld [vmem:[#allocation11 + $0x8d8] sm:$0xff]  ;;  %v8999_v63 = vcombine.low %v4557_v52, %v4565_v53  ;;  %v4676_v52 = vld [vmem:[#allocation11 + $0xbd0] sm:$0xff] }
 0x3f5   :  { %7648 = vmatprep.subr.bf16.mxu1 %v8904_v0  ;;  %v9014_v0 = vcombine.high %v4572_v58, %v4580_v59  ;;  %v9016_v3 = vcombine.high %v4573_v61, %v4581_v62  ;;  %v4669_v53 = vld [vmem:[#allocation11 + $0xb98] sm:$0xff] }
 0x3f7   :  { %7563 = vmatpush1.bf16.msra.mxu0 %v8901_v4  ;;  %v4597_v4 = vld [vmem:[#allocation11 + $0x958] sm:$0xff] }
 0x3f8   :  { %7649 = vmatpush1.bf16.msra.mxu1 %v8903_v15  ;;  %7564 = vmatprep.subr.bf16.mxu0 %v8918_v5  ;;  %v9013_v15 = vcombine.low %v4572_v58, %v4580_v59  ;;  %v9015_v5 = vcombine.low %v4573_v61, %v4581_v62  ;;  %v9032_v6 = vcombine.high %v4589_v20, %v4597_v4  ;;  %v4684_v59 = vld [vmem:[#allocation11 + $0xc10] sm:$0xff]  ;;  %v4685_v61 = vld [vmem:[#allocation11 + $0xc18] sm:$0xff] }
 0x3f9   :  { %7650 = vmatprep.subr.bf16.mxu1 %v8920_v24  ;;  %v9030_v24 = vcombine.high %v4588_v1, %v4596_v2  ;;  %v4693_v62 = vld [vmem:[#allocation11 + $0xc58] sm:$0xff] }
 0x3fb   :  { %7565 = vmatpush1.bf16.msra.mxu0 %v8917_v8  ;;  %v4613_v8 = vld [vmem:[#allocation11 + $0x9d8] sm:$0xff] }
 0x3fc   :  { %7651 = vmatpush1.bf16.msra.mxu1 %v8919_v27  ;;  %7566 = vmatprep.subr.bf16.mxu0 %v8934_v9  ;;  %v9029_v27 = vcombine.low %v4588_v1, %v4596_v2  ;;  %v9031_v9 = vcombine.low %v4589_v20, %v4597_v4  ;;  %v9048_v10 = vcombine.high %v4605_v22, %v4613_v8  ;;  %v4708_v20 = vld [vmem:[#allocation11 + $0xcd0] sm:$0xff]  ;;  %v4701_v4 = vld [vmem:[#allocation11 + $0xc98] sm:$0xff] }
 0x3fd   :  { %7652 = vmatprep.subr.bf16.mxu1 %v8936_v14  ;;  %v9046_v14 = vcombine.high %v4604_v28, %v4612_v7  ;;  %v9128_v2 = vcombine.high %v4685_v61, %v4693_v62 }
 0x3ff   :  { %7567 = vmatpush1.bf16.msra.mxu0 %v8933_v32  ;;  %v4629_v32 = vld [vmem:[#allocation11 + $0xa58] sm:$0xff] }
 0x400   :  { %7653 = vmatpush1.bf16.msra.mxu1 %v8935_v21  ;;  %7568 = vmatprep.subr.bf16.mxu0 %v8950_v23  ;;  %v9045_v21 = vcombine.low %v4604_v28, %v4612_v7  ;;  %v9047_v23 = vcombine.low %v4605_v22, %v4613_v8  ;;  %v9064_v26 = vcombine.high %v4621_v29, %v4629_v32  ;;  %v4716_v7 = vld [vmem:[#allocation11 + $0xd10] sm:$0xff]  ;;  %v4717_v8 = vld [vmem:[#allocation11 + $0xd18] sm:$0xff] }
 0x401   :  { %7654 = vmatprep.subr.bf16.mxu1 %v8952_v33  ;;  %v9062_v33 = vcombine.high %v4620_v18, %v4628_v19  ;;  %v4724_v22 = vld [vmem:[#allocation11 + $0xd50] sm:$0xff] }
 0x403   :  { %7569 = vmatpush1.bf16.msra.mxu0 %v8949_v25  ;;  %v4645_v25 = vld [vmem:[#allocation11 + $0xad8] sm:$0xff] }
 0x404   :  { %7655 = vmatpush1.bf16.msra.mxu1 %v8951_v45  ;;  %7570 = vmatprep.subr.bf16.mxu0 %v8966_v46  ;;  %v9061_v45 = vcombine.low %v4620_v18, %v4628_v19  ;;  %v9063_v46 = vcombine.low %v4621_v29, %v4629_v32  ;;  %v9080_v36 = vcombine.high %v4637_v42, %v4645_v25  ;;  %v4732_v19 = vld [vmem:[#allocation11 + $0xd90] sm:$0xff]  ;;  %v4733_v32 = vld [vmem:[#allocation11 + $0xd98] sm:$0xff] }
 0x405   :  { %7656 = vmatprep.subr.bf16.mxu1 %v8968_v47  ;;  %v9078_v47 = vcombine.high %v4636_v35, %v4644_v30  ;;  %v4740_v29 = vld [vmem:[#allocation11 + $0xdd0] sm:$0xff] }
 0x407   :  { %7571 = vmatpush1.bf16.msra.mxu0 %v8965_v39  ;;  %v4661_v39 = vld [vmem:[#allocation11 + $0xb58] sm:$0xff] }
 0x408   :  { %7657 = vmatpush1.bf16.msra.mxu1 %v8967_v40  ;;  %7572 = vmatprep.subr.bf16.mxu0 %v8982_v48  ;;  %v9077_v40 = vcombine.low %v4636_v35, %v4644_v30  ;;  %v9079_v48 = vcombine.low %v4637_v42, %v4645_v25  ;;  %v9096_v50 = vcombine.high %v4653_v31, %v4661_v39  ;;  %v4748_v30 = vld [vmem:[#allocation11 + $0xe10] sm:$0xff]  ;;  %v4749_v25 = vld [vmem:[#allocation11 + $0xe18] sm:$0xff] }
 0x409   :  { %7658 = vmatprep.subr.bf16.mxu1 %v8984_v49  ;;  %v9094_v49 = vcombine.high %v4652_v37, %v4660_v38  ;;  %v4756_v42 = vld [vmem:[#allocation11 + $0xe50] sm:$0xff] }
 0x40b   :  { %7573 = vmatpush1.bf16.msra.mxu0 %v8981_v54  ;;  %v4677_v54 = vld [vmem:[#allocation11 + $0xbd8] sm:$0xff] }
 0x40c   :  { %7659 = vmatpush1.bf16.msra.mxu1 %v8983_v55  ;;  %7585 = vmatprep.subr.bf16.mxu0 %v8998_v56  ;;  %v9093_v55 = vcombine.low %v4652_v37, %v4660_v38  ;;  %v9095_v56 = vcombine.low %v4653_v31, %v4661_v39  ;;  %v9112_v58 = vcombine.high %v4669_v53, %v4677_v54  ;;  %v4764_v38 = vld [vmem:[#allocation11 + $0xe90] sm:$0xff]  ;;  %v4765_v39 = vld [vmem:[#allocation11 + $0xe98] sm:$0xff] }
 0x40d   :  { %7671 = vmatprep.subr.bf16.mxu1 %v9000_v57  ;;  %v9110_v57 = vcombine.high %v4668_v51, %v4676_v52  ;;  %v4772_v31 = vld [vmem:[#allocation11 + $0xed0] sm:$0xff] }
 0x40e   :  { %7575 = vmatmul.mubr.bf16.vlgmr.msra.gmra.mrb[8].mxu0 %v10553_v11 }
 0x40f   :  { %7661 = vmatmul.mubr.bf16.vlgmr.msra.gmra.mrb[8].mxu1 %v10553_v11  ;;  %7586 = vmatpush1.bf16.msra.mxu0 %v8997_v60  ;;  %v4692_v60 = vld [vmem:[#allocation11 + $0xc50] sm:$0xff] }
 0x410   :  { %7617 = vmatprep.mubr.bf16.mxu0 %v10559_v17  ;;  %7672 = vmatpush1.bf16.msra.mxu1 %v8999_v63  ;;  %v9109_v63 = vcombine.low %v4668_v51, %v4676_v52  ;;  %v9126_v1 = vcombine.high %v4684_v59, %v4692_v60  ;;  %v4780_v52 = vld [vmem:[#allocation11 + $0xf10] sm:$0xff] }
 0x411   :  { %7703 = vmatprep.mubr.bf16.mxu1 %v10559_v17  ;;  %7587 = vmatprep.subr.bf16.mxu0 %v9014_v0  ;;  %v9111_v0 = vcombine.low %v4669_v53, %v4677_v54  ;;  %v4788_v53 = vld [vmem:[#allocation11 + $0xf50] sm:$0xff]  ;;  %v4781_v54 = vld [vmem:[#allocation11 + $0xf18] sm:$0xff] }
 0x412   :  { %7673 = vmatprep.subr.bf16.mxu1 %v9016_v3  ;;  %v4700_v3 = vld [vmem:[#allocation11 + $0xc90] sm:$0xff] }
 0x413   :  { %7588 = vmatpush1.bf16.msra.mxu0 %v9013_v15  ;;  %v4709_v15 = vld [vmem:[#allocation11 + $0xcd8] sm:$0xff] }
 0x414   :  { %7674 = vmatpush1.bf16.msra.mxu1 %v9015_v5  ;;  %7589 = vmatprep.subr.bf16.mxu0 %v9030_v24  ;;  %v9125_v5 = vcombine.low %v4684_v59, %v4692_v60  ;;  %v9127_v24 = vcombine.low %v4685_v61, %v4693_v62  ;;  %v9144_v28 = vcombine.high %v4701_v4, %v4709_v15  ;;  %v4796_v60 = vld [vmem:[#allocation11 + $0xf90] sm:$0xff]  ;;  %v4797_v62 = vld [vmem:[#allocation11 + $0xf98] sm:$0xff] }
 0x415   :  { %7675 = vmatprep.subr.bf16.mxu1 %v9032_v6  ;;  %v9142_v6 = vcombine.high %v4700_v3, %v4708_v20  ;;  %v4804_v61 = vld [vmem:[#allocation11 + $0xfd0] sm:$0xff] }
 0x417   :  { %7590 = vmatpush1.bf16.msra.mxu0 %v9029_v27  ;;  %v4725_v27 = vld [vmem:[#allocation11 + $0xd58] sm:$0xff] }
 0x418   :  { %7676 = vmatpush1.bf16.msra.mxu1 %v9031_v9  ;;  %7591 = vmatprep.subr.bf16.mxu0 %v9046_v14  ;;  %v9141_v9 = vcombine.low %v4700_v3, %v4708_v20  ;;  %v9143_v14 = vcombine.low %v4701_v4, %v4709_v15  ;;  %v9160_v18 = vcombine.high %v4717_v8, %v4725_v27  ;;  %v4302_v20 = vld [vmem:[#allocation11 + $0x20] sm:$0xff]  ;;  %v4303_v15 = vld [vmem:[#allocation11 + $0x28] sm:$0xff] }
 0x419   :  { %7677 = vmatprep.subr.bf16.mxu1 %v9048_v10  ;;  %v9158_v10 = vcombine.high %v4716_v7, %v4724_v22  ;;  %v4310_v4 = vld [vmem:[#allocation11 + $0x60] sm:$0xff] }
 0x41b   :  { %7592 = vmatpush1.bf16.msra.mxu0 %v9045_v21  ;;  %v4741_v21 = vld [vmem:[#allocation11 + $0xdd8] sm:$0xff] }
 0x41c   :  { %7678 = vmatpush1.bf16.msra.mxu1 %v9047_v23  ;;  %7593 = vmatprep.subr.bf16.mxu0 %v9062_v33  ;;  %v9157_v23 = vcombine.low %v4716_v7, %v4724_v22  ;;  %v9159_v33 = vcombine.low %v4717_v8, %v4725_v27  ;;  %v9176_v35 = vcombine.high %v4733_v32, %v4741_v21  ;;  %v4318_v22 = vld [vmem:[#allocation11 + $0xa0] sm:$0xff] }
 0x41d   :  { %7679 = vmatprep.subr.bf16.mxu1 %v9064_v26  ;;  %v9174_v26 = vcombine.high %v4732_v19, %v4740_v29  ;;  %v4326_v8 = vld [vmem:[#allocation11 + $0xe0] sm:$0xff]  ;;  %v8745_v27 = vcombine.low %v4302_v20, %v4310_v4 }
 0x41f   :  { %7594 = vmatpush1.bf16.msra.mxu0 %v9061_v45  ;;  %v4757_v45 = vld [vmem:[#allocation11 + $0xe58] sm:$0xff] }
 0x420   :  { %7680 = vmatpush1.bf16.msra.mxu1 %v9063_v46  ;;  %7595 = vmatprep.subr.bf16.mxu0 %v9078_v47  ;;  %v9173_v46 = vcombine.low %v4732_v19, %v4740_v29  ;;  %v9175_v47 = vcombine.low %v4733_v32, %v4741_v21  ;;  %v9192_v37 = vcombine.high %v4749_v25, %v4757_v45  ;;  %v4334_v19 = vld [vmem:[#allocation11 + $0x120] sm:$0xff]  ;;  %v4335_v21 = vld [vmem:[#allocation11 + $0x128] sm:$0xff] }
 0x421   :  { %7681 = vmatprep.subr.bf16.mxu1 %v9080_v36  ;;  %v9190_v36 = vcombine.high %v4748_v30, %v4756_v42  ;;  %v4342_v29 = vld [vmem:[#allocation11 + $0x160] sm:$0xff] }
 0x423   :  { %7596 = vmatpush1.bf16.msra.mxu0 %v9077_v40  ;;  %v4773_v40 = vld [vmem:[#allocation11 + $0xed8] sm:$0xff] }
 0x424   :  { %7682 = vmatpush1.bf16.msra.mxu1 %v9079_v48  ;;  %7597 = vmatprep.subr.bf16.mxu0 %v9094_v49  ;;  %v9189_v48 = vcombine.low %v4748_v30, %v4756_v42  ;;  %v9191_v49 = vcombine.low %v4749_v25, %v4757_v45  ;;  %v9208_v51 = vcombine.high %v4765_v39, %v4773_v40  ;;  %v4350_v42 = vld [vmem:[#allocation11 + $0x1a0] sm:$0xff]  ;;  %v4351_v45 = vld [vmem:[#allocation11 + $0x1a8] sm:$0xff] }
 0x425   :  { %7683 = vmatprep.subr.bf16.mxu1 %v9096_v50  ;;  %v9206_v50 = vcombine.high %v4764_v38, %v4772_v31  ;;  %v4358_v25 = vld [vmem:[#allocation11 + $0x1e0] sm:$0xff] }
 0x427   :  { %7598 = vmatpush1.bf16.msra.mxu0 %v9093_v55  ;;  %v4789_v55 = vld [vmem:[#allocation11 + $0xf58] sm:$0xff] }
 0x428   :  { %7684 = vmatpush1.bf16.msra.mxu1 %v9095_v56  ;;  %7599 = vmatprep.subr.bf16.mxu0 %v9110_v57  ;;  %v9205_v56 = vcombine.low %v4764_v38, %v4772_v31  ;;  %v9207_v57 = vcombine.low %v4765_v39, %v4773_v40  ;;  %v9224_v59 = vcombine.high %v4781_v54, %v4789_v55  ;;  %v4366_v31 = vld [vmem:[#allocation11 + $0x220] sm:$0xff]  ;;  %v4367_v40 = vld [vmem:[#allocation11 + $0x228] sm:$0xff] }
 0x429   :  { %7685 = vmatprep.subr.bf16.mxu1 %v9112_v58  ;;  %v9222_v58 = vcombine.high %v4780_v52, %v4788_v53  ;;  %v4374_v39 = vld [vmem:[#allocation11 + $0x260] sm:$0xff] }
 0x42b   :  { %7600 = vmatpush1.bf16.msra.mxu0 %v9109_v63  ;;  %v4805_v63 = vld [vmem:[#allocation11 + $0xfd8] sm:$0xff] }
 0x42c   :  { %7686 = vmatpush1.bf16.msra.mxu1 %v9111_v0  ;;  %7601 = vmatprep.subr.bf16.mxu0 %v9126_v1  ;;  %v9221_v0 = vcombine.low %v4780_v52, %v4788_v53  ;;  %v9223_v1 = vcombine.low %v4781_v54, %v4789_v55  ;;  %v9240_v3 = vcombine.high %v4797_v62, %v4805_v63  ;;  %v4382_v53 = vld [vmem:[#allocation11 + $0x2a0] sm:$0xff]  ;;  %v4383_v55 = vld [vmem:[#allocation11 + $0x2a8] sm:$0xff] }
 0x42d   :  { %7687 = vmatprep.subr.bf16.mxu1 %v9128_v2  ;;  %v9238_v2 = vcombine.high %v4796_v60, %v4804_v61  ;;  %v4390_v54 = vld [vmem:[#allocation11 + $0x2e0] sm:$0xff] }
 0x42f   :  { %7602 = vmatpush1.bf16.msra.mxu0 %v9125_v5  ;;  %v4311_v5 = vld [vmem:[#allocation11 + $0x68] sm:$0xff] }
 0x430   :  { %7688 = vmatpush1.bf16.msra.mxu1 %v9127_v24  ;;  %7603 = vmatprep.subr.bf16.mxu0 %v9142_v6  ;;  %v9237_v24 = vcombine.low %v4796_v60, %v4804_v61  ;;  %v9239_v6 = vcombine.low %v4797_v62, %v4805_v63  ;;  %v8748_v7 = vcombine.high %v4303_v15, %v4311_v5  ;;  %v4398_v61 = vld [vmem:[#allocation11 + $0x320] sm:$0xff]  ;;  %v4399_v63 = vld [vmem:[#allocation11 + $0x328] sm:$0xff] }
 0x431   :  { %7689 = vmatprep.subr.bf16.mxu1 %v9144_v28  ;;  %v8746_v28 = vcombine.high %v4302_v20, %v4310_v4  ;;  %v4406_v62 = vld [vmem:[#allocation11 + $0x360] sm:$0xff] }
 0x432   :  { %v4414_v4 = vld [vmem:[#allocation11 + $0x3a0] sm:$0xff] }
 0x433   :  { %7604 = vmatpush1.bf16.msra.mxu0 %v9141_v9  ;;  %v4319_v9 = vld [vmem:[#allocation11 + $0xa8] sm:$0xff] }
 0x434   :  { %7690 = vmatpush1.bf16.msra.mxu1 %v9143_v14  ;;  %7605 = vmatprep.subr.bf16.mxu0 %v9158_v10  ;;  %v4327_v14 = vld [vmem:[#allocation11 + $0xe8] sm:$0xff]  ;;  %v8747_v10 = vcombine.low %v4303_v15, %v4311_v5  ;;  %v4422_v15 = vld [vmem:[#allocation11 + $0x3e0] sm:$0xff] }
 0x435   :  { %7691 = vmatprep.subr.bf16.mxu1 %v9160_v18  ;;  %v8762_v18 = vcombine.high %v4318_v22, %v4326_v8  ;;  %v8764_v32 = vcombine.high %v4319_v9, %v4327_v14  ;;  %v4415_v5 = vld [vmem:[#allocation11 + $0x3a8] sm:$0xff] }
 0x437   :  { %7606 = vmatpush1.bf16.msra.mxu0 %v9157_v23  ;;  %v4343_v23 = vld [vmem:[#allocation11 + $0x168] sm:$0xff] }
 0x438   :  { %7692 = vmatpush1.bf16.msra.mxu1 %v9159_v33  ;;  %7607 = vmatprep.subr.bf16.mxu0 %v9174_v26  ;;  %v8761_v33 = vcombine.low %v4318_v22, %v4326_v8  ;;  %v8763_v26 = vcombine.low %v4319_v9, %v4327_v14  ;;  %v8780_v30 = vcombine.high %v4335_v21, %v4343_v23  ;;  %v4430_v8 = vld [vmem:[#allocation11 + $0x420] sm:$0xff]  ;;  %v4431_v9 = vld [vmem:[#allocation11 + $0x428] sm:$0xff] }
 0x439   :  { %7693 = vmatprep.subr.bf16.mxu1 %v9176_v35  ;;  %v8778_v35 = vcombine.high %v4334_v19, %v4342_v29  ;;  %v4439_v14 = vld [vmem:[#allocation11 + $0x468] sm:$0xff] }
 0x43b   :  { %7608 = vmatpush1.bf16.msra.mxu0 %v9173_v46  ;;  %v4359_v46 = vld [vmem:[#allocation11 + $0x1e8] sm:$0xff] }
 0x43c   :  { %7694 = vmatpush1.bf16.msra.mxu1 %v9175_v47  ;;  %7609 = vmatprep.subr.bf16.mxu0 %v9190_v36  ;;  %v8777_v47 = vcombine.low %v4334_v19, %v4342_v29  ;;  %v8779_v36 = vcombine.low %v4335_v21, %v4343_v23  ;;  %v8796_v38 = vcombine.high %v4351_v45, %v4359_v46  ;;  %v4454_v21 = vld [vmem:[#allocation11 + $0x4e0] sm:$0xff]  ;;  %v4447_v23 = vld [vmem:[#allocation11 + $0x4a8] sm:$0xff] }
 0x43d   :  { %7695 = vmatprep.subr.bf16.mxu1 %v9192_v37  ;;  %v8794_v37 = vcombine.high %v4350_v42, %v4358_v25  ;;  %v8876_v29 = vcombine.high %v4431_v9, %v4439_v14 }
 0x43f   :  { %7610 = vmatpush1.bf16.msra.mxu0 %v9189_v48  ;;  %v4375_v48 = vld [vmem:[#allocation11 + $0x268] sm:$0xff] }
 0x440   :  { %7696 = vmatpush1.bf16.msra.mxu1 %v9191_v49  ;;  %7611 = vmatprep.subr.bf16.mxu0 %v9206_v50  ;;  %v8793_v49 = vcombine.low %v4350_v42, %v4358_v25  ;;  %v8795_v50 = vcombine.low %v4351_v45, %v4359_v46  ;;  %v8812_v52 = vcombine.high %v4367_v40, %v4375_v48  ;;  %v4462_v25 = vld [vmem:[#allocation11 + $0x520] sm:$0xff]  ;;  %v4463_v46 = vld [vmem:[#allocation11 + $0x528] sm:$0xff] }
 0x441   :  { %7697 = vmatprep.subr.bf16.mxu1 %v9208_v51  ;;  %v8810_v51 = vcombine.high %v4366_v31, %v4374_v39  ;;  %v4470_v45 = vld [vmem:[#allocation11 + $0x560] sm:$0xff] }
 0x443   :  { %7612 = vmatpush1.bf16.msra.mxu0 %v9205_v56  ;;  %v4391_v56 = vld [vmem:[#allocation11 + $0x2e8] sm:$0xff] }
 0x444   :  { %7698 = vmatpush1.bf16.msra.mxu1 %v9207_v57  ;;  %7613 = vmatprep.subr.bf16.mxu0 %v9222_v58  ;;  %v8809_v57 = vcombine.low %v4366_v31, %v4374_v39  ;;  %v8811_v58 = vcombine.low %v4367_v40, %v4375_v48  ;;  %v8828_v60 = vcombine.high %v4383_v55, %v4391_v56  ;;  %v4478_v39 = vld [vmem:[#allocation11 + $0x5a0] sm:$0xff]  ;;  %v4479_v48 = vld [vmem:[#allocation11 + $0x5a8] sm:$0xff] }
 0x445   :  { %7699 = vmatprep.subr.bf16.mxu1 %v9224_v59  ;;  %v8826_v59 = vcombine.high %v4382_v53, %v4390_v54  ;;  %v4486_v40 = vld [vmem:[#allocation11 + $0x5e0] sm:$0xff] }
 0x447   :  { %7614 = vmatpush1.bf16.msra.mxu0 %v9221_v0  ;;  %v4407_v0 = vld [vmem:[#allocation11 + $0x368] sm:$0xff] }
 0x448   :  { %7700 = vmatpush1.bf16.msra.mxu1 %v9223_v1  ;;  %7615 = vmatprep.subr.bf16.mxu0 %v9238_v2  ;;  %v8825_v1 = vcombine.low %v4382_v53, %v4390_v54  ;;  %v8827_v2 = vcombine.low %v4383_v55, %v4391_v56  ;;  %v8844_v20 = vcombine.high %v4399_v63, %v4407_v0  ;;  %v4494_v54 = vld [vmem:[#allocation11 + $0x620] sm:$0xff]  ;;  %v4495_v56 = vld [vmem:[#allocation11 + $0x628] sm:$0xff] }
 0x449   :  { %7701 = vmatprep.subr.bf16.mxu1 %v9240_v3  ;;  %v8842_v3 = vcombine.high %v4398_v61, %v4406_v62  ;;  %v4502_v55 = vld [vmem:[#allocation11 + $0x660] sm:$0xff] }
 0x44b   :  { %7616 = vmatpush1.bf16.msra.mxu0 %v9237_v24  ;;  %v4423_v24 = vld [vmem:[#allocation11 + $0x3e8] sm:$0xff] }
 0x44c   :  { %7702 = vmatpush1.bf16.msra.mxu1 %v9239_v6  ;;  %7714 = vmatprep.subr.bf16.mxu0 %v8746_v28  ;;  %v8841_v6 = vcombine.low %v4398_v61, %v4406_v62  ;;  %v8843_v28 = vcombine.low %v4399_v63, %v4407_v0  ;;  %v8860_v22 = vcombine.high %v4415_v5, %v4423_v24  ;;  %v4510_v62 = vld [vmem:[#allocation11 + $0x6a0] sm:$0xff]  ;;  %v4511_v0 = vld [vmem:[#allocation11 + $0x6a8] sm:$0xff] }
 0x44d   :  { %7800 = vmatprep.subr.bf16.mxu1 %v8748_v7  ;;  %v8858_v7 = vcombine.high %v4414_v4, %v4422_v15  ;;  %v4518_v63 = vld [vmem:[#allocation11 + $0x6e0] sm:$0xff] }
 0x44e   :  { %7618 = vmatmul.mubr.bf16.vlgmr.msra.gmra.mrb[8].mxu0 %v10557_v16 }
 0x44f   :  { %7704 = vmatmul.mubr.bf16.vlgmr.msra.gmra.mrb[8].mxu1 %v10557_v16  ;;  %7715 = vmatpush1.bf16.msra.mxu0 %v8745_v27  ;;  %v4438_v27 = vld [vmem:[#allocation11 + $0x460] sm:$0xff] }
 0x450   :  { %7746 = vmatprep.mubr.bf16.mxu0 %v10555_v12  ;;  %7801 = vmatpush1.bf16.msra.mxu1 %v8747_v10  ;;  %v8857_v10 = vcombine.low %v4414_v4, %v4422_v15  ;;  %v8874_v19 = vcombine.high %v4430_v8, %v4438_v27  ;;  %v4526_v15 = vld [vmem:[#allocation11 + $0x720] sm:$0xff] }
 0x451   :  { %7832 = vmatprep.mubr.bf16.mxu1 %v10555_v12  ;;  %7716 = vmatprep.subr.bf16.mxu0 %v8762_v18  ;;  %v8859_v18 = vcombine.low %v4415_v5, %v4423_v24  ;;  %v4534_v5 = vld [vmem:[#allocation11 + $0x760] sm:$0xff]  ;;  %v4527_v24 = vld [vmem:[#allocation11 + $0x728] sm:$0xff] }
 0x452   :  { %7802 = vmatprep.subr.bf16.mxu1 %v8764_v32  ;;  %v4446_v32 = vld [vmem:[#allocation11 + $0x4a0] sm:$0xff] }
 0x453   :  { %7717 = vmatpush1.bf16.msra.mxu0 %v8761_v33  ;;  %v4455_v33 = vld [vmem:[#allocation11 + $0x4e8] sm:$0xff] }
 0x454   :  { %7803 = vmatpush1.bf16.msra.mxu1 %v8763_v26  ;;  %7718 = vmatprep.subr.bf16.mxu0 %v8778_v35  ;;  %v8873_v26 = vcombine.low %v4430_v8, %v4438_v27  ;;  %v8875_v35 = vcombine.low %v4431_v9, %v4439_v14  ;;  %v8892_v42 = vcombine.high %v4447_v23, %v4455_v33  ;;  %v4542_v27 = vld [vmem:[#allocation11 + $0x7a0] sm:$0xff]  ;;  %v4543_v14 = vld [vmem:[#allocation11 + $0x7a8] sm:$0xff] }
 0x455   :  { %7804 = vmatprep.subr.bf16.mxu1 %v8780_v30  ;;  %v8890_v30 = vcombine.high %v4446_v32, %v4454_v21  ;;  %v4550_v9 = vld [vmem:[#allocation11 + $0x7e0] sm:$0xff] }
 0x457   :  { %7719 = vmatpush1.bf16.msra.mxu0 %v8777_v47  ;;  %v4471_v47 = vld [vmem:[#allocation11 + $0x568] sm:$0xff] }
 0x458   :  { %7805 = vmatpush1.bf16.msra.mxu1 %v8779_v36  ;;  %7720 = vmatprep.subr.bf16.mxu0 %v8794_v37  ;;  %v8889_v36 = vcombine.low %v4446_v32, %v4454_v21  ;;  %v8891_v37 = vcombine.low %v4447_v23, %v4455_v33  ;;  %v8908_v31 = vcombine.high %v4463_v46, %v4471_v47  ;;  %v4558_v21 = vld [vmem:[#allocation11 + $0x820] sm:$0xff]  ;;  %v4559_v33 = vld [vmem:[#allocation11 + $0x828] sm:$0xff] }
 0x459   :  { %7806 = vmatprep.subr.bf16.mxu1 %v8796_v38  ;;  %v8906_v38 = vcombine.high %v4462_v25, %v4470_v45  ;;  %v4566_v23 = vld [vmem:[#allocation11 + $0x860] sm:$0xff] }
 0x45b   :  { %7721 = vmatpush1.bf16.msra.mxu0 %v8793_v49  ;;  %v4487_v49 = vld [vmem:[#allocation11 + $0x5e8] sm:$0xff] }
 0x45c   :  { %7807 = vmatpush1.bf16.msra.mxu1 %v8795_v50  ;;  %7722 = vmatprep.subr.bf16.mxu0 %v8810_v51  ;;  %v8905_v50 = vcombine.low %v4462_v25, %v4470_v45  ;;  %v8907_v51 = vcombine.low %v4463_v46, %v4471_v47  ;;  %v8924_v53 = vcombine.high %v4479_v48, %v4487_v49  ;;  %v4574_v45 = vld [vmem:[#allocation11 + $0x8a0] sm:$0xff] }
 0x45d   :  { %7808 = vmatprep.subr.bf16.mxu1 %v8812_v52  ;;  %v8922_v52 = vcombine.high %v4478_v39, %v4486_v40  ;;  %v4582_v46 = vld [vmem:[#allocation11 + $0x8e0] sm:$0xff]  ;;  %v9001_v47 = vcombine.low %v4558_v21, %v4566_v23 }
 0x45f   :  { %7723 = vmatpush1.bf16.msra.mxu0 %v8809_v57  ;;  %v4503_v57 = vld [vmem:[#allocation11 + $0x668] sm:$0xff] }
 0x460   :  { %7809 = vmatpush1.bf16.msra.mxu1 %v8811_v58  ;;  %7724 = vmatprep.subr.bf16.mxu0 %v8826_v59  ;;  %v8921_v58 = vcombine.low %v4478_v39, %v4486_v40  ;;  %v8923_v59 = vcombine.low %v4479_v48, %v4487_v49  ;;  %v8940_v61 = vcombine.high %v4495_v56, %v4503_v57  ;;  %v4590_v39 = vld [vmem:[#allocation11 + $0x920] sm:$0xff]  ;;  %v4591_v49 = vld [vmem:[#allocation11 + $0x928] sm:$0xff] }
 0x461   :  { %7810 = vmatprep.subr.bf16.mxu1 %v8828_v60  ;;  %v8938_v60 = vcombine.high %v4494_v54, %v4502_v55  ;;  %v4598_v40 = vld [vmem:[#allocation11 + $0x960] sm:$0xff] }
 0x463   :  { %7725 = vmatpush1.bf16.msra.mxu0 %v8825_v1  ;;  %v4519_v1 = vld [vmem:[#allocation11 + $0x6e8] sm:$0xff] }
 0x464   :  { %7811 = vmatpush1.bf16.msra.mxu1 %v8827_v2  ;;  %7726 = vmatprep.subr.bf16.mxu0 %v8842_v3  ;;  %v8937_v2 = vcombine.low %v4494_v54, %v4502_v55  ;;  %v8939_v3 = vcombine.low %v4495_v56, %v4503_v57  ;;  %v8956_v4 = vcombine.high %v4511_v0, %v4519_v1  ;;  %v4606_v55 = vld [vmem:[#allocation11 + $0x9a0] sm:$0xff]  ;;  %v4607_v57 = vld [vmem:[#allocation11 + $0x9a8] sm:$0xff] }
 0x465   :  { %7812 = vmatprep.subr.bf16.mxu1 %v8844_v20  ;;  %v8954_v20 = vcombine.high %v4510_v62, %v4518_v63  ;;  %v4614_v56 = vld [vmem:[#allocation11 + $0x9e0] sm:$0xff] }
 0x467   :  { %7727 = vmatpush1.bf16.msra.mxu0 %v8841_v6  ;;  %v4535_v6 = vld [vmem:[#allocation11 + $0x768] sm:$0xff] }
 0x468   :  { %7813 = vmatpush1.bf16.msra.mxu1 %v8843_v28  ;;  %7728 = vmatprep.subr.bf16.mxu0 %v8858_v7  ;;  %v8953_v28 = vcombine.low %v4510_v62, %v4518_v63  ;;  %v8955_v7 = vcombine.low %v4511_v0, %v4519_v1  ;;  %v8972_v8 = vcombine.high %v4527_v24, %v4535_v6  ;;  %v4622_v63 = vld [vmem:[#allocation11 + $0xa20] sm:$0xff]  ;;  %v4623_v1 = vld [vmem:[#allocation11 + $0xa28] sm:$0xff] }
 0x469   :  { %7814 = vmatprep.subr.bf16.mxu1 %v8860_v22  ;;  %v8970_v22 = vcombine.high %v4526_v15, %v4534_v5  ;;  %v4630_v0 = vld [vmem:[#allocation11 + $0xa60] sm:$0xff] }
 0x46b   :  { %7729 = vmatpush1.bf16.msra.mxu0 %v8857_v10  ;;  %v4551_v10 = vld [vmem:[#allocation11 + $0x7e8] sm:$0xff] }
 0x46c   :  { %7815 = vmatpush1.bf16.msra.mxu1 %v8859_v18  ;;  %7730 = vmatprep.subr.bf16.mxu0 %v8874_v19  ;;  %v8969_v18 = vcombine.low %v4526_v15, %v4534_v5  ;;  %v8971_v19 = vcombine.low %v4527_v24, %v4535_v6  ;;  %v8988_v32 = vcombine.high %v4543_v14, %v4551_v10  ;;  %v4638_v5 = vld [vmem:[#allocation11 + $0xaa0] sm:$0xff]  ;;  %v4639_v6 = vld [vmem:[#allocation11 + $0xaa8] sm:$0xff] }
 0x46d   :  { %7816 = vmatprep.subr.bf16.mxu1 %v8876_v29  ;;  %v8986_v29 = vcombine.high %v4542_v27, %v4550_v9  ;;  %v4646_v24 = vld [vmem:[#allocation11 + $0xae0] sm:$0xff] }
 0x46f   :  { %7731 = vmatpush1.bf16.msra.mxu0 %v8873_v26  ;;  %v4567_v26 = vld [vmem:[#allocation11 + $0x868] sm:$0xff] }
 0x470   :  { %7817 = vmatpush1.bf16.msra.mxu1 %v8875_v35  ;;  %7732 = vmatprep.subr.bf16.mxu0 %v8890_v30  ;;  %v8985_v35 = vcombine.low %v4542_v27, %v4550_v9  ;;  %v8987_v30 = vcombine.low %v4543_v14, %v4551_v10  ;;  %v9004_v25 = vcombine.high %v4559_v33, %v4567_v26  ;;  %v4654_v14 = vld [vmem:[#allocation11 + $0xb20] sm:$0xff] }
 0x471   :  { %7818 = vmatprep.subr.bf16.mxu1 %v8892_v42  ;;  %v9002_v42 = vcombine.high %v4558_v21, %v4566_v23  ;;  %v9082_v27 = vcombine.high %v4638_v5, %v4646_v24  ;;  %v4662_v10 = vld [vmem:[#allocation11 + $0xb60] sm:$0xff] }
 0x473   :  { %7733 = vmatpush1.bf16.msra.mxu0 %v8889_v36  ;;  %v4575_v36 = vld [vmem:[#allocation11 + $0x8a8] sm:$0xff] }
 0x474   :  { %7819 = vmatpush1.bf16.msra.mxu1 %v8891_v37  ;;  %7734 = vmatprep.subr.bf16.mxu0 %v8906_v38  ;;  %v4583_v37 = vld [vmem:[#allocation11 + $0x8e8] sm:$0xff]  ;;  %v9003_v38 = vcombine.low %v4559_v33, %v4567_v26  ;;  %v9081_v33 = vcombine.low %v4638_v5, %v4646_v24 }
 0x475   :  { %7820 = vmatprep.subr.bf16.mxu1 %v8908_v31  ;;  %v9018_v31 = vcombine.high %v4574_v45, %v4582_v46  ;;  %v9020_v48 = vcombine.high %v4575_v36, %v4583_v37  ;;  %v4703_v5 = vld [vmem:[#allocation11 + $0xca8] sm:$0xff] }
 0x476   :  { %v4711_v24 = vld [vmem:[#allocation11 + $0xce8] sm:$0xff] }
 0x477   :  { %7735 = vmatpush1.bf16.msra.mxu0 %v8905_v50  ;;  %v4599_v50 = vld [vmem:[#allocation11 + $0x968] sm:$0xff] }
 0x478   :  { %7821 = vmatpush1.bf16.msra.mxu1 %v8907_v51  ;;  %7736 = vmatprep.subr.bf16.mxu0 %v8922_v52  ;;  %v9017_v51 = vcombine.low %v4574_v45, %v4582_v46  ;;  %v9019_v52 = vcombine.low %v4575_v36, %v4583_v37  ;;  %v9036_v54 = vcombine.high %v4591_v49, %v4599_v50  ;;  %v4670_v45 = vld [vmem:[#allocation11 + $0xba0] sm:$0xff] }
 0x479   :  { %7822 = vmatprep.subr.bf16.mxu1 %v8924_v53  ;;  %v9034_v53 = vcombine.high %v4590_v39, %v4598_v40  ;;  %v4678_v46 = vld [vmem:[#allocation11 + $0xbe0] sm:$0xff] }
 0x47b   :  { %7737 = vmatpush1.bf16.msra.mxu0 %v8921_v58  ;;  %v4615_v58 = vld [vmem:[#allocation11 + $0x9e8] sm:$0xff] }
 0x47c   :  { %7823 = vmatpush1.bf16.msra.mxu1 %v8923_v59  ;;  %7738 = vmatprep.subr.bf16.mxu0 %v8938_v60  ;;  %v9033_v59 = vcombine.low %v4590_v39, %v4598_v40  ;;  %v9035_v60 = vcombine.low %v4591_v49, %v4599_v50  ;;  %v9052_v62 = vcombine.high %v4607_v57, %v4615_v58  ;;  %v4679_v39 = vld [vmem:[#allocation11 + $0xbe8] sm:$0xff] }
 0x47d   :  { %7824 = vmatprep.subr.bf16.mxu1 %v8940_v61  ;;  %v9050_v61 = vcombine.high %v4606_v55, %v4614_v56 }
 0x47f   :  { %7739 = vmatpush1.bf16.msra.mxu0 %v8937_v2  ;;  %v4631_v2 = vld [vmem:[#allocation11 + $0xa68] sm:$0xff] }
 0x480   :  { %7825 = vmatpush1.bf16.msra.mxu1 %v8939_v3  ;;  %7740 = vmatprep.subr.bf16.mxu0 %v8954_v20  ;;  %v9049_v3 = vcombine.low %v4606_v55, %v4614_v56  ;;  %v9051_v20 = vcombine.low %v4607_v57, %v4615_v58  ;;  %v9068_v15 = vcombine.high %v4623_v1, %v4631_v2 }
 0x481   :  { %7826 = vmatprep.subr.bf16.mxu1 %v8956_v4  ;;  %v9066_v4 = vcombine.high %v4622_v63, %v4630_v0  ;;  %v9114_v57 = vcombine.high %v4670_v45, %v4678_v46 }
 0x483   :  { %7741 = vmatpush1.bf16.msra.mxu0 %v8953_v28  ;;  %v4647_v28 = vld [vmem:[#allocation11 + $0xae8] sm:$0xff] }
 0x484   :  { %7827 = vmatpush1.bf16.msra.mxu1 %v8955_v7  ;;  %7742 = vmatprep.subr.bf16.mxu0 %v8970_v22  ;;  %v9065_v7 = vcombine.low %v4622_v63, %v4630_v0  ;;  %v10589_v22 = vld [vmem:[#allocation12] sm:$0xff]  ;;  %v9084_v9 = vcombine.high %v4639_v6, %v4647_v28  ;;  %v9083_v26 = vcombine.low %v4639_v6, %v4647_v28  ;;  %v4687_v63 = vld [vmem:[#allocation11 + $0xc28] sm:$0xff] }
 0x485   :  { %7828 = vmatprep.subr.bf16.mxu1 %v8972_v8  ;;  %v9067_v8 = vcombine.low %v4623_v1, %v4631_v2  ;;  %v115_v21 = vrot.slane %v10589_v22, %v10529_v43  ;;  %v123_v23 = vrot.slane %v10589_v22, %v10535_v34  ;;  %v4695_v0 = vld [vmem:[#allocation11 + $0xc68] sm:$0xff]  ;;  %v9113_v1 = vcombine.low %v4670_v45, %v4678_v46  ;;  %v4750_v45 = vld [vmem:[#allocation11 + $0xe20] sm:$0xff] }
 0x486   :  { %v9131_v28 = vcombine.low %v4687_v63, %v4695_v0  ;;  %v4758_v46 = vld [vmem:[#allocation11 + $0xe60] sm:$0xff] }
 0x487   :  { %7743 = vmatpush1.bf16.msra.mxu0 %v8969_v18  ;;  %v111_v18 = vrot.slane %v10589_v22, %v10526_v41 }
 0x488   :  { %7829 = vmatpush1.bf16.msra.mxu1 %v8971_v19  ;;  %7744 = vmatprep.subr.bf16.mxu0 %v8986_v29  ;;  %v119_v19 = vrot.slane %v10589_v22, %v10532_v44  ;;  %v4655_v29 = vld [vmem:[#allocation11 + $0xb28] sm:$0xff] }
 0x489   :  { %7830 = vmatprep.subr.bf16.mxu1 %v8988_v32  ;;  %v4663_v32 = vld [vmem:[#allocation11 + $0xb68] sm:$0xff] }
 0x48b   :  { %7745 = vmatpush1.bf16.msra.mxu0 %v8985_v35  ;;  %v9098_v35 = vcombine.high %v4654_v14, %v4662_v10 }
 0x48c   :  { %7831 = vmatpush1.bf16.msra.mxu1 %v8987_v30  ;;  %7757 = vmatprep.subr.bf16.mxu0 %v9002_v42 }
 0x48d   :  { %7843 = vmatprep.subr.bf16.mxu1 %v9004_v25  ;;  %v9100_v25 = vcombine.high %v4655_v29, %v4663_v32 }
 0x48e   :  { %7747 = vmatmul.mubr.bf16.vlgmr.msra.gmra.mrb[12].mxu0 %v10553_v11 }
 0x48f   :  { %7833 = vmatmul.mubr.bf16.vlgmr.msra.gmra.mrb[12].mxu1 %v10553_v11  ;;  %7758 = vmatpush1.bf16.msra.mxu0 %v9001_v47 }
 0x490   :  { %7789 = vmatprep.mubr.bf16.mxu0 %v10559_v17  ;;  %7844 = vmatpush1.bf16.msra.mxu1 %v9003_v38 }
 0x491   :  { %7875 = vmatprep.mubr.bf16.mxu1 %v10559_v17  ;;  %7759 = vmatprep.subr.bf16.mxu0 %v9018_v31  ;;  %v4671_v31 = vld [vmem:[#allocation11 + $0xba8] sm:$0xff] }
 0x492   :  { %7845 = vmatprep.subr.bf16.mxu1 %v9020_v48  ;;  %v9115_v2 = vcombine.low %v4671_v31, %v4679_v39 }
 0x493   :  { %7760 = vmatpush1.bf16.msra.mxu0 %v9017_v51  ;;  %v9097_v51 = vcombine.low %v4654_v14, %v4662_v10  ;;  %v4719_v14 = vld [vmem:[#allocation11 + $0xd28] sm:$0xff] }
 0x494   :  { %7846 = vmatpush1.bf16.msra.mxu1 %v9019_v52  ;;  %7761 = vmatprep.subr.bf16.mxu0 %v9034_v53  ;;  %v9099_v52 = vcombine.low %v4655_v29, %v4663_v32  ;;  %v4727_v10 = vld [vmem:[#allocation11 + $0xd68] sm:$0xff] }
 0x495   :  { %7847 = vmatprep.subr.bf16.mxu1 %v9036_v54  ;;  %v9164_v32 = vcombine.high %v4719_v14, %v4727_v10 }
 0x497   :  { %7762 = vmatpush1.bf16.msra.mxu0 %v9033_v59 }
 0x498   :  { %7848 = vmatpush1.bf16.msra.mxu1 %v9035_v60  ;;  %7763 = vmatprep.subr.bf16.mxu0 %v9050_v61  ;;  %v9116_v60 = vcombine.high %v4671_v31, %v4679_v39  ;;  %v4686_v61 = vld [vmem:[#allocation11 + $0xc20] sm:$0xff]  ;;  %v9194_v31 = vcombine.high %v4750_v45, %v4758_v46 }
 0x499   :  { %7849 = vmatprep.subr.bf16.mxu1 %v9052_v62  ;;  %v4694_v62 = vld [vmem:[#allocation11 + $0xc60] sm:$0xff] }
 0x49a   :  { %v9129_v6 = vcombine.low %v4686_v61, %v4694_v62 }
 0x49b   :  { %7764 = vmatpush1.bf16.msra.mxu0 %v9049_v3  ;;  %v9130_v3 = vcombine.high %v4686_v61, %v4694_v62 }
 0x49c   :  { %7850 = vmatpush1.bf16.msra.mxu1 %v9051_v20  ;;  %7765 = vmatprep.subr.bf16.mxu0 %v9066_v4  ;;  %v9132_v20 = vcombine.high %v4687_v63, %v4695_v0  ;;  %v4702_v4 = vld [vmem:[#allocation11 + $0xca0] sm:$0xff] }
 0x49d   :  { %7851 = vmatprep.subr.bf16.mxu1 %v9068_v15  ;;  %v4710_v15 = vld [vmem:[#allocation11 + $0xce0] sm:$0xff] }
 0x49e   :  { %v4798_v63 = vld [vmem:[#allocation11 + $0xfa0] sm:$0xff] }
 0x49f   :  { %7766 = vmatpush1.bf16.msra.mxu0 %v9065_v7  ;;  %v9146_v7 = vcombine.high %v4702_v4, %v4710_v15  ;;  %v4806_v0 = vld [vmem:[#allocation11 + $0xfe0] sm:$0xff] }
 0x4a0   :  { %7852 = vmatpush1.bf16.msra.mxu1 %v9067_v8  ;;  %7767 = vmatprep.subr.bf16.mxu0 %v9082_v27  ;;  %v9148_v8 = vcombine.high %v4703_v5, %v4711_v24  ;;  %v4718_v27 = vld [vmem:[#allocation11 + $0xd20] sm:$0xff] }
 0x4a1   :  { %v7447_v30 = vpop.f32.mrb[4].mxu0  ;;  %v7533_v42 = vpop.f32.mrb[4].mxu1  ;;  %7853 = vmatprep.subr.bf16.mxu1 %v9084_v9  ;;  %v4726_v9 = vld [vmem:[#allocation11 + $0xd60] sm:$0xff] }
 0x4a2   :  { %v8058_v47 = vadd.f32 %v7447_v30, %v111_v18  ;;  %v8060_v36 = vadd.f32 %v7533_v42, %v119_v19  ;;  %v7449_v37 = vpop.f32.mrb[5].mxu0  ;;  %v7535_v38 = vpop.f32.mrb[5].mxu1  ;;  %v9162_v29 = vcombine.high %v4718_v27, %v4726_v9  ;;  %v9163_v30 = vcombine.low %v4719_v14, %v4727_v10  ;;  %v4320_v14 = vld [vmem:[#allocation11 + $0xb0] sm:$0xff] }
 0x4a3   :  { %v8059_v40 = vadd.f32 %v7449_v37, %v115_v21  ;;  %v8061_v48 = vadd.f32 %v7535_v38, %v123_v23  ;;  %v7451_v49 = vpop.f32.mrb[6].mxu0  ;;  %v7537_v50 = vpop.f32.mrb[6].mxu1  ;;  %7768 = vmatpush1.bf16.msra.mxu0 %v9081_v33  ;;  %v4735_v33 = vld [vmem:[#allocation11 + $0xda8] sm:$0xff]  ;;  %v4328_v10 = vld [vmem:[#allocation11 + $0xf0] sm:$0xff] }
 0x4a4   :  { %8157 = vst [vmem:[#allocation14] sm:$0xff] %v8058_v47  ;;  %8159 = vst [vmem:[#allocation14 + $0x10] sm:$0xff] %v8060_v36  ;;  %v8074_v53 = vadd.f32 %v7451_v49, %v111_v18  ;;  %v8076_v54 = vadd.f32 %v7537_v50, %v119_v19  ;;  %7854 = vmatpush1.bf16.msra.mxu1 %v9083_v26  ;;  %v7453_v55 = vpop.f32.mrb[7].mxu0  ;;  %v7539_v56 = vpop.f32.mrb[7].mxu1  ;;  %7769 = vmatprep.subr.bf16.mxu0 %v9098_v35  ;;  %v4743_v26 = vld [vmem:[#allocation11 + $0xde8] sm:$0xff] }
 0x4a5   :  { %8158 = vst [vmem:[#allocation14 + $0x8] sm:$0xff] %v8059_v40  ;;  %8160 = vst [vmem:[#allocation14 + $0x18] sm:$0xff] %v8061_v48  ;;  %v8075_v58 = vadd.f32 %v7453_v55, %v115_v21  ;;  %v8077_v59 = vadd.f32 %v7539_v56, %v123_v23  ;;  %7855 = vmatprep.subr.bf16.mxu1 %v9100_v25  ;;  %v9145_v18 = vcombine.low %v4702_v4, %v4710_v15  ;;  %v4734_v21 = vld [vmem:[#allocation11 + $0xda0] sm:$0xff]  ;;  %v4751_v47 = vld [vmem:[#allocation11 + $0xe28] sm:$0xff] }
 0x4a6   :  { %8173 = vst [vmem:[#allocation14 + $0x80] sm:$0xff] %v8074_v53  ;;  %8175 = vst [vmem:[#allocation14 + $0x90] sm:$0xff] %v8076_v54  ;;  %v9147_v19 = vcombine.low %v4703_v5, %v4711_v24  ;;  %v4742_v23 = vld [vmem:[#allocation11 + $0xde0] sm:$0xff]  ;;  %v9161_v35 = vcombine.low %v4718_v27, %v4726_v9  ;;  %v9180_v25 = vcombine.high %v4735_v33, %v4743_v26  ;;  %v4759_v36 = vld [vmem:[#allocation11 + $0xe68] sm:$0xff] }
 0x4a7   :  { %8174 = vst [vmem:[#allocation14 + $0x88] sm:$0xff] %v8075_v58  ;;  %8176 = vst [vmem:[#allocation14 + $0x98] sm:$0xff] %v8077_v59  ;;  %7770 = vmatpush1.bf16.msra.mxu0 %v9097_v51  ;;  %v9178_v42 = vcombine.high %v4734_v21, %v4742_v23  ;;  %v9177_v37 = vcombine.low %v4734_v21, %v4742_v23  ;;  %v9179_v38 = vcombine.low %v4735_v33, %v4743_v26  ;;  %v4766_v40 = vld [vmem:[#allocation11 + $0xea0] sm:$0xff]  ;;  %v4767_v49 = vld [vmem:[#allocation11 + $0xea8] sm:$0xff] }
 0x4a8   :  { %7856 = vmatpush1.bf16.msra.mxu1 %v9099_v52  ;;  %7771 = vmatprep.subr.bf16.mxu0 %v9114_v57  ;;  %v9196_v39 = vcombine.high %v4751_v47, %v4759_v36  ;;  %v4774_v48 = vld [vmem:[#allocation11 + $0xee0] sm:$0xff]  ;;  %v4775_v50 = vld [vmem:[#allocation11 + $0xee8] sm:$0xff]  ;;  %v9193_v51 = vcombine.low %v4750_v45, %v4758_v46  ;;  %v9195_v52 = vcombine.low %v4751_v47, %v4759_v36  ;;  %v4304_v5 = vld [vmem:[#allocation11 + $0x30] sm:$0xff] }
 0x4a9   :  { %7857 = vmatprep.subr.bf16.mxu1 %v9116_v60  ;;  %v9210_v53 = vcombine.high %v4766_v40, %v4774_v48  ;;  %v9212_v54 = vcombine.high %v4767_v49, %v4775_v50  ;;  %v4782_v55 = vld [vmem:[#allocation11 + $0xf20] sm:$0xff]  ;;  %v4783_v57 = vld [vmem:[#allocation11 + $0xf28] sm:$0xff]  ;;  %v9209_v59 = vcombine.low %v4766_v40, %v4774_v48  ;;  %v9211_v60 = vcombine.low %v4767_v49, %v4775_v50  ;;  %v4312_v24 = vld [vmem:[#allocation11 + $0x70] sm:$0xff] }
 0x4aa   :  { %v4790_v56 = vld [vmem:[#allocation11 + $0xf60] sm:$0xff]  ;;  %v4791_v58 = vld [vmem:[#allocation11 + $0xf68] sm:$0xff]  ;;  %v9242_v4 = vcombine.high %v4798_v63, %v4806_v0  ;;  %v8750_v27 = vcombine.high %v4304_v5, %v4312_v24  ;;  %v8766_v21 = vcombine.high %v4320_v14, %v4328_v10  ;;  %v4336_v23 = vld [vmem:[#allocation11 + $0x130] sm:$0xff] }
 0x4ab   :  { %7772 = vmatpush1.bf16.msra.mxu0 %v9113_v1  ;;  %v9226_v61 = vcombine.high %v4782_v55, %v4790_v56  ;;  %v9228_v62 = vcombine.high %v4783_v57, %v4791_v58  ;;  %v4799_v1 = vld [vmem:[#allocation11 + $0xfa8] sm:$0xff]  ;;  %v4344_v33 = vld [vmem:[#allocation11 + $0x170] sm:$0xff] }
 0x4ac   :  { %7858 = vmatpush1.bf16.msra.mxu1 %v9115_v2  ;;  %7773 = vmatprep.subr.bf16.mxu0 %v9130_v3  ;;  %v4807_v2 = vld [vmem:[#allocation11 + $0xfe8] sm:$0xff]  ;;  %v9225_v3 = vcombine.low %v4782_v55, %v4790_v56  ;;  %v8782_v45 = vcombine.high %v4336_v23, %v4344_v33  ;;  %v4352_v47 = vld [vmem:[#allocation11 + $0x1b0] sm:$0xff] }
 0x4ad   :  { %7859 = vmatprep.subr.bf16.mxu1 %v9132_v20  ;;  %v9227_v20 = vcombine.low %v4783_v57, %v4791_v58  ;;  %v9244_v15 = vcombine.high %v4799_v1, %v4807_v2  ;;  %v4360_v36 = vld [vmem:[#allocation11 + $0x1f0] sm:$0xff]  ;;  %v4385_v58 = vld [vmem:[#allocation11 + $0x2b8] sm:$0xff] }
 0x4ae   :  { %v8798_v40 = vcombine.high %v4352_v47, %v4360_v36  ;;  %v4368_v49 = vld [vmem:[#allocation11 + $0x230] sm:$0xff] }
 0x4af   :  { %7774 = vmatpush1.bf16.msra.mxu0 %v9129_v6  ;;  %v4305_v6 = vld [vmem:[#allocation11 + $0x38] sm:$0xff]  ;;  %v4376_v50 = vld [vmem:[#allocation11 + $0x270] sm:$0xff] }
 0x4b0   :  { %7860 = vmatpush1.bf16.msra.mxu1 %v9131_v28  ;;  %7775 = vmatprep.subr.bf16.mxu0 %v9146_v7  ;;  %v4313_v28 = vld [vmem:[#allocation11 + $0x78] sm:$0xff]  ;;  %v9241_v7 = vcombine.low %v4798_v63, %v4806_v0  ;;  %v4384_v56 = vld [vmem:[#allocation11 + $0x2b0] sm:$0xff] }
 0x4b1   :  { %7861 = vmatprep.subr.bf16.mxu1 %v9148_v8  ;;  %v9243_v8 = vcombine.low %v4799_v1, %v4807_v2  ;;  %v8752_v9 = vcombine.high %v4305_v6, %v4313_v28  ;;  %v4392_v57 = vld [vmem:[#allocation11 + $0x2f0] sm:$0xff]  ;;  %v4401_v2 = vld [vmem:[#allocation11 + $0x338] sm:$0xff] }
 0x4b2   :  { %v4400_v0 = vld [vmem:[#allocation11 + $0x330] sm:$0xff] }
 0x4b3   :  { %7776 = vmatpush1.bf16.msra.mxu0 %v9145_v18  ;;  %v8749_v18 = vcombine.low %v4304_v5, %v4312_v24  ;;  %v4408_v1 = vld [vmem:[#allocation11 + $0x370] sm:$0xff] }
 0x4b4   :  { %7862 = vmatpush1.bf16.msra.mxu1 %v9147_v19  ;;  %7777 = vmatprep.subr.bf16.mxu0 %v9162_v29  ;;  %v4321_v19 = vld [vmem:[#allocation11 + $0xb8] sm:$0xff]  ;;  %v4416_v24 = vld [vmem:[#allocation11 + $0x3b0] sm:$0xff] }
 0x4b5   :  { %7863 = vmatprep.subr.bf16.mxu1 %v9164_v32  ;;  %v4329_v29 = vld [vmem:[#allocation11 + $0xf8] sm:$0xff]  ;;  %v8751_v32 = vcombine.low %v4305_v6, %v4313_v28  ;;  %v4424_v6 = vld [vmem:[#allocation11 + $0x3f0] sm:$0xff] }
 0x4b6   :  { %v8768_v26 = vcombine.high %v4321_v19, %v4329_v29  ;;  %v4417_v28 = vld [vmem:[#allocation11 + $0x3b8] sm:$0xff] }
 0x4b7   :  { %7778 = vmatpush1.bf16.msra.mxu0 %v9161_v35  ;;  %v4337_v35 = vld [vmem:[#allocation11 + $0x138] sm:$0xff] }
 0x4b8   :  { %7864 = vmatpush1.bf16.msra.mxu1 %v9163_v30  ;;  %7779 = vmatprep.subr.bf16.mxu0 %v9178_v42  ;;  %v4345_v30 = vld [vmem:[#allocation11 + $0x178] sm:$0xff]  ;;  %v8765_v42 = vcombine.low %v4320_v14, %v4328_v10  ;;  %v4432_v10 = vld [vmem:[#allocation11 + $0x430] sm:$0xff] }
 0x4b9   :  { %7865 = vmatprep.subr.bf16.mxu1 %v9180_v25  ;;  %v8767_v25 = vcombine.low %v4321_v19, %v4329_v29  ;;  %v8784_v46 = vcombine.high %v4337_v35, %v4345_v30  ;;  %v4433_v19 = vld [vmem:[#allocation11 + $0x438] sm:$0xff] }
 0x4ba   :  { %v4441_v29 = vld [vmem:[#allocation11 + $0x478] sm:$0xff] }
 0x4bb   :  { %7780 = vmatpush1.bf16.msra.mxu0 %v9177_v37  ;;  %v4353_v37 = vld [vmem:[#allocation11 + $0x1b8] sm:$0xff] }
 0x4bc   :  { %7866 = vmatpush1.bf16.msra.mxu1 %v9179_v38  ;;  %7781 = vmatprep.subr.bf16.mxu0 %v9194_v31  ;;  %v4361_v38 = vld [vmem:[#allocation11 + $0x1f8] sm:$0xff]  ;;  %v8781_v31 = vcombine.low %v4336_v23, %v4344_v33  ;;  %v8880_v33 = vcombine.high %v4433_v19, %v4441_v29 }
 0x4bd   :  { %7867 = vmatprep.subr.bf16.mxu1 %v9196_v39  ;;  %v8783_v39 = vcombine.low %v4337_v35, %v4345_v30  ;;  %v8800_v48 = vcombine.high %v4353_v37, %v4361_v38  ;;  %v4456_v35 = vld [vmem:[#allocation11 + $0x4f0] sm:$0xff]  ;;  %v4449_v30 = vld [vmem:[#allocation11 + $0x4b8] sm:$0xff] }
 0x4bf   :  { %7782 = vmatpush1.bf16.msra.mxu0 %v9193_v51  ;;  %v4369_v51 = vld [vmem:[#allocation11 + $0x238] sm:$0xff] }
 0x4c0   :  { %7868 = vmatpush1.bf16.msra.mxu1 %v9195_v52  ;;  %7783 = vmatprep.subr.bf16.mxu0 %v9210_v53  ;;  %v4377_v52 = vld [vmem:[#allocation11 + $0x278] sm:$0xff]  ;;  %v8799_v53 = vcombine.low %v4353_v37, %v4361_v38  ;;  %v4472_v37 = vld [vmem:[#allocation11 + $0x570] sm:$0xff] }
 0x4c1   :  { %7869 = vmatprep.subr.bf16.mxu1 %v9212_v54  ;;  %v8814_v54 = vcombine.high %v4368_v49, %v4376_v50  ;;  %v8816_v55 = vcombine.high %v4369_v51, %v4377_v52  ;;  %v4465_v38 = vld [vmem:[#allocation11 + $0x538] sm:$0xff] }
 0x4c3   :  { %7784 = vmatpush1.bf16.msra.mxu0 %v9209_v59  ;;  %v4393_v59 = vld [vmem:[#allocation11 + $0x2f8] sm:$0xff] }
 0x4c4   :  { %7870 = vmatpush1.bf16.msra.mxu1 %v9211_v60  ;;  %7785 = vmatprep.subr.bf16.mxu0 %v9226_v61  ;;  %v8813_v60 = vcombine.low %v4368_v49, %v4376_v50  ;;  %v8815_v61 = vcombine.low %v4369_v51, %v4377_v52  ;;  %v8832_v63 = vcombine.high %v4385_v58, %v4393_v59  ;;  %v4480_v50 = vld [vmem:[#allocation11 + $0x5b0] sm:$0xff]  ;;  %v4481_v52 = vld [vmem:[#allocation11 + $0x5b8] sm:$0xff] }
 0x4c5   :  { %7871 = vmatprep.subr.bf16.mxu1 %v9228_v62  ;;  %v8830_v62 = vcombine.high %v4384_v56, %v4392_v57  ;;  %v4488_v51 = vld [vmem:[#allocation11 + $0x5f0] sm:$0xff] }
 0x4c7   :  { %7786 = vmatpush1.bf16.msra.mxu0 %v9225_v3  ;;  %v4409_v3 = vld [vmem:[#allocation11 + $0x378] sm:$0xff] }
 0x4c8   :  { %7872 = vmatpush1.bf16.msra.mxu1 %v9227_v20  ;;  %7787 = vmatprep.subr.bf16.mxu0 %v9242_v4  ;;  %v8829_v20 = vcombine.low %v4384_v56, %v4392_v57  ;;  %v8831_v4 = vcombine.low %v4385_v58, %v4393_v59  ;;  %v8848_v5 = vcombine.high %v4401_v2, %v4409_v3  ;;  %v4496_v57 = vld [vmem:[#allocation11 + $0x630] sm:$0xff]  ;;  %v4497_v59 = vld [vmem:[#allocation11 + $0x638] sm:$0xff] }
 0x4c9   :  { %7873 = vmatprep.subr.bf16.mxu1 %v9244_v15  ;;  %v8846_v15 = vcombine.high %v4400_v0, %v4408_v1  ;;  %v4504_v58 = vld [vmem:[#allocation11 + $0x670] sm:$0xff] }
 0x4cb   :  { %7788 = vmatpush1.bf16.msra.mxu0 %v9241_v7  ;;  %v4425_v7 = vld [vmem:[#allocation11 + $0x3f8] sm:$0xff] }
 0x4cc   :  { %7874 = vmatpush1.bf16.msra.mxu1 %v9243_v8  ;;  %7886 = vmatprep.subr.bf16.mxu0 %v8750_v27  ;;  %v8845_v8 = vcombine.low %v4400_v0, %v4408_v1  ;;  %v8847_v27 = vcombine.low %v4401_v2, %v4409_v3  ;;  %v8864_v14 = vcombine.high %v4417_v28, %v4425_v7  ;;  %v4512_v1 = vld [vmem:[#allocation11 + $0x6b0] sm:$0xff]  ;;  %v4513_v3 = vld [vmem:[#allocation11 + $0x6b8] sm:$0xff] }
 0x4cd   :  { %7972 = vmatprep.subr.bf16.mxu1 %v8752_v9  ;;  %v8862_v9 = vcombine.high %v4416_v24, %v4424_v6  ;;  %v4520_v2 = vld [vmem:[#allocation11 + $0x6f0] sm:$0xff] }
 0x4ce   :  { %7790 = vmatmul.mubr.bf16.vlgmr.msra.gmra.mrb[12].mxu0 %v10557_v16 }
 0x4cf   :  { %7876 = vmatmul.mubr.bf16.vlgmr.msra.gmra.mrb[12].mxu1 %v10557_v16  ;;  %7887 = vmatpush1.bf16.msra.mxu0 %v8749_v18  ;;  %v4440_v18 = vld [vmem:[#allocation11 + $0x470] sm:$0xff] }
 0x4d0   :  { %7918 = vmatprep.mubr.bf16.mxu0 %v10555_v12  ;;  %7973 = vmatpush1.bf16.msra.mxu1 %v8751_v32  ;;  %v8861_v32 = vcombine.low %v4416_v24, %v4424_v6  ;;  %v8878_v23 = vcombine.high %v4432_v10, %v4440_v18  ;;  %v4528_v6 = vld [vmem:[#allocation11 + $0x730] sm:$0xff] }
 0x4d1   :  { %8004 = vmatprep.mubr.bf16.mxu1 %v10555_v12  ;;  %7888 = vmatprep.subr.bf16.mxu0 %v8766_v21  ;;  %v8797_v12 = vcombine.low %v4352_v47, %v4360_v36  ;;  %v8863_v21 = vcombine.low %v4417_v28, %v4425_v7  ;;  %v4464_v36 = vld [vmem:[#allocation11 + $0x530] sm:$0xff]  ;;  %v4529_v7 = vld [vmem:[#allocation11 + $0x738] sm:$0xff] }
 0x4d2   :  { %7974 = vmatprep.subr.bf16.mxu1 %v8768_v26  ;;  %v4448_v26 = vld [vmem:[#allocation11 + $0x4b0] sm:$0xff] }
 0x4d3   :  { %7889 = vmatpush1.bf16.msra.mxu0 %v8765_v42  ;;  %v4457_v42 = vld [vmem:[#allocation11 + $0x4f8] sm:$0xff]  ;;  %v4536_v28 = vld [vmem:[#allocation11 + $0x770] sm:$0xff] }
 0x4d4   :  { %7975 = vmatpush1.bf16.msra.mxu1 %v8767_v25  ;;  %7890 = vmatprep.subr.bf16.mxu0 %v8782_v45  ;;  %v8877_v25 = vcombine.low %v4432_v10, %v4440_v18  ;;  %v8879_v45 = vcombine.low %v4433_v19, %v4441_v29  ;;  %v8896_v47 = vcombine.high %v4449_v30, %v4457_v42  ;;  %v4544_v18 = vld [vmem:[#allocation11 + $0x7b0] sm:$0xff]  ;;  %v4545_v29 = vld [vmem:[#allocation11 + $0x7b8] sm:$0xff] }
 0x4d5   :  { %7976 = vmatprep.subr.bf16.mxu1 %v8784_v46  ;;  %v8894_v46 = vcombine.high %v4448_v26, %v4456_v35  ;;  %v4552_v19 = vld [vmem:[#allocation11 + $0x7f0] sm:$0xff] }
 0x4d7   :  { %7891 = vmatpush1.bf16.msra.mxu0 %v8781_v31  ;;  %v4473_v31 = vld [vmem:[#allocation11 + $0x578] sm:$0xff] }
 0x4d8   :  { %7977 = vmatpush1.bf16.msra.mxu1 %v8783_v39  ;;  %7892 = vmatprep.subr.bf16.mxu0 %v8798_v40  ;;  %v8893_v39 = vcombine.low %v4448_v26, %v4456_v35  ;;  %v8895_v40 = vcombine.low %v4449_v30, %v4457_v42  ;;  %v8912_v49 = vcombine.high %v4465_v38, %v4473_v31  ;;  %v4560_v35 = vld [vmem:[#allocation11 + $0x830] sm:$0xff]  ;;  %v4561_v42 = vld [vmem:[#allocation11 + $0x838] sm:$0xff] }
 0x4d9   :  { %7978 = vmatprep.subr.bf16.mxu1 %v8800_v48  ;;  %v8910_v48 = vcombine.high %v4464_v36, %v4472_v37  ;;  %v4568_v30 = vld [vmem:[#allocation11 + $0x870] sm:$0xff] }
 0x4db   :  { %7893 = vmatpush1.bf16.msra.mxu0 %v8797_v12  ;;  %v4489_v12 = vld [vmem:[#allocation11 + $0x5f8] sm:$0xff] }
 0x4dc   :  { %7979 = vmatpush1.bf16.msra.mxu1 %v8799_v53  ;;  %7894 = vmatprep.subr.bf16.mxu0 %v8814_v54  ;;  %v8909_v53 = vcombine.low %v4464_v36, %v4472_v37  ;;  %v8911_v54 = vcombine.low %v4465_v38, %v4473_v31  ;;  %v8928_v56 = vcombine.high %v4481_v52, %v4489_v12  ;;  %v4576_v37 = vld [vmem:[#allocation11 + $0x8b0] sm:$0xff] }
 0x4dd   :  { %7980 = vmatprep.subr.bf16.mxu1 %v8816_v55  ;;  %v8926_v55 = vcombine.high %v4480_v50, %v4488_v51  ;;  %v4584_v38 = vld [vmem:[#allocation11 + $0x8f0] sm:$0xff]  ;;  %v9005_v31 = vcombine.low %v4560_v35, %v4568_v30 }
 0x4df   :  { %7895 = vmatpush1.bf16.msra.mxu0 %v8813_v60  ;;  %v4505_v60 = vld [vmem:[#allocation11 + $0x678] sm:$0xff] }
 0x4e0   :  { %7981 = vmatpush1.bf16.msra.mxu1 %v8815_v61  ;;  %7896 = vmatprep.subr.bf16.mxu0 %v8830_v62  ;;  %v8925_v61 = vcombine.low %v4480_v50, %v4488_v51  ;;  %v8927_v62 = vcombine.low %v4481_v52, %v4489_v12  ;;  %v8944_v0 = vcombine.high %v4497_v59, %v4505_v60  ;;  %v4592_v50 = vld [vmem:[#allocation11 + $0x930] sm:$0xff]  ;;  %v4593_v12 = vld [vmem:[#allocation11 + $0x938] sm:$0xff] }
 0x4e1   :  { %7982 = vmatprep.subr.bf16.mxu1 %v8832_v63  ;;  %v8942_v63 = vcombine.high %v4496_v57, %v4504_v58  ;;  %v4600_v51 = vld [vmem:[#allocation11 + $0x970] sm:$0xff] }
 0x4e3   :  { %7897 = vmatpush1.bf16.msra.mxu0 %v8829_v20  ;;  %v4521_v20 = vld [vmem:[#allocation11 + $0x6f8] sm:$0xff] }
 0x4e4   :  { %7983 = vmatpush1.bf16.msra.mxu1 %v8831_v4  ;;  %7898 = vmatprep.subr.bf16.mxu0 %v8846_v15  ;;  %v8941_v4 = vcombine.low %v4496_v57, %v4504_v58  ;;  %v8943_v15 = vcombine.low %v4497_v59, %v4505_v60  ;;  %v8960_v24 = vcombine.high %v4513_v3, %v4521_v20  ;;  %v4608_v58 = vld [vmem:[#allocation11 + $0x9b0] sm:$0xff]  ;;  %v4609_v60 = vld [vmem:[#allocation11 + $0x9b8] sm:$0xff] }
 0x4e5   :  { %7984 = vmatprep.subr.bf16.mxu1 %v8848_v5  ;;  %v8958_v5 = vcombine.high %v4512_v1, %v4520_v2  ;;  %v4616_v59 = vld [vmem:[#allocation11 + $0x9f0] sm:$0xff] }
 0x4e7   :  { %7899 = vmatpush1.bf16.msra.mxu0 %v8845_v8  ;;  %v4537_v8 = vld [vmem:[#allocation11 + $0x778] sm:$0xff] }
 0x4e8   :  { %7985 = vmatpush1.bf16.msra.mxu1 %v8847_v27  ;;  %7900 = vmatprep.subr.bf16.mxu0 %v8862_v9  ;;  %v8957_v27 = vcombine.low %v4512_v1, %v4520_v2  ;;  %v8959_v9 = vcombine.low %v4513_v3, %v4521_v20  ;;  %v8976_v10 = vcombine.high %v4529_v7, %v4537_v8  ;;  %v4624_v1 = vld [vmem:[#allocation11 + $0xa30] sm:$0xff]  ;;  %v4625_v3 = vld [vmem:[#allocation11 + $0xa38] sm:$0xff] }
 0x4e9   :  { %7986 = vmatprep.subr.bf16.mxu1 %v8864_v14  ;;  %v8974_v14 = vcombine.high %v4528_v6, %v4536_v28  ;;  %v4632_v2 = vld [vmem:[#allocation11 + $0xa70] sm:$0xff]  ;;  %v4633_v20 = vld [vmem:[#allocation11 + $0xa78] sm:$0xff] }
 0x4eb   :  { %7901 = vmatpush1.bf16.msra.mxu0 %v8861_v32  ;;  %v4553_v32 = vld [vmem:[#allocation11 + $0x7f8] sm:$0xff] }
 0x4ec   :  { %7987 = vmatpush1.bf16.msra.mxu1 %v8863_v21  ;;  %7902 = vmatprep.subr.bf16.mxu0 %v8878_v23  ;;  %v8973_v21 = vcombine.low %v4528_v6, %v4536_v28  ;;  %v8975_v23 = vcombine.low %v4529_v7, %v4537_v8  ;;  %v8992_v26 = vcombine.high %v4545_v29, %v4553_v32  ;;  %v4648_v6 = vld [vmem:[#allocation11 + $0xaf0] sm:$0xff]  ;;  %v126_v28 = vsub.s32 4, %v10522_v13  ;;  %v4641_v7 = vld [vmem:[#allocation11 + $0xab8] sm:$0xff] }
 0x4ed   :  { %7988 = vmatprep.subr.bf16.mxu1 %v8880_v33  ;;  %v8990_v33 = vcombine.high %v4544_v18, %v4552_v19  ;;  %v4649_v8 = vld [vmem:[#allocation11 + $0xaf8] sm:$0xff] }
 0x4ef   :  { %7903 = vmatpush1.bf16.msra.mxu0 %v8877_v25  ;;  %v4569_v25 = vld [vmem:[#allocation11 + $0x878] sm:$0xff] }
 0x4f0   :  { %7989 = vmatpush1.bf16.msra.mxu1 %v8879_v45  ;;  %7904 = vmatprep.subr.bf16.mxu0 %v8894_v46  ;;  %v8989_v45 = vcombine.low %v4544_v18, %v4552_v19  ;;  %v8991_v46 = vcombine.low %v4545_v29, %v4553_v32  ;;  %v9008_v36 = vcombine.high %v4561_v42, %v4569_v25  ;;  %v138_v18 = vsub.s32 7, %v10522_v13  ;;  %v4656_v32 = vld [vmem:[#allocation11 + $0xb30] sm:$0xff] }
 0x4f1   :  { %7990 = vmatprep.subr.bf16.mxu1 %v8896_v47  ;;  %v9006_v47 = vcombine.high %v4560_v35, %v4568_v30  ;;  %v9088_v29 = vcombine.high %v4641_v7, %v4649_v8 }
 0x4f3   :  { %7905 = vmatpush1.bf16.msra.mxu0 %v8893_v39  ;;  %v4577_v39 = vld [vmem:[#allocation11 + $0x8b8] sm:$0xff] }
 0x4f4   :  { %7991 = vmatpush1.bf16.msra.mxu1 %v8895_v40  ;;  %7906 = vmatprep.subr.bf16.mxu0 %v8910_v48  ;;  %v4585_v40 = vld [vmem:[#allocation11 + $0x8f8] sm:$0xff]  ;;  %v9007_v48 = vcombine.low %v4561_v42, %v4569_v25  ;;  %v139_v25 = vrot.slane %v10589_v22, %v138_v18 }
 0x4f5   :  { %7992 = vmatprep.subr.bf16.mxu1 %v8912_v49  ;;  %v9022_v49 = vcombine.high %v4576_v37, %v4584_v38  ;;  %v9024_v52 = vcombine.high %v4577_v39, %v4585_v40 }
 0x4f7   :  { %7907 = vmatpush1.bf16.msra.mxu0 %v8909_v53  ;;  %v4601_v53 = vld [vmem:[#allocation11 + $0x978] sm:$0xff] }
 0x4f8   :  { %7993 = vmatpush1.bf16.msra.mxu1 %v8911_v54  ;;  %7908 = vmatprep.subr.bf16.mxu0 %v8926_v55  ;;  %v9021_v54 = vcombine.low %v4576_v37, %v4584_v38  ;;  %v9023_v55 = vcombine.low %v4577_v39, %v4585_v40  ;;  %v9040_v57 = vcombine.high %v4593_v12, %v4601_v53  ;;  %v4672_v37 = vld [vmem:[#allocation11 + $0xbb0] sm:$0xff] }
 0x4f9   :  { %7994 = vmatprep.subr.bf16.mxu1 %v8928_v56  ;;  %v9038_v56 = vcombine.high %v4592_v50, %v4600_v51  ;;  %v4680_v38 = vld [vmem:[#allocation11 + $0xbf0] sm:$0xff] }
 0x4fb   :  { %7909 = vmatpush1.bf16.msra.mxu0 %v8925_v61  ;;  %v4617_v61 = vld [vmem:[#allocation11 + $0x9f8] sm:$0xff] }
 0x4fc   :  { %7995 = vmatpush1.bf16.msra.mxu1 %v8927_v62  ;;  %7910 = vmatprep.subr.bf16.mxu0 %v8942_v63  ;;  %v9037_v62 = vcombine.low %v4592_v50, %v4600_v51  ;;  %v9054_v63 = vcombine.high %v4608_v58, %v4616_v59 }
 0x4fd   :  { %7996 = vmatprep.subr.bf16.mxu1 %v8944_v0  ;;  %v9056_v0 = vcombine.high %v4609_v60, %v4617_v61 }
 0x4ff   :  { %7911 = vmatpush1.bf16.msra.mxu0 %v8941_v4  ;;  %v9055_v4 = vcombine.low %v4609_v60, %v4617_v61 }
 0x500   :  { %7997 = vmatpush1.bf16.msra.mxu1 %v8943_v15  ;;  %7912 = vmatprep.subr.bf16.mxu0 %v8958_v5  ;;  %v9070_v15 = vcombine.high %v4624_v1, %v4632_v2  ;;  %v9072_v5 = vcombine.high %v4625_v3, %v4633_v20 }
 0x501   :  { %7998 = vmatprep.subr.bf16.mxu1 %v8960_v24  ;;  %v4640_v24 = vld [vmem:[#allocation11 + $0xab0] sm:$0xff] }
 0x502   :  { %v9086_v19 = vcombine.high %v4640_v24, %v4648_v6  ;;  %v9085_v42 = vcombine.low %v4640_v24, %v4648_v6  ;;  %v4705_v24 = vld [vmem:[#allocation11 + $0xcb8] sm:$0xff] }
 0x503   :  { %7913 = vmatpush1.bf16.msra.mxu0 %v8957_v27  ;;  %v9069_v27 = vcombine.low %v4624_v1, %v4632_v2  ;;  %v4689_v1 = vld [vmem:[#allocation11 + $0xc38] sm:$0xff] }
 0x504   :  { %7999 = vmatpush1.bf16.msra.mxu1 %v8959_v9  ;;  %7914 = vmatprep.subr.bf16.mxu0 %v8974_v14  ;;  %v134_v9 = vsub.s32 6, %v10522_v13  ;;  %v130_v14 = vsub.s32 5, %v10522_v13  ;;  %v4697_v2 = vld [vmem:[#allocation11 + $0xc78] sm:$0xff] }
 0x505   :  { %8000 = vmatprep.subr.bf16.mxu1 %v8976_v10  ;;  %v9071_v10 = vcombine.low %v4625_v3, %v4633_v20  ;;  %v9117_v3 = vcombine.low %v4672_v37, %v4680_v38  ;;  %v4713_v6 = vld [vmem:[#allocation11 + $0xcf8] sm:$0xff] }
 0x506   :  { %v135_v35 = vrot.slane %v10589_v22, %v134_v9  ;;  %v131_v30 = vrot.slane %v10589_v22, %v130_v14 }
 0x507   :  { %7915 = vmatpush1.bf16.msra.mxu0 %v8973_v21  ;;  %v4664_v21 = vld [vmem:[#allocation11 + $0xb70] sm:$0xff] }
 0x508   :  { %8001 = vmatpush1.bf16.msra.mxu1 %v8975_v23  ;;  %7916 = vmatprep.subr.bf16.mxu0 %v8990_v33  ;;  %v127_v23 = vrot.slane %v10589_v22, %v126_v28  ;;  %v4657_v33 = vld [vmem:[#allocation11 + $0xb38] sm:$0xff] }
 0x509   :  { %8002 = vmatprep.subr.bf16.mxu1 %v8992_v26  ;;  %v4665_v26 = vld [vmem:[#allocation11 + $0xb78] sm:$0xff] }
 0x50a   :  { %v9103_v22 = vcombine.low %v4657_v33, %v4665_v26 }
 0x50b   :  { %7917 = vmatpush1.bf16.msra.mxu0 %v8989_v45  ;;  %v9087_v45 = vcombine.low %v4641_v7, %v4649_v8  ;;  %v9135_v8 = vcombine.low %v4689_v1, %v4697_v2 }
 0x50c   :  { %8003 = vmatpush1.bf16.msra.mxu1 %v8991_v46  ;;  %7929 = vmatprep.subr.bf16.mxu0 %v9006_v47  ;;  %v9102_v46 = vcombine.high %v4656_v32, %v4664_v21 }
 0x50d   :  { %8015 = vmatprep.subr.bf16.mxu1 %v9008_v36  ;;  %v9104_v36 = vcombine.high %v4657_v33, %v4665_v26  ;;  %v9151_v33 = vcombine.low %v4705_v24, %v4713_v6 }
 0x50e   :  { %7919 = vmatmul.mubr.bf16.vlgmr.msra.gmra.mrb[16].mxu0 %v10553_v11 }
 0x50f   :  { %8005 = vmatmul.mubr.bf16.vlgmr.msra.gmra.mrb[16].mxu1 %v10553_v11  ;;  %7930 = vmatpush1.bf16.msra.mxu0 %v9005_v31  ;;  %v9039_v11 = vcombine.low %v4593_v12, %v4601_v53  ;;  %v9101_v53 = vcombine.low %v4656_v32, %v4664_v21  ;;  %v4721_v32 = vld [vmem:[#allocation11 + $0xd38] sm:$0xff] }
 0x510   :  { %7961 = vmatprep.mubr.bf16.mxu0 %v10559_v17  ;;  %8016 = vmatpush1.bf16.msra.mxu1 %v9007_v48  ;;  %v4673_v48 = vld [vmem:[#allocation11 + $0xbb8] sm:$0xff] }
 0x511   :  { %8047 = vmatprep.mubr.bf16.mxu1 %v10559_v17  ;;  %7931 = vmatprep.subr.bf16.mxu0 %v9022_v49  ;;  %v9053_v17 = vcombine.low %v4608_v58, %v4616_v59  ;;  %v4681_v49 = vld [vmem:[#allocation11 + $0xbf8] sm:$0xff]  ;;  %v9118_v58 = vcombine.high %v4672_v37, %v4680_v38  ;;  %v4752_v38 = vld [vmem:[#allocation11 + $0xe30] sm:$0xff] }
 0x512   :  { %8017 = vmatprep.subr.bf16.mxu1 %v9024_v52  ;;  %v9119_v20 = vcombine.low %v4673_v48, %v4681_v49  ;;  %v4729_v21 = vld [vmem:[#allocation11 + $0xd78] sm:$0xff] }
 0x513   :  { %7932 = vmatpush1.bf16.msra.mxu0 %v9021_v54 }
 0x514   :  { %8018 = vmatpush1.bf16.msra.mxu1 %v9023_v55  ;;  %7933 = vmatprep.subr.bf16.mxu0 %v9038_v56 }
 0x515   :  { %8019 = vmatprep.subr.bf16.mxu1 %v9040_v57 }
 0x517   :  { %7934 = vmatpush1.bf16.msra.mxu0 %v9037_v62  ;;  %v9120_v62 = vcombine.high %v4673_v48, %v4681_v49 }
 0x518   :  { %8020 = vmatpush1.bf16.msra.mxu1 %v9039_v11  ;;  %7935 = vmatprep.subr.bf16.mxu0 %v9054_v63  ;;  %v4688_v11 = vld [vmem:[#allocation11 + $0xc30] sm:$0xff] }
 0x519   :  { %8021 = vmatprep.subr.bf16.mxu1 %v9056_v0  ;;  %v4696_v63 = vld [vmem:[#allocation11 + $0xc70] sm:$0xff] }
 0x51a   :  { %v9133_v7 = vcombine.low %v4688_v11, %v4696_v63 }
 0x51b   :  { %7936 = vmatpush1.bf16.msra.mxu0 %v9053_v17  ;;  %v9134_v17 = vcombine.high %v4688_v11, %v4696_v63 }
 0x51c   :  { %8022 = vmatpush1.bf16.msra.mxu1 %v9055_v4  ;;  %7937 = vmatprep.subr.bf16.mxu0 %v9070_v15  ;;  %v9136_v4 = vcombine.high %v4689_v1, %v4697_v2  ;;  %v4704_v15 = vld [vmem:[#allocation11 + $0xcb0] sm:$0xff] }
 0x51d   :  { %8023 = vmatprep.subr.bf16.mxu1 %v9072_v5  ;;  %v4712_v5 = vld [vmem:[#allocation11 + $0xcf0] sm:$0xff] }
 0x51e   :  { %v4800_v1 = vld [vmem:[#allocation11 + $0xfb0] sm:$0xff] }
 0x51f   :  { %7938 = vmatpush1.bf16.msra.mxu0 %v9069_v27  ;;  %v9150_v27 = vcombine.high %v4704_v15, %v4712_v5  ;;  %v4808_v2 = vld [vmem:[#allocation11 + $0xff0] sm:$0xff] }
 0x520   :  { %8024 = vmatpush1.bf16.msra.mxu1 %v9071_v10  ;;  %7939 = vmatprep.subr.bf16.mxu0 %v9086_v19  ;;  %v9152_v10 = vcombine.high %v4705_v24, %v4713_v6  ;;  %v4720_v19 = vld [vmem:[#allocation11 + $0xd30] sm:$0xff]  ;;  %v9245_v24 = vcombine.low %v4800_v1, %v4808_v2 }
 0x521   :  { %v7619_v47 = vpop.f32.mrb[8].mxu0  ;;  %8025 = vmatprep.subr.bf16.mxu1 %v9088_v29  ;;  %v4728_v29 = vld [vmem:[#allocation11 + $0xd70] sm:$0xff] }
 0x522   :  { %v8062_v31 = vadd.f32 %v7619_v47, %v127_v23  ;;  %v7705_v39 = vpop.f32.mrb[8].mxu1  ;;  %v7621_v40 = vpop.f32.mrb[9].mxu0  ;;  %v9166_v26 = vcombine.high %v4720_v19, %v4728_v29  ;;  %v9167_v47 = vcombine.low %v4721_v32, %v4729_v21 }
 0x523   :  { %v8064_v50 = vadd.f32 %v7705_v39, %v135_v35  ;;  %v8063_v51 = vadd.f32 %v7621_v40, %v131_v30  ;;  %v7707_v52 = vpop.f32.mrb[9].mxu1  ;;  %v7623_v12 = vpop.f32.mrb[10].mxu0  ;;  %7940 = vmatpush1.bf16.msra.mxu0 %v9085_v42  ;;  %v4744_v42 = vld [vmem:[#allocation11 + $0xdf0] sm:$0xff]  ;;  %v4753_v39 = vld [vmem:[#allocation11 + $0xe38] sm:$0xff] }
 0x524   :  { %8161 = vst [vmem:[#allocation14 + $0x20] sm:$0xff] %v8062_v31  ;;  %v8065_v54 = vadd.f32 %v7707_v52, %v139_v25  ;;  %v8078_v55 = vadd.f32 %v7623_v12, %v127_v23  ;;  %v7709_v56 = vpop.f32.mrb[10].mxu1  ;;  %8026 = vmatpush1.bf16.msra.mxu1 %v9087_v45  ;;  %v7625_v57 = vpop.f32.mrb[11].mxu0  ;;  %7941 = vmatprep.subr.bf16.mxu0 %v9102_v46  ;;  %v4745_v45 = vld [vmem:[#allocation11 + $0xdf8] sm:$0xff]  ;;  %v4760_v31 = vld [vmem:[#allocation11 + $0xe70] sm:$0xff] }
 0x525   :  { %8163 = vst [vmem:[#allocation14 + $0x30] sm:$0xff] %v8064_v50  ;;  %8162 = vst [vmem:[#allocation14 + $0x28] sm:$0xff] %v8063_v51  ;;  %v8080_v59 = vadd.f32 %v7709_v56, %v135_v35  ;;  %v8079_v60 = vadd.f32 %v7625_v57, %v131_v30  ;;  %v7711_v61 = vpop.f32.mrb[11].mxu1  ;;  %8027 = vmatprep.subr.bf16.mxu1 %v9104_v36  ;;  %v9149_v23 = vcombine.low %v4704_v15, %v4712_v5  ;;  %v4736_v30 = vld [vmem:[#allocation11 + $0xdb0] sm:$0xff]  ;;  %v4761_v40 = vld [vmem:[#allocation11 + $0xe78] sm:$0xff] }
 0x526   :  { %8164 = vst [vmem:[#allocation14 + $0x38] sm:$0xff] %v8065_v54  ;;  %8177 = vst [vmem:[#allocation14 + $0xa0] sm:$0xff] %v8078_v55  ;;  %v8081_v0 = vadd.f32 %v7711_v61, %v139_v25  ;;  %v9168_v35 = vcombine.high %v4721_v32, %v4729_v21  ;;  %v4737_v25 = vld [vmem:[#allocation11 + $0xdb8] sm:$0xff]  ;;  %v9165_v46 = vcombine.low %v4720_v19, %v4728_v29  ;;  %v4768_v52 = vld [vmem:[#allocation11 + $0xeb0] sm:$0xff] }
 0x527   :  { %8179 = vst [vmem:[#allocation14 + $0xb0] sm:$0xff] %v8080_v59  ;;  %8178 = vst [vmem:[#allocation14 + $0xa8] sm:$0xff] %v8079_v60  ;;  %7942 = vmatpush1.bf16.msra.mxu0 %v9101_v53  ;;  %v9182_v36 = vcombine.high %v4736_v30, %v4744_v42  ;;  %v9184_v37 = vcombine.high %v4737_v25, %v4745_v45  ;;  %v9181_v48 = vcombine.low %v4736_v30, %v4744_v42  ;;  %v4776_v12 = vld [vmem:[#allocation11 + $0xef0] sm:$0xff]  ;;  %v4769_v53 = vld [vmem:[#allocation11 + $0xeb8] sm:$0xff] }
 0x528   :  { %8180 = vst [vmem:[#allocation14 + $0xb8] sm:$0xff] %v8081_v0  ;;  %8028 = vmatpush1.bf16.msra.mxu1 %v9103_v22  ;;  %7943 = vmatprep.subr.bf16.mxu0 %v9118_v58  ;;  %v9183_v49 = vcombine.low %v4737_v25, %v4745_v45  ;;  %v9198_v50 = vcombine.high %v4752_v38, %v4760_v31  ;;  %v4777_v22 = vld [vmem:[#allocation11 + $0xef8] sm:$0xff]  ;;  %v4784_v58 = vld [vmem:[#allocation11 + $0xf30] sm:$0xff] }
 0x529   :  { %8029 = vmatprep.subr.bf16.mxu1 %v9120_v62  ;;  %v9200_v51 = vcombine.high %v4753_v39, %v4761_v40  ;;  %v9197_v54 = vcombine.low %v4752_v38, %v4760_v31  ;;  %v9199_v55 = vcombine.low %v4753_v39, %v4761_v40  ;;  %v9214_v56 = vcombine.high %v4768_v52, %v4776_v12  ;;  %v4792_v59 = vld [vmem:[#allocation11 + $0xf70] sm:$0xff]  ;;  %v4785_v60 = vld [vmem:[#allocation11 + $0xf38] sm:$0xff] }
 0x52a   :  { %v9216_v57 = vcombine.high %v4769_v53, %v4777_v22  ;;  %v4793_v61 = vld [vmem:[#allocation11 + $0xf78] sm:$0xff]  ;;  %v9213_v62 = vcombine.low %v4768_v52, %v4776_v12  ;;  %v9215_v11 = vcombine.low %v4769_v53, %v4777_v22  ;;  %v9230_v63 = vcombine.high %v4784_v58, %v4792_v59 }
 0x52b   :  { %7944 = vmatpush1.bf16.msra.mxu0 %v9117_v3  ;;  %v9232_v0 = vcombine.high %v4785_v60, %v4793_v61  ;;  %v4801_v3 = vld [vmem:[#allocation11 + $0xfb8] sm:$0xff]  ;;  %v9246_v15 = vcombine.high %v4800_v1, %v4808_v2 }
 0x52c   :  { %8030 = vmatpush1.bf16.msra.mxu1 %v9119_v20  ;;  %7945 = vmatprep.subr.bf16.mxu0 %v9134_v17  ;;  %v4809_v20 = vld [vmem:[#allocation11 + $0xff8] sm:$0xff]  ;;  %v9229_v17 = vcombine.low %v4784_v58, %v4792_v59 }
 0x52d   :  { %8031 = vmatprep.subr.bf16.mxu1 %v9136_v4  ;;  %v9231_v4 = vcombine.low %v4785_v60, %v4793_v61  ;;  %v9248_v5 = vcombine.high %v4801_v3, %v4809_v20  ;;  %v9247_v6 = vcombine.low %v4801_v3, %v4809_v20 }
 0x52f   :  { %7946 = vmatpush1.bf16.msra.mxu0 %v9133_v7  ;;  %v105_v7 = vld [vmem:[#allocation12 + $0x8] sm:$0xff] }
 0x530   :  { %8032 = vmatpush1.bf16.msra.mxu1 %v9135_v8  ;;  %7947 = vmatprep.subr.bf16.mxu0 %v9150_v27  ;;  %v143_v8 = vrot.slane %v105_v7, %v10526_v41  ;;  %v151_v27 = vrot.slane %v105_v7, %v10532_v44  ;;  %v155_v19 = vrot.slane %v105_v7, %v10535_v34 }
 0x531   :  { %8033 = vmatprep.subr.bf16.mxu1 %v9152_v10  ;;  %v147_v10 = vrot.slane %v105_v7, %v10529_v43 }
 0x533   :  { %7948 = vmatpush1.bf16.msra.mxu0 %v9149_v23 }
 0x534   :  { %8034 = vmatpush1.bf16.msra.mxu1 %v9151_v33  ;;  %7949 = vmatprep.subr.bf16.mxu0 %v9166_v26 }
 0x535   :  { %8035 = vmatprep.subr.bf16.mxu1 %v9168_v35 }
 0x537   :  { %7950 = vmatpush1.bf16.msra.mxu0 %v9165_v46  ;;  %v159_v46 = vrot.slane %v105_v7, %v126_v28 }
 0x538   :  { %8036 = vmatpush1.bf16.msra.mxu1 %v9167_v47  ;;  %7951 = vmatprep.subr.bf16.mxu0 %v9182_v36  ;;  %v167_v47 = vrot.slane %v105_v7, %v134_v9  ;;  %v163_v36 = vrot.slane %v105_v7, %v130_v14 }
 0x539   :  { %8037 = vmatprep.subr.bf16.mxu1 %v9184_v37  ;;  %v171_v37 = vrot.slane %v105_v7, %v138_v18 }
 0x53b   :  { %7952 = vmatpush1.bf16.msra.mxu0 %v9181_v48 }
 0x53c   :  { %8038 = vmatpush1.bf16.msra.mxu1 %v9183_v49  ;;  %7953 = vmatprep.subr.bf16.mxu0 %v9198_v50 }
 0x53d   :  { %8039 = vmatprep.subr.bf16.mxu1 %v9200_v51 }
 0x53f   :  { %7954 = vmatpush1.bf16.msra.mxu0 %v9197_v54 }
 0x540   :  { %8040 = vmatpush1.bf16.msra.mxu1 %v9199_v55  ;;  %7955 = vmatprep.subr.bf16.mxu0 %v9214_v56 }
 0x541   :  { %8041 = vmatprep.subr.bf16.mxu1 %v9216_v57 }
 0x543   :  { %7956 = vmatpush1.bf16.msra.mxu0 %v9213_v62 }
 0x544   :  { %8042 = vmatpush1.bf16.msra.mxu1 %v9215_v11  ;;  %7957 = vmatprep.subr.bf16.mxu0 %v9230_v63 }
 0x545   :  { %8043 = vmatprep.subr.bf16.mxu1 %v9232_v0 }
 0x547   :  { %7958 = vmatpush1.bf16.msra.mxu0 %v9229_v17 }
 0x548   :  { %8044 = vmatpush1.bf16.msra.mxu1 %v9231_v4  ;;  %7959 = vmatprep.subr.bf16.mxu0 %v9246_v15 }
 0x549   :  { %8045 = vmatprep.subr.bf16.mxu1 %v9248_v5 }
 0x54b   :  { %7960 = vmatpush1.bf16.msra.mxu0 %v9245_v24 }
 0x54c   :  { %8046 = vmatpush1.bf16.msra.mxu1 %v9247_v6 }
 0x54e   :  { %7962 = vmatmul.mubr.bf16.vlgmr.msra.gmra.mrb[16].mxu0 %v10557_v16 }
 0x54f   :  { %8048 = vmatmul.mubr.bf16.vlgmr.msra.gmra.mrb[16].mxu1 %v10557_v16 }
 0x5a1   :  { %v7791_v29 = vpop.f32.mrb[12].mxu0 }
 0x5a2   :  { %v8066_v32 = vadd.f32 %v7791_v29, %v143_v8  ;;  %v7877_v21 = vpop.f32.mrb[12].mxu1  ;;  %v7793_v23 = vpop.f32.mrb[13].mxu0 }
 0x5a3   :  { %v8068_v33 = vadd.f32 %v7877_v21, %v151_v27  ;;  %v8067_v26 = vadd.f32 %v7793_v23, %v147_v10  ;;  %v7879_v35 = vpop.f32.mrb[13].mxu1  ;;  %v7795_v30 = vpop.f32.mrb[14].mxu0 }
 0x5a4   :  { %8165 = vst [vmem:[#allocation14 + $0x40] sm:$0xff] %v8066_v32  ;;  %v8069_v42 = vadd.f32 %v7879_v35, %v155_v19  ;;  %v8082_v16 = vadd.f32 %v7795_v30, %v143_v8  ;;  %v7881_v25 = vpop.f32.mrb[14].mxu1  ;;  %v7797_v45 = vpop.f32.mrb[15].mxu0 }
 0x5a5   :  { %8167 = vst [vmem:[#allocation14 + $0x50] sm:$0xff] %v8068_v33  ;;  %8166 = vst [vmem:[#allocation14 + $0x48] sm:$0xff] %v8067_v26  ;;  %v8084_v41 = vadd.f32 %v7881_v25, %v151_v27  ;;  %v8083_v44 = vadd.f32 %v7797_v45, %v147_v10  ;;  %v7883_v43 = vpop.f32.mrb[15].mxu1 }
 0x5a6   :  { %8168 = vst [vmem:[#allocation14 + $0x58] sm:$0xff] %v8069_v42  ;;  %8181 = vst [vmem:[#allocation14 + $0xc0] sm:$0xff] %v8082_v16  ;;  %v8085_v34 = vadd.f32 %v7883_v43, %v155_v19 }
 0x5a7   :  { %8183 = vst [vmem:[#allocation14 + $0xd0] sm:$0xff] %v8084_v41  ;;  %8182 = vst [vmem:[#allocation14 + $0xc8] sm:$0xff] %v8083_v44 }
 0x5a8   :  { %8184 = vst [vmem:[#allocation14 + $0xd8] sm:$0xff] %v8085_v34 }
 0x621   :  { %v7963_v38 = vpop.f32.mrb[16].mxu0 }
 0x622   :  { %v8070_v31 = vadd.f32 %v7963_v38, %v159_v46  ;;  %v8049_v39 = vpop.f32.mrb[16].mxu1  ;;  %v7965_v40 = vpop.f32.mrb[17].mxu0 }
 0x623   :  { %v8072_v48 = vadd.f32 %v8049_v39, %v167_v47  ;;  %v8071_v49 = vadd.f32 %v7965_v40, %v163_v36  ;;  %v8051_v50 = vpop.f32.mrb[17].mxu1  ;;  %v7967_v51 = vpop.f32.mrb[18].mxu0 }
 0x624   :  { %8169 = vst [vmem:[#allocation14 + $0x60] sm:$0xff] %v8070_v31  ;;  %v8073_v28 = vadd.f32 %v8051_v50, %v171_v37  ;;  %v8086_v52 = vadd.f32 %v7967_v51, %v159_v46  ;;  %v8053_v9 = vpop.f32.mrb[18].mxu1  ;;  %v7969_v12 = vpop.f32.mrb[19].mxu0 }
 0x625   :  { %8171 = vst [vmem:[#allocation14 + $0x70] sm:$0xff] %v8072_v48  ;;  %8170 = vst [vmem:[#allocation14 + $0x68] sm:$0xff] %v8071_v49  ;;  %v8088_v14 = vadd.f32 %v8053_v9, %v167_v47  ;;  %v8087_v13 = vadd.f32 %v7969_v12, %v163_v36  ;;  %v8055_v18 = vpop.f32.mrb[19].mxu1 }
 0x626   :  { %8172 = vst [vmem:[#allocation14 + $0x78] sm:$0xff] %v8073_v28  ;;  %8185 = vst [vmem:[#allocation14 + $0xe0] sm:$0xff] %v8086_v52  ;;  %v8089_v53 = vadd.f32 %v8055_v18, %v171_v37 }
 0x627   :  { %8187 = vst [vmem:[#allocation14 + $0xf0] sm:$0xff] %v8088_v14  ;;  %8186 = vst [vmem:[#allocation14 + $0xe8] sm:$0xff] %v8087_v13 }
 0x628   :  { %8188 = vst [vmem:[#allocation14 + $0xf8] sm:$0xff] %v8089_v53 }
 0x629   :  { %10270 = shalt.err (!%p10267_p10)
}
 0x62a   :  { %s10271_s0 = scalar_lea.hbm %s10655_s6, 4096 }
 0x62b   :  { %p10272_p11 = scmp.ne.s32.totalorder %s10655_s6, %s10271_s0  ;;  %p10275_p12 = scmp.lt.u32.totalorder %s10271_s0, %s10655_s6 }
 0x62d   :  { %p10277_p13 = pnand %p10275_p12, %p10272_p11 }
 0x62f   :  { %10280 = shalt.err (!%p10277_p13)
}
 0x630   :  { %s10303_s25 = smov 2048   ;;  %s10304_s26 = smov 128  }
 0x631   :  { %8200 = dma.vmem_to_hbm [thread:$0]  %s8195_s8, 4096, %s10655_s6, [#allocation5], %s10303_s25, %s10303_s25, %s10304_s26  }
 0x632   :  { %10289 = dma.done.wait [#allocation5], 4096  }
 0x633   :  { %10290 = vsyncadd [#allocation5], 4294963200 }
 0x634   :  { %8204 = vsyncpa [#allocation4], 1 }
 0x635   :  { %8205 = vsyncpa [#allocation7], 1 }
 0x636   :  { %8206 = vsyncpa [#allocation10], 1 }
 0x637   :  { %8207 = vsyncpa [#allocation13], 1 }
 0x638   :  { %8208 = vsyncpa [#allocation5], 1 }

</bundles_post_ra>
